<compile_context>
chip_gen: v7x
topology: tpu7x:2x2x1
jax: 0.10.0
libtpu: 0.0.40
codegen_flags: <defaults>
</compile_context>

<pallas_src>
import functools
import math

import jax
import jax.numpy as jnp
from jax.experimental import pallas as pl
from jax.experimental.pallas import tpu as pltpu


# MXU operand / weight-storage dtype.  bf16 is native on v5e/v6e/v7x MXUs and
# halves weight HBM traffic and VMEM; accumulation stays f32 everywhere via
# preferred_element_type.
MATMUL_DTYPE = jnp.bfloat16
# Inter-module residual-stream dtype.  The (B,T,D) stream crosses HBM ~10x per
# layer; bf16 halves that traffic.  LN / softmax / residual math stay f32
# inside the kernels.
ACT_DTYPE = jnp.bfloat16

_LN_EPS = 1e-5
# Row tile for M-tiled dense kernels.  256 is a good all-round value; raise to
# 512 on v5e/v6e (128 MiB VMEM) for more HBM-roofline headroom.
_MAX_TILE_ROWS = 256
# Scoped VMEM limit: 32 MiB is safe on every generation (raises v5e's 16 MiB
# default).  Tune per generation; keep headroom below v7x's 64 MiB physical.
_VMEM_LIMIT_BYTES = 32 * 1024 * 1024
# Query tile for MHSA when the (padded) sequence is longer than this.
_MHSA_Q_TILE = 128


# ----------------------------- small helpers -------------------------------

def _row_tile(M):
    """Pick a row tile and the padded row count for an (M, ...) matrix."""
    if M <= _MAX_TILE_ROWS:
        return M, M                       # single block == full array dims
    tile = _MAX_TILE_ROWS
    Mp = ((M + tile - 1) // tile) * tile
    return tile, Mp


def _pad_rows(x, Mp):
    M = x.shape[0]
    if Mp == M:
        return x
    return jnp.pad(x, ((0, Mp - M), (0, 0)))


def _seq_pad(t):
    """Padded sequence length: multiple of 8, and of the q-tile when tiled."""
    if t <= _MHSA_Q_TILE:
        return ((t + 7) // 8) * 8
    return ((t + _MHSA_Q_TILE - 1) // _MHSA_Q_TILE) * _MHSA_Q_TILE


def _mm(a, b):
    """MXU matmul with bf16 operands and f32 accumulation."""
    return jnp.dot(a.astype(MATMUL_DTYPE), b.astype(MATMUL_DTYPE),
                   preferred_element_type=jnp.float32)


def _layernorm(x, g, b, eps=_LN_EPS):
    mu = jnp.mean(x, axis=-1, keepdims=True)
    var = jnp.mean(jnp.square(x - mu), axis=-1, keepdims=True)
    return (x - mu) * jax.lax.rsqrt(var + eps) * g + b


def _compiler_params(dims):
    return pltpu.CompilerParams(dimension_semantics=dims,
                                vmem_limit_bytes=_VMEM_LIMIT_BYTES)


# ----------------------------- Pallas kernels ------------------------------

def _linear_kernel(*refs, act, has_bias):
    if has_bias:
        x_ref, w_ref, b_ref, o_ref = refs
    else:
        x_ref, w_ref, o_ref = refs
    y = _mm(x_ref[...], w_ref[...])
    if has_bias:
        y = y + b_ref[...]
    if act == "relu":
        y = jnp.maximum(y, 0.0)
    elif act == "swish":
        y = y * jax.nn.sigmoid(y)
    o_ref[...] = y.astype(o_ref.dtype)


def pallas_linear(x, w, b=None, act="none", out_dtype=jnp.float32):
    """y = act(x @ w [+ b]).  x:(M,K)  w:(K,N).  M-tiled, weights resident."""
    M, K = x.shape
    N = w.shape[1]
    tile, Mp = _row_tile(M)
    xp = _pad_rows(x, Mp)
    # NOTE: weight specs are double-buffered by Pallas even though their block
    # index never changes; pl.Buffered(1) would halve that VMEM (left default
    # here for portability).
    in_specs = [pl.BlockSpec((tile, K), lambda i: (i, 0)),
                pl.BlockSpec((K, N), lambda i: (0, 0))]
    args = [xp, w]
    if b is not None:
        in_specs.append(pl.BlockSpec((1, N), lambda i: (0, 0)))
        args.append(b.reshape(1, N))
    y = pl.pallas_call(
        functools.partial(_linear_kernel, act=act, has_bias=b is not None),
        out_shape=jax.ShapeDtypeStruct((Mp, N), out_dtype),
        grid=(Mp // tile,),
        in_specs=in_specs,
        out_specs=pl.BlockSpec((tile, N), lambda i: (i, 0)),
        compiler_params=_compiler_params(("parallel",)),
    )(*args)
    return y if Mp == M else y[:M]


def _layernorm_kernel(x_ref, g_ref, b_ref, o_ref, *, eps):
    x = x_ref[...].astype(jnp.float32)
    o_ref[...] = _layernorm(x, g_ref[...], b_ref[...], eps).astype(o_ref.dtype)


def pallas_layernorm(x, gamma, beta, eps=_LN_EPS, out_dtype=jnp.float32):
    M, D = x.shape
    tile, Mp = _row_tile(M)
    xp = _pad_rows(x, Mp)
    y = pl.pallas_call(
        functools.partial(_layernorm_kernel, eps=eps),
        out_shape=jax.ShapeDtypeStruct((Mp, D), out_dtype),
        grid=(Mp // tile,),
        in_specs=[pl.BlockSpec((tile, D), lambda i: (i, 0)),
                  pl.BlockSpec((1, D), lambda i: (0, 0)),
                  pl.BlockSpec((1, D), lambda i: (0, 0))],
        out_specs=pl.BlockSpec((tile, D), lambda i: (i, 0)),
        compiler_params=_compiler_params(("parallel",)),
    )(xp, gamma.reshape(1, D), beta.reshape(1, D))
    return y if Mp == M else y[:M]


def _ffn_module_kernel(x_ref, g_ref, b_ref, w1_ref, b1_ref, w2_ref, b2_ref,
                       fg_ref, fb_ref, o_ref, *, eps, ff_scale, final_ln):
    """Fused: LN -> W1 -> swish -> W2 -> residual (+ optional extra LayerNorm)."""
    x = x_ref[...].astype(jnp.float32)               # (TM, D)
    xn = _layernorm(x, g_ref[...], b_ref[...], eps)
    h = _mm(xn, w1_ref[...]) + b1_ref[...]
    h = h * jax.nn.sigmoid(h)                        # swish, f32 on VPU/EUP
    y = x + ff_scale * (_mm(h, w2_ref[...]) + b2_ref[...])   # residual fused
    if final_ln:                                     # per-layer norm_final
        y = _layernorm(y, fg_ref[...], fb_ref[...], eps)
    o_ref[...] = y.astype(o_ref.dtype)


def ffn_module(x2d, ln_g, ln_b, w1, b1, w2, b2, *, ff_scale=0.5,
               final_ln=False, fin_g=None, fin_b=None):
    M, D = x2d.shape
    U = w1.shape[1]
    tile, Mp = _row_tile(M)
    xp = _pad_rows(x2d, Mp)
    if fin_g is None:                                # dummies, ignored when final_ln=False
        fin_g, fin_b = ln_g, ln_b
    y = pl.pallas_call(
        functools.partial(_ffn_module_kernel, eps=_LN_EPS,
                          ff_scale=ff_scale, final_ln=final_ln),
        out_shape=jax.ShapeDtypeStruct((Mp, D), ACT_DTYPE),
        grid=(Mp // tile,),
        in_specs=[pl.BlockSpec((tile, D), lambda i: (i, 0)),
                  pl.BlockSpec((1, D), lambda i: (0, 0)),
                  pl.BlockSpec((1, D), lambda i: (0, 0)),
                  pl.BlockSpec((D, U), lambda i: (0, 0)),
                  pl.BlockSpec((1, U), lambda i: (0, 0)),
                  pl.BlockSpec((U, D), lambda i: (0, 0)),
                  pl.BlockSpec((1, D), lambda i: (0, 0)),
                  pl.BlockSpec((1, D), lambda i: (0, 0)),
                  pl.BlockSpec((1, D), lambda i: (0, 0))],
        out_specs=pl.BlockSpec((tile, D), lambda i: (i, 0)),
        compiler_params=_compiler_params(("parallel",)),
    )(xp, ln_g.reshape(1, D), ln_b.reshape(1, D), w1, b1.reshape(1, U),
      w2, b2.reshape(1, D), fin_g.reshape(1, D), fin_b.reshape(1, D))
    return y if Mp == M else y[:M]


def _mhsa_module_kernel(xf_ref, xt_ref, m_ref, bias_ref, p_ref, lng_ref, lnb_ref,
                        wq_ref, bq_ref, wkv_ref, bkv_ref, pu_ref, pv_ref,
                        wo_ref, bo_ref, o_ref, k_scr, v_scr, ctx_scr,
                        *, heads, dk, eps, scale):
    """Fused rel-pos MHSA module, query-tiled.

    K/V of the whole (padded) sequence are built once per batch element and
    kept in VMEM scratch (bf16); each grid step handles one query tile.  Heads
    stay folded on the lane axis; the out-projection is one K=D matmul.
    """
    qi = pl.program_id(1)
    D = heads * dk

    @pl.when(qi == 0)
    def _():                                          # build K/V once per batch elem
        xn_full = _layernorm(xf_ref[0].astype(jnp.float32),
                             lng_ref[...], lnb_ref[...], eps)
        kv = _mm(xn_full, wkv_ref[...]) + bkv_ref[...]        # (T, 2D)
        k_scr[...] = kv[:, 0:D].astype(k_scr.dtype)
        v_scr[...] = kv[:, D:2 * D].astype(v_scr.dtype)

    xt = xt_ref[0].astype(jnp.float32)                # (TQ, D) query tile (residual)
    xn = _layernorm(xt, lng_ref[...], lnb_ref[...], eps)
    q = _mm(xn, wq_ref[...]) + bq_ref[...]            # (TQ, D)
    # fold the 1/sqrt(dk) scale into q once instead of scaling every (TQ, T) score
    qu = ((q + pu_ref[...]) * scale).astype(MATMUL_DTYPE)     # pos_bias_u
    qv = ((q + pv_ref[...]) * scale).astype(MATMUL_DTYPE)     # pos_bias_v

    k = k_scr[...]                                    # (T, D) bf16
    v = v_scr[...]                                    # (T, D) bf16
    pk = p_ref[...].astype(MATMUL_DTYPE)              # (T, D) projected rel-pos emb
    key_mask = m_ref[0]                               # (1, T) 0/1
    key_bias = bias_ref[0]                            # (1, T) additive (-1e9 on pad)
    dn = (((1,), (1,)), ((), ()))                     # contract d_k with d_k

    for h in range(heads):                            # unrolled over heads
        s0, s1 = h * dk, (h + 1) * dk
        ac = jax.lax.dot_general(qu[:, s0:s1], k[:, s0:s1], dn,
                                 preferred_element_type=jnp.float32)
        bd = jax.lax.dot_general(qv[:, s0:s1], pk[:, s0:s1], dn,
                                 preferred_element_type=jnp.float32)
        s = ac + bd + key_bias                        # (TQ, T); wenet: no rel_shift
        e = jnp.exp(s - jnp.max(s, axis=-1, keepdims=True))
        inv = pl.reciprocal(jnp.sum(e, axis=-1, keepdims=True), approx=True)
        attn = (e * inv) * key_mask                   # zero masked keys post-softmax
        ctx_scr[:, s0:s1] = _mm(attn, v[:, s0:s1])    # (TQ, dk) per-head context

    # single consolidated output projection: (TQ, D) x (D, D)
    y = _mm(ctx_scr[...], wo_ref[...]) + bo_ref[...]
    o_ref[0] = (xt + y).astype(o_ref.dtype)


def mhsa_module(x, pproj, mask01, mask_bias, ln_g, ln_b, wq, bq, wkv, bkv,
                pos_u, pos_v, wo, bo, *, heads):
    B, T, D = x.shape                                 # T already padded by caller
    dk = D // heads
    scale = 1.0 / math.sqrt(dk)
    tq = T if T <= _MHSA_Q_TILE else _MHSA_Q_TILE
    assert T % tq == 0
    nq = T // tq

    spec_full = pl.BlockSpec((1, T, D), lambda b, q: (b, 0, 0))
    spec_tile = pl.BlockSpec((1, tq, D), lambda b, q: (b, q, 0))
    spec_msk = pl.BlockSpec((1, 1, T), lambda b, q: (b, 0, 0))

    def res(shape):                                   # resident (weight) block
        return pl.BlockSpec(shape, lambda b, q: tuple(0 for _ in shape))

    return pl.pallas_call(
        functools.partial(_mhsa_module_kernel, heads=heads, dk=dk,
                          eps=_LN_EPS, scale=scale),
        out_shape=jax.ShapeDtypeStruct((B, T, D), ACT_DTYPE),
        grid=(B, nq),
        in_specs=[spec_full, spec_tile, spec_msk, spec_msk,
                  res((T, D)),
                  res((1, D)), res((1, D)),
                  res((D, D)), res((1, D)),
                  res((D, 2 * D)), res((1, 2 * D)),
                  res((1, D)), res((1, D)),
                  res((D, D)), res((1, D))],
        out_specs=spec_tile,
        scratch_shapes=[pltpu.VMEM((T, D), MATMUL_DTYPE),      # K
                        pltpu.VMEM((T, D), MATMUL_DTYPE),      # V
                        pltpu.VMEM((tq, D), jnp.float32)],     # per-tile context
        # q-tile axis must stay "arbitrary": scratch K/V is (re)built at qi==0.
        compiler_params=_compiler_params(("parallel", "arbitrary")),
    )(x, x, mask01, mask_bias, pproj,
      ln_g.reshape(1, D), ln_b.reshape(1, D),
      wq, bq.reshape(1, D), wkv, bkv.reshape(1, 2 * D),
      pos_u.reshape(1, D), pos_v.reshape(1, D), wo, bo.reshape(1, D))


def _conv_module_kernel(x_ref, mrow_ref, lng_ref, lnb_ref, w1_ref, b1_ref,
                        dw_ref, db_ref, bns_ref, bnb_ref, w2_ref, b2_ref,
                        o_ref, ypad_ref, *, ksize, eps):
    """Fused conv module: LN -> mask -> PW1(+GLU) -> depthwise(k) -> BN -> swish -> PW2 -> mask -> residual."""
    x = x_ref[0].astype(jnp.float32)                 # (T, D)
    T, D = x.shape
    tmask = mrow_ref[0]                              # (T, 1) 0/1 valid-frame mask
    xn = _layernorm(x, lng_ref[...], lnb_ref[...], eps)
    xn = xn * tmask                                  # wenet: masked_fill(~mask_pad, 0)

    # pointwise_conv1 (D -> 2D) as ONE wide matmul, GLU split on static lane slices
    h = _mm(xn, w1_ref[...]) + b1_ref[...]           # (T, 2D)
    y = h[:, 0:D] * jax.nn.sigmoid(h[:, D:2 * D])    # GLU -> (T, D)

    # depthwise conv along time (non-causal, zero pad); only the two halos are
    # zeroed (not the whole buffer) before storing y into the middle.
    pad = (ksize - 1) // 2
    ypad_ref[0:pad, :] = jnp.zeros((pad, D), jnp.float32)
    ypad_ref[pad:pad + T, :] = y
    ypad_ref[pad + T:pad + T + pad, :] = jnp.zeros((pad, D), jnp.float32)
    ypad = ypad_ref[...]                             # (T + K - 1, D)
    w = dw_ref[...]                                  # (K, D)
    acc = jnp.zeros((T, D), jnp.float32)
    # TODO(synk): the shifted slices below could use pltpu.roll (XLU) instead of
    # sublane-misaligned slice copies once roll on arbitrary sublane extents is
    # guaranteed on all target chips.
    for k in range(ksize):                           # unrolled taps
        acc = acc + ypad[k:k + T, :] * w[k:k + 1, :]
    z = acc + db_ref[...]
    z = z * bns_ref[...] + bnb_ref[...]              # BatchNorm1d (eval) folded
    z = z * jax.nn.sigmoid(z)                        # swish

    out = (_mm(z, w2_ref[...]) + b2_ref[...]) * tmask   # pointwise_conv2 + mask
    o_ref[0] = (x + out).astype(o_ref.dtype)            # residual fused


def conv_module(x, mask_rows, ln_g, ln_b, w1, b1, dw_w, dw_b, bn_scale, bn_shift,
                w2, b2, *, kernel_size):
    B, T, D = x.shape
    K = kernel_size
    spec_btd = pl.BlockSpec((1, T, D), lambda b: (b, 0, 0))
    spec_row = pl.BlockSpec((1, T, 1), lambda b: (b, 0, 0))

    def res(shape):
        return pl.BlockSpec(shape, lambda b: tuple(0 for _ in shape))

    return pl.pallas_call(
        functools.partial(_conv_module_kernel, ksize=K, eps=_LN_EPS),
        out_shape=jax.ShapeDtypeStruct((B, T, D), ACT_DTYPE),
        grid=(B,),
        in_specs=[spec_btd, spec_row,
                  res((1, D)), res((1, D)),
                  res((D, 2 * D)), res((1, 2 * D)),
                  res((K, D)), res((1, D)),
                  res((1, D)), res((1, D)),
                  res((D, D)), res((1, D))],
        out_specs=spec_btd,
        scratch_shapes=[pltpu.VMEM((T + K - 1, D), jnp.float32)],
        compiler_params=_compiler_params(("parallel",)),
    )(x, mask_rows, ln_g.reshape(1, D), ln_b.reshape(1, D),
      w1, b1.reshape(1, 2 * D), dw_w, dw_b.reshape(1, D),
      bn_scale.reshape(1, D), bn_shift.reshape(1, D), w2, b2.reshape(1, D))


# ------------------------------- JAX glue ----------------------------------

def im2col(x, kh, kw, stride):
    """x: (B, H, W, C) channels-last -> (B, Ho, Wo, kh*kw*C)."""
    # TODO(synk): replace with a Pallas halo-tile kernel to avoid the 9x HBM blow-up.
    B, H, W, C = x.shape
    Ho = (H - kh) // stride + 1
    Wo = (W - kw) // stride + 1
    cols = []
    for i in range(kh):
        for j in range(kw):
            cols.append(x[:, i:i + stride * (Ho - 1) + 1:stride,
                          j:j + stride * (Wo - 1) + 1:stride, :])
    return jnp.concatenate(cols, axis=-1)


def rel_positional_encoding(T, d):
    pos = jnp.arange(T, dtype=jnp.float32)[:, None]
    div = jnp.exp(jnp.arange(0, d, 2, dtype=jnp.float32) * (-math.log(10000.0) / d))
    pe = jnp.zeros((T, d), jnp.float32)
    pe = pe.at[:, 0::2].set(jnp.sin(pos * div))
    pe = pe.at[:, 1::2].set(jnp.cos(pos * div))
    return pe[None]                                  # (1, T, d)


def conformer_layer(x, pproj, mask01, mask_bias, mask_rows, p, *, heads, kernel_size):
    B, T, d = x.shape

    # --- macaron feed-forward module (fused LN+W1+swish+W2+residual) ---
    x = ffn_module(x.reshape(-1, d), p["norm_ff_mac_g"], p["norm_ff_mac_b"],
                   p["ffm_w1"], p["ffm_b1"], p["ffm_w2"], p["ffm_b2"],
                   ff_scale=0.5).reshape(B, T, d)

    # --- rel-pos multi-head self-attention module (fully fused, q-tiled) ---
    x = mhsa_module(x, pproj, mask01, mask_bias,
                    p["norm_mha_g"], p["norm_mha_b"],
                    p["wq"], p["bq"], p["wkv"], p["bkv"],
                    p["pos_bias_u"].reshape(-1), p["pos_bias_v"].reshape(-1),
                    p["wo"], p["bo"], heads=heads)

    # --- convolution module (fused LN+mask+PW1/GLU+depthwise+BN+swish+PW2+mask+residual) ---
    x = conv_module(x, mask_rows, p["norm_conv_g"], p["norm_conv_b"],
                    p["pw1_w"], p["pw1_b"], p["dw_w"], p["dw_b"],
                    p["bn_scale"], p["bn_shift"], p["pw2_w"], p["pw2_b"],
                    kernel_size=kernel_size)

    # --- feed-forward module + per-layer final LayerNorm (fused) ---
    x = ffn_module(x.reshape(-1, d), p["norm_ff_g"], p["norm_ff_b"],
                   p["ff_w1"], p["ff_b1"], p["ff_w2"], p["ff_b2"],
                   ff_scale=0.5, final_ln=True,
                   fin_g=p["norm_final_g"], fin_b=p["norm_final_b"]).reshape(B, T, d)
    return x


def conformer_encoder_forward(params, xs, ilens, *, heads, kernel_size):
    """xs: (B, T, idim), ilens: (B,) -> (out (B, T', d) f32, masks (B, 1, T') bool)."""
    B, T, idim = xs.shape
    d = params["after_norm_g"].shape[0]

    # masks = ~make_pad_mask(ilens).unsqueeze(1)   (True = valid)
    valid = jnp.arange(T)[None, :] < ilens[:, None]
    masks = valid[:, None, :]

    # --- Conv2dSubsampling4: Conv2d(1,d,3,2)+ReLU, Conv2d(d,d,3,2)+ReLU, Linear ---
    x = xs[..., None]                                        # (B, T, idim, 1)
    p1 = im2col(x, 3, 3, 2)                                  # (B, t1, f1, 9)
    _, t1, f1, P1 = p1.shape
    h1 = pallas_linear(p1.reshape(-1, P1),
                       params["conv1_w"].reshape(P1, d),
                       params["conv1_b"], act="relu",
                       out_dtype=ACT_DTYPE).reshape(B, t1, f1, d)
    p2 = im2col(h1, 3, 3, 2)                                 # (B, t2, f2, 9*d)
    _, t2, f2, P2 = p2.shape
    h2 = pallas_linear(p2.reshape(-1, P2),
                       params["conv2_w"].reshape(P2, d),
                       params["conv2_b"], act="relu",
                       out_dtype=ACT_DTYPE).reshape(B, t2, f2, d)
    # torch flattens (b, c, t, f) -> (b, t, c*f).  Instead of transposing the
    # activation, permute the weight rows once: row c*f2+f -> row f*d+c.
    # NOTE: when importing real torch weights re-derive this permutation.
    out_w = params["out_w"].reshape(d, f2, d).transpose(1, 0, 2).reshape(f2 * d, d)
    x = pallas_linear(h2.reshape(-1, f2 * d), out_w,
                      params["out_b"], out_dtype=ACT_DTYPE).reshape(B, t2, d)

    # RelPositionalEncoding (dropout = identity in eval mode)
    x = x * math.sqrt(d)

    # subsample the pad mask exactly as Conv2dSubsampling4 does
    masks = masks[:, :, :-2:2][:, :, :-2:2]                  # (B, 1, t2) bool

    # pad the time axis once for the whole block stack (garbage rows never leak
    # into valid rows: attention keys, conv input/output are masked).
    Tp = _seq_pad(t2)
    mask01 = jnp.pad(masks.astype(jnp.float32),
                     ((0, 0), (0, 0), (0, Tp - t2)))         # (B, 1, Tp) 0/1
    mask_bias = (mask01 - 1.0) * 1e9                         # additive mask
    mask_rows = jnp.transpose(mask01, (0, 2, 1))             # (B, Tp, 1)
    x = jnp.pad(x, ((0, 0), (0, Tp - t2), (0, 0)))           # (B, Tp, d)

    # batched linear_pos projection for all layers in ONE pallas_call
    pos_2d = rel_positional_encoding(Tp, d).reshape(Tp, d)   # (Tp, d)
    wp_all = jnp.concatenate([blk["wp"] for blk in params["blocks"]], axis=1)
    pproj_all = pallas_linear(pos_2d, wp_all, b=None, out_dtype=MATMUL_DTYPE)

    for li, blk in enumerate(params["blocks"]):
        pproj = pproj_all[:, li * d:(li + 1) * d]            # (Tp, d)
        x = conformer_layer(x, pproj, mask01, mask_bias, mask_rows, blk,
                            heads=heads, kernel_size=kernel_size)

    x = x[:, :t2]                                            # drop time padding
    x = pallas_layernorm(x.reshape(-1, d), params["after_norm_g"],
                         params["after_norm_b"]).reshape(B, t2, d)
    return x, masks


# ----------------------------- parameter init ------------------------------

def init_params(key, *, idim, d, heads, units, num_blocks, kernel_size):
    counter = [0]

    def w(shape, scale=0.02):
        counter[0] += 1
        return scale * jax.random.normal(jax.random.fold_in(key, counter[0]),
                                         shape, dtype=jnp.float32)

    def mw(shape, scale=0.02):                       # matmul weights stored bf16 in HBM
        return w(shape, scale).astype(MATMUL_DTYPE)

    zeros = lambda *s: jnp.zeros(s, jnp.float32)
    ones = lambda *s: jnp.ones(s, jnp.float32)

    f1 = (idim - 1) // 2
    f2 = (f1 - 1) // 2
    dk = d // heads
    params = {
        "conv1_w": mw((3, 3, 1, d)), "conv1_b": zeros(d),
        "conv2_w": mw((3, 3, d, d)), "conv2_b": zeros(d),
        "out_w": mw((d * f2, d)), "out_b": zeros(d),
        "after_norm_g": ones(d), "after_norm_b": zeros(d),
        "blocks": [],
    }
    bn_eps = 1e-5
    for _ in range(num_blocks):
        params["blocks"].append({
            "norm_ff_mac_g": ones(d), "norm_ff_mac_b": zeros(d),
            "ffm_w1": mw((d, units)), "ffm_b1": zeros(units),
            "ffm_w2": mw((units, d)), "ffm_b2": zeros(d),
            "norm_mha_g": ones(d), "norm_mha_b": zeros(d),
            # Q separate, K/V pre-concatenated (hoisted out of the layer loop)
            "wq": mw((d, d)), "bq": zeros(d),
            "wkv": mw((d, 2 * d)), "bkv": zeros(2 * d),
            "wo": mw((d, d)), "bo": zeros(d),
            "wp": mw((d, d)),
            "pos_bias_u": w((heads, dk)),
            "pos_bias_v": w((heads, dk)),
            "norm_conv_g": ones(d), "norm_conv_b": zeros(d),
            "pw1_w": mw((d, 2 * d)), "pw1_b": zeros(2 * d),
            "dw_w": w((kernel_size, d)), "dw_b": zeros(d),
            # BatchNorm1d eval with default stats (mean=0, var=1, gamma=1, beta=0)
            "bn_scale": jnp.full((d,), 1.0 / math.sqrt(1.0 + bn_eps), jnp.float32),
            "bn_shift": zeros(d),
            "pw2_w": mw((d, d)), "pw2_b": zeros(d),
            "norm_ff_g": ones(d), "norm_ff_b": zeros(d),
            "ff_w1": mw((d, units)), "ff_b1": zeros(units),
            "ff_w2": mw((units, d)), "ff_b2": zeros(d),
            "norm_final_g": ones(d), "norm_final_b": zeros(d),
        })
    return params


# ---------------------------------- main ------------------------------------

if __name__ == "__main__":
    # small config consistent with the module: input_size=16, output_size=32,
    # attention_heads=4, linear_units=64, num_blocks=2, cnn_module_kernel=15
    # (for real perf runs keep D / d_k multiples of 128 / 8 so stores stay
    #  lane-dense; this test config is functional only)
    B, T, idim = 2, 32, 16
    d, heads, units, num_blocks, kernel_size = 32, 4, 64, 2, 15

    key = jax.random.PRNGKey(0)
    xkey, pkey = jax.random.split(key)
    xs = jax.random.normal(xkey, (B, T, idim), jnp.float32)
    ilens = jnp.array([32, 20], jnp.int32)          # second sequence is padded

    params = init_params(pkey, idim=idim, d=d, heads=heads, units=units,
                         num_blocks=num_blocks, kernel_size=kernel_size)

    fwd = jax.jit(functools.partial(conformer_encoder_forward,
                                    heads=heads, kernel_size=kernel_size))
    out, masks = fwd(params, xs, ilens)
    jax.block_until_ready(out)

    t_sub = ((T - 1) // 2 - 1) // 2                 # 4x time subsampling
    assert out.shape == (B, t_sub, d), out.shape
    assert masks.shape == (B, 1, t_sub), masks.shape
    assert bool(jnp.all(jnp.isfinite(out)))
    print("KERNEL_OK")
</pallas_src>

<mosaic_0001>
module attributes {stable_mosaic.version = 11 : i64} {
  func.func @_linear_kernel(%arg0: i32, %arg1: memref<210x9xf32, #tpu.memory_space<vmem>>, %arg2: memref<9x32xbf16, #tpu.memory_space<vmem>>, %arg3: memref<1x32xf32, #tpu.memory_space<vmem>>, %arg4: memref<210x32xbf16, #tpu.memory_space<vmem>>) attributes {dimension_semantics = [#tpu.dimension_semantics<parallel>], iteration_bounds = array<i64: 1>, scalar_prefetch = 0 : i64, scratch_operands = 0 : i64, tpu.core_type = #tpu.core_type<tc>, window_params = [{transform_indices = @transform_0, window_bounds = array<i64: 210, 9>}, {pipeline_mode = #tpu.pipeline_mode<synchronous>, transform_indices = @transform_1, window_bounds = array<i64: 9, 32>}, {pipeline_mode = #tpu.pipeline_mode<synchronous>, transform_indices = @transform_2, window_bounds = array<i64: 1, 32>}, {transform_indices = @transform_3, window_bounds = array<i64: 210, 32>}]} {
    %c0 = arith.constant 0 : index
    %c0_0 = arith.constant 0 : index
    %0 = vector.load %arg1[%c0, %c0_0] : memref<210x9xf32, #tpu.memory_space<vmem>>, vector<210x9xf32>
    %c0_1 = arith.constant 0 : index
    %c0_2 = arith.constant 0 : index
    %1 = vector.load %arg2[%c0_1, %c0_2] : memref<9x32xbf16, #tpu.memory_space<vmem>>, vector<9x32xbf16>
    %2 = arith.truncf %0 : vector<210x9xf32> to vector<210x9xbf16>
    %cst = arith.constant dense<0.000000e+00> : vector<210x32xf32>
    %3 = tpu.matmul %2, %1, %cst {dimension_numbers = #tpu.dot_dimension_numbers<[1], [0], [0], [1], [0, 0, 1, 1], [], []>} : vector<210x9xbf16>, vector<9x32xbf16>, vector<210x32xf32> -> vector<210x32xf32>
    %c0_3 = arith.constant 0 : index
    %c0_4 = arith.constant 0 : index
    %4 = vector.load %arg3[%c0_3, %c0_4] : memref<1x32xf32, #tpu.memory_space<vmem>>, vector<1x32xf32>
    %5 = vector.broadcast %4 : vector<1x32xf32> to vector<210x32xf32>
    %6 = arith.addf %3, %5 : vector<210x32xf32>
    %cst_5 = arith.constant 0.000000e+00 : f32
    %7 = vector.broadcast %cst_5 : f32 to vector<210x32xf32>
    %8 = arith.maximumf %6, %7 : vector<210x32xf32>
    %9 = arith.truncf %8 : vector<210x32xf32> to vector<210x32xbf16>
    %c0_6 = arith.constant 0 : index
    %c0_7 = arith.constant 0 : index
    %10 = vector.load %arg4[%c0_6, %c0_7] : memref<210x32xbf16, #tpu.memory_space<vmem>>, vector<210x32xbf16>
    tpu.vector_store %arg4[%c0_6, %c0_7], %9 {strides = array<i32>} : memref<210x32xbf16, #tpu.memory_space<vmem>>, vector<210x32xbf16>,
    return
  }
  func.func @transform_0(%arg0: i32) -> (i32, i32) {
    %c0_i32 = arith.constant 0 : i32
    %c0_i32_0 = arith.constant 0 : i32
    return %arg0, %c0_i32 : i32, i32
  }
  func.func @transform_1(%arg0: i32) -> (i32, i32) {
    %c0_i32 = arith.constant 0 : i32
    %c0_i32_0 = arith.constant 0 : i32
    %c0_i32_1 = arith.constant 0 : i32
    return %c0_i32, %c0_i32_0 : i32, i32
  }
  func.func @transform_2(%arg0: i32) -> (i32, i32) {
    %c0_i32 = arith.constant 0 : i32
    %c0_i32_0 = arith.constant 0 : i32
    %c0_i32_1 = arith.constant 0 : i32
    return %c0_i32, %c0_i32_0 : i32, i32
  }
  func.func @transform_3(%arg0: i32) -> (i32, i32) {
    %c0_i32 = arith.constant 0 : i32
    %c0_i32_0 = arith.constant 0 : i32
    return %arg0, %c0_i32 : i32, i32
  }
}

module attributes {stable_mosaic.version = 11 : i64} {
  func.func @_linear_kernel(%arg0: i32, %arg1: memref<42x288xbf16, #tpu.memory_space<vmem>>, %arg2: memref<288x32xbf16, #tpu.memory_space<vmem>>, %arg3: memref<1x32xf32, #tpu.memory_space<vmem>>, %arg4: memref<42x32xbf16, #tpu.memory_space<vmem>>) attributes {dimension_semantics = [#tpu.dimension_semantics<parallel>], iteration_bounds = array<i64: 1>, scalar_prefetch = 0 : i64, scratch_operands = 0 : i64, tpu.core_type = #tpu.core_type<tc>, window_params = [{transform_indices = @transform_0, window_bounds = array<i64: 42, 288>}, {pipeline_mode = #tpu.pipeline_mode<synchronous>, transform_indices = @transform_1, window_bounds = array<i64: 288, 32>}, {pipeline_mode = #tpu.pipeline_mode<synchronous>, transform_indices = @transform_2, window_bounds = array<i64: 1, 32>}, {transform_indices = @transform_3, window_bounds = array<i64: 42, 32>}]} {
    %c0 = arith.constant 0 : index
    %c0_0 = arith.constant 0 : index
    %0 = vector.load %arg1[%c0, %c0_0] : memref<42x288xbf16, #tpu.memory_space<vmem>>, vector<42x288xbf16>
    %c0_1 = arith.constant 0 : index
    %c0_2 = arith.constant 0 : index
    %1 = vector.load %arg2[%c0_1, %c0_2] : memref<288x32xbf16, #tpu.memory_space<vmem>>, vector<288x32xbf16>
    %cst = arith.constant dense<0.000000e+00> : vector<42x32xf32>
    %2 = tpu.matmul %0, %1, %cst {dimension_numbers = #tpu.dot_dimension_numbers<[1], [0], [0], [1], [0, 0, 1, 1], [], []>} : vector<42x288xbf16>, vector<288x32xbf16>, vector<42x32xf32> -> vector<42x32xf32>
    %c0_3 = arith.constant 0 : index
    %c0_4 = arith.constant 0 : index
    %3 = vector.load %arg3[%c0_3, %c0_4] : memref<1x32xf32, #tpu.memory_space<vmem>>, vector<1x32xf32>
    %4 = vector.broadcast %3 : vector<1x32xf32> to vector<42x32xf32>
    %5 = arith.addf %2, %4 : vector<42x32xf32>
    %cst_5 = arith.constant 0.000000e+00 : f32
    %6 = vector.broadcast %cst_5 : f32 to vector<42x32xf32>
    %7 = arith.maximumf %5, %6 : vector<42x32xf32>
    %8 = arith.truncf %7 : vector<42x32xf32> to vector<42x32xbf16>
    %c0_6 = arith.constant 0 : index
    %c0_7 = arith.constant 0 : index
    %9 = vector.load %arg4[%c0_6, %c0_7] : memref<42x32xbf16, #tpu.memory_space<vmem>>, vector<42x32xbf16>
    tpu.vector_store %arg4[%c0_6, %c0_7], %8 {strides = array<i32>} : memref<42x32xbf16, #tpu.memory_space<vmem>>, vector<42x32xbf16>,
    return
  }
  func.func @transform_0(%arg0: i32) -> (i32, i32) {
    %c0_i32 = arith.constant 0 : i32
    %c0_i32_0 = arith.constant 0 : i32
    return %arg0, %c0_i32 : i32, i32
  }
  func.func @transform_1(%arg0: i32) -> (i32, i32) {
    %c0_i32 = arith.constant 0 : i32
    %c0_i32_0 = arith.constant 0 : i32
    %c0_i32_1 = arith.constant 0 : i32
    return %c0_i32, %c0_i32_0 : i32, i32
  }
  func.func @transform_2(%arg0: i32) -> (i32, i32) {
    %c0_i32 = arith.constant 0 : i32
    %c0_i32_0 = arith.constant 0 : i32
    %c0_i32_1 = arith.constant 0 : i32
    return %c0_i32, %c0_i32_0 : i32, i32
  }
  func.func @transform_3(%arg0: i32) -> (i32, i32) {
    %c0_i32 = arith.constant 0 : i32
    %c0_i32_0 = arith.constant 0 : i32
    return %arg0, %c0_i32 : i32, i32
  }
}

module attributes {stable_mosaic.version = 11 : i64} {
  func.func @_linear_kernel(%arg0: i32, %arg1: memref<14x96xbf16, #tpu.memory_space<vmem>>, %arg2: memref<96x32xbf16, #tpu.memory_space<vmem>>, %arg3: memref<1x32xf32, #tpu.memory_space<vmem>>, %arg4: memref<14x32xbf16, #tpu.memory_space<vmem>>) attributes {dimension_semantics = [#tpu.dimension_semantics<parallel>], iteration_bounds = array<i64: 1>, scalar_prefetch = 0 : i64, scratch_operands = 0 : i64, tpu.core_type = #tpu.core_type<tc>, window_params = [{transform_indices = @transform_0, window_bounds = array<i64: 14, 96>}, {pipeline_mode = #tpu.pipeline_mode<synchronous>, transform_indices = @transform_1, window_bounds = array<i64: 96, 32>}, {pipeline_mode = #tpu.pipeline_mode<synchronous>, transform_indices = @transform_2, window_bounds = array<i64: 1, 32>}, {transform_indices = @transform_3, window_bounds = array<i64: 14, 32>}]} {
    %c0 = arith.constant 0 : index
    %c0_0 = arith.constant 0 : index
    %0 = vector.load %arg1[%c0, %c0_0] : memref<14x96xbf16, #tpu.memory_space<vmem>>, vector<14x96xbf16>
    %c0_1 = arith.constant 0 : index
    %c0_2 = arith.constant 0 : index
    %1 = vector.load %arg2[%c0_1, %c0_2] : memref<96x32xbf16, #tpu.memory_space<vmem>>, vector<96x32xbf16>
    %cst = arith.constant dense<0.000000e+00> : vector<14x32xf32>
    %2 = tpu.matmul %0, %1, %cst {dimension_numbers = #tpu.dot_dimension_numbers<[1], [0], [0], [1], [0, 0, 1, 1], [], []>} : vector<14x96xbf16>, vector<96x32xbf16>, vector<14x32xf32> -> vector<14x32xf32>
    %c0_3 = arith.constant 0 : index
    %c0_4 = arith.constant 0 : index
    %3 = vector.load %arg3[%c0_3, %c0_4] : memref<1x32xf32, #tpu.memory_space<vmem>>, vector<1x32xf32>
    %4 = vector.broadcast %3 : vector<1x32xf32> to vector<14x32xf32>
    %5 = arith.addf %2, %4 : vector<14x32xf32>
    %6 = arith.truncf %5 : vector<14x32xf32> to vector<14x32xbf16>
    %c0_5 = arith.constant 0 : index
    %c0_6 = arith.constant 0 : index
    %7 = vector.load %arg4[%c0_5, %c0_6] : memref<14x32xbf16, #tpu.memory_space<vmem>>, vector<14x32xbf16>
    tpu.vector_store %arg4[%c0_5, %c0_6], %6 {strides = array<i32>} : memref<14x32xbf16, #tpu.memory_space<vmem>>, vector<14x32xbf16>,
    return
  }
  func.func @transform_0(%arg0: i32) -> (i32, i32) {
    %c0_i32 = arith.constant 0 : i32
    %c0_i32_0 = arith.constant 0 : i32
    return %arg0, %c0_i32 : i32, i32
  }
  func.func @transform_1(%arg0: i32) -> (i32, i32) {
    %c0_i32 = arith.constant 0 : i32
    %c0_i32_0 = arith.constant 0 : i32
    %c0_i32_1 = arith.constant 0 : i32
    return %c0_i32, %c0_i32_0 : i32, i32
  }
  func.func @transform_2(%arg0: i32) -> (i32, i32) {
    %c0_i32 = arith.constant 0 : i32
    %c0_i32_0 = arith.constant 0 : i32
    %c0_i32_1 = arith.constant 0 : i32
    return %c0_i32, %c0_i32_0 : i32, i32
  }
  func.func @transform_3(%arg0: i32) -> (i32, i32) {
    %c0_i32 = arith.constant 0 : i32
    %c0_i32_0 = arith.constant 0 : i32
    return %arg0, %c0_i32 : i32, i32
  }
}

module attributes {stable_mosaic.version = 11 : i64} {
  func.func @_ffn_module_kernel(%arg0: i32, %arg1: memref<16x32xbf16, #tpu.memory_space<vmem>>, %arg2: memref<1x32xf32, #tpu.memory_space<vmem>>, %arg3: memref<1x32xf32, #tpu.memory_space<vmem>>, %arg4: memref<32x64xbf16, #tpu.memory_space<vmem>>, %arg5: memref<1x64xf32, #tpu.memory_space<vmem>>, %arg6: memref<64x32xbf16, #tpu.memory_space<vmem>>, %arg7: memref<1x32xf32, #tpu.memory_space<vmem>>, %arg8: memref<1x32xf32, #tpu.memory_space<vmem>>, %arg9: memref<1x32xf32, #tpu.memory_space<vmem>>, %arg10: memref<16x32xbf16, #tpu.memory_space<vmem>>) attributes {dimension_semantics = [#tpu.dimension_semantics<parallel>], iteration_bounds = array<i64: 1>, scalar_prefetch = 0 : i64, scratch_operands = 0 : i64, tpu.core_type = #tpu.core_type<tc>, window_params = [{transform_indices = @transform_0, window_bounds = array<i64: 16, 32>}, {pipeline_mode = #tpu.pipeline_mode<synchronous>, transform_indices = @transform_1, window_bounds = array<i64: 1, 32>}, {pipeline_mode = #tpu.pipeline_mode<synchronous>, transform_indices = @transform_2, window_bounds = array<i64: 1, 32>}, {pipeline_mode = #tpu.pipeline_mode<synchronous>, transform_indices = @transform_3, window_bounds = array<i64: 32, 64>}, {pipeline_mode = #tpu.pipeline_mode<synchronous>, transform_indices = @transform_4, window_bounds = array<i64: 1, 64>}, {pipeline_mode = #tpu.pipeline_mode<synchronous>, transform_indices = @transform_5, window_bounds = array<i64: 64, 32>}, {pipeline_mode = #tpu.pipeline_mode<synchronous>, transform_indices = @transform_6, window_bounds = array<i64: 1, 32>}, {pipeline_mode = #tpu.pipeline_mode<synchronous>, transform_indices = @transform_7, window_bounds = array<i64: 1, 32>}, {pipeline_mode = #tpu.pipeline_mode<synchronous>, transform_indices = @transform_8, window_bounds = array<i64: 1, 32>}, {transform_indices = @transform_9, window_bounds = array<i64: 16, 32>}]} {
    %c0 = arith.constant 0 : index
    %c0_0 = arith.constant 0 : index
    %0 = vector.load %arg1[%c0, %c0_0] : memref<16x32xbf16, #tpu.memory_space<vmem>>, vector<16x32xbf16>
    %1 = arith.extf %0 : vector<16x32xbf16> to vector<16x32xf32>
    %c0_1 = arith.constant 0 : index
    %c0_2 = arith.constant 0 : index
    %2 = vector.load %arg2[%c0_1, %c0_2] : memref<1x32xf32, #tpu.memory_space<vmem>>, vector<1x32xf32>
    %c0_3 = arith.constant 0 : index
    %c0_4 = arith.constant 0 : index
    %3 = vector.load %arg3[%c0_3, %c0_4] : memref<1x32xf32, #tpu.memory_space<vmem>>, vector<1x32xf32>
    %cst = arith.constant dense<0.000000e+00> : vector<16xf32>
    %4 = vector.multi_reduction <add>, %1, %cst [1] : vector<16x32xf32> to vector<16xf32>
    %5 = vector.shape_cast %4 : vector<16xf32> to vector<16x1xf32>
    %cst_5 = arith.constant 3.200000e+01 : f32
    %6 = vector.broadcast %cst_5 : f32 to vector<16x1xf32>
    %7 = arith.divf %5, %6 : vector<16x1xf32>
    %8 = vector.broadcast %7 : vector<16x1xf32> to vector<16x32xf32>
    %9 = arith.subf %1, %8 : vector<16x32xf32>
    %10 = arith.mulf %9, %9 : vector<16x32xf32>
    %cst_6 = arith.constant dense<0.000000e+00> : vector<16xf32>
    %11 = vector.multi_reduction <add>, %10, %cst_6 [1] : vector<16x32xf32> to vector<16xf32>
    %12 = vector.shape_cast %11 : vector<16xf32> to vector<16x1xf32>
    %cst_7 = arith.constant 3.200000e+01 : f32
    %13 = vector.broadcast %cst_7 : f32 to vector<16x1xf32>
    %14 = arith.divf %12, %13 : vector<16x1xf32>
    %15 = vector.broadcast %7 : vector<16x1xf32> to vector<16x32xf32>
    %16 = arith.subf %1, %15 : vector<16x32xf32>
    %cst_8 = arith.constant 9.99999974E-6 : f32
    %17 = vector.broadcast %cst_8 : f32 to vector<16x1xf32>
    %18 = arith.addf %14, %17 : vector<16x1xf32>
    %19 = math.rsqrt %18 : vector<16x1xf32>
    %20 = vector.broadcast %19 : vector<16x1xf32> to vector<16x32xf32>
    %21 = arith.mulf %16, %20 : vector<16x32xf32>
    %22 = vector.broadcast %2 : vector<1x32xf32> to vector<16x32xf32>
    %23 = arith.mulf %21, %22 : vector<16x32xf32>
    %24 = vector.broadcast %3 : vector<1x32xf32> to vector<16x32xf32>
    %25 = arith.addf %23, %24 : vector<16x32xf32>
    %c0_9 = arith.constant 0 : index
    %c0_10 = arith.constant 0 : index
    %26 = vector.load %arg4[%c0_9, %c0_10] : memref<32x64xbf16, #tpu.memory_space<vmem>>, vector<32x64xbf16>
    %27 = arith.truncf %25 : vector<16x32xf32> to vector<16x32xbf16>
    %cst_11 = arith.constant dense<0.000000e+00> : vector<16x64xf32>
    %28 = tpu.matmul %27, %26, %cst_11 {dimension_numbers = #tpu.dot_dimension_numbers<[1], [0], [0], [1], [0, 0, 1, 1], [], []>} : vector<16x32xbf16>, vector<32x64xbf16>, vector<16x64xf32> -> vector<16x64xf32>
    %c0_12 = arith.constant 0 : index
    %c0_13 = arith.constant 0 : index
    %29 = vector.load %arg5[%c0_12, %c0_13] : memref<1x64xf32, #tpu.memory_space<vmem>>, vector<1x64xf32>
    %30 = vector.broadcast %29 : vector<1x64xf32> to vector<16x64xf32>
    %31 = arith.addf %28, %30 : vector<16x64xf32>
    %32 = arith.negf %31 : vector<16x64xf32>
    %33 = math.exp %32 : vector<16x64xf32>
    %cst_14 = arith.constant 1.000000e+00 : f32
    %34 = vector.broadcast %cst_14 : f32 to vector<16x64xf32>
    %35 = arith.addf %34, %33 : vector<16x64xf32>
    %36 = arith.divf %34, %35 : vector<16x64xf32>
    %37 = arith.mulf %31, %36 : vector<16x64xf32>
    %c0_15 = arith.constant 0 : index
    %c0_16 = arith.constant 0 : index
    %38 = vector.load %arg6[%c0_15, %c0_16] : memref<64x32xbf16, #tpu.memory_space<vmem>>, vector<64x32xbf16>
    %39 = arith.truncf %37 : vector<16x64xf32> to vector<16x64xbf16>
    %cst_17 = arith.constant dense<0.000000e+00> : vector<16x32xf32>
    %40 = tpu.matmul %39, %38, %cst_17 {dimension_numbers = #tpu.dot_dimension_numbers<[1], [0], [0], [1], [0, 0, 1, 1], [], []>} : vector<16x64xbf16>, vector<64x32xbf16>, vector<16x32xf32> -> vector<16x32xf32>
    %c0_18 = arith.constant 0 : index
    %c0_19 = arith.constant 0 : index
    %41 = vector.load %arg7[%c0_18, %c0_19] : memref<1x32xf32, #tpu.memory_space<vmem>>, vector<1x32xf32>
    %42 = vector.broadcast %41 : vector<1x32xf32> to vector<16x32xf32>
    %43 = arith.addf %40, %42 : vector<16x32xf32>
    %cst_20 = arith.constant 5.000000e-01 : f32
    %44 = vector.broadcast %cst_20 : f32 to vector<16x32xf32>
    %45 = arith.mulf %44, %43 : vector<16x32xf32>
    %46 = arith.addf %1, %45 : vector<16x32xf32>
    %47 = arith.truncf %46 : vector<16x32xf32> to vector<16x32xbf16>
    %c0_21 = arith.constant 0 : index
    %c0_22 = arith.constant 0 : index
    %48 = vector.load %arg10[%c0_21, %c0_22] : memref<16x32xbf16, #tpu.memory_space<vmem>>, vector<16x32xbf16>
    tpu.vector_store %arg10[%c0_21, %c0_22], %47 {strides = array<i32>} : memref<16x32xbf16, #tpu.memory_space<vmem>>, vector<16x32xbf16>,
    return
  }
  func.func @transform_0(%arg0: i32) -> (i32, i32) {
    %c0_i32 = arith.constant 0 : i32
    %c0_i32_0 = arith.constant 0 : i32
    return %arg0, %c0_i32 : i32, i32
  }
  func.func @transform_1(%arg0: i32) -> (i32, i32) {
    %c0_i32 = arith.constant 0 : i32
    %c0_i32_0 = arith.constant 0 : i32
    %c0_i32_1 = arith.constant 0 : i32
    return %c0_i32, %c0_i32_0 : i32, i32
  }
  func.func @transform_2(%arg0: i32) -> (i32, i32) {
    %c0_i32 = arith.constant 0 : i32
    %c0_i32_0 = arith.constant 0 : i32
    %c0_i32_1 = arith.constant 0 : i32
    return %c0_i32, %c0_i32_0 : i32, i32
  }
  func.func @transform_3(%arg0: i32) -> (i32, i32) {
    %c0_i32 = arith.constant 0 : i32
    %c0_i32_0 = arith.constant 0 : i32
    %c0_i32_1 = arith.constant 0 : i32
    return %c0_i32, %c0_i32_0 : i32, i32
  }
  func.func @transform_4(%arg0: i32) -> (i32, i32) {
    %c0_i32 = arith.constant 0 : i32
    %c0_i32_0 = arith.constant 0 : i32
    %c0_i32_1 = arith.constant 0 : i32
    return %c0_i32, %c0_i32_0 : i32, i32
  }
  func.func @transform_5(%arg0: i32) -> (i32, i32) {
    %c0_i32 = arith.constant 0 : i32
    %c0_i32_0 = arith.constant 0 : i32
    %c0_i32_1 = arith.constant 0 : i32
    return %c0_i32, %c0_i32_0 : i32, i32
  }
  func.func @transform_6(%arg0: i32) -> (i32, i32) {
    %c0_i32 = arith.constant 0 : i32
    %c0_i32_0 = arith.constant 0 : i32
    %c0_i32_1 = arith.constant 0 : i32
    return %c0_i32, %c0_i32_0 : i32, i32
  }
  func.func @transform_7(%arg0: i32) -> (i32, i32) {
    %c0_i32 = arith.constant 0 : i32
    %c0_i32_0 = arith.constant 0 : i32
    %c0_i32_1 = arith.constant 0 : i32
    return %c0_i32, %c0_i32_0 : i32, i32
  }
  func.func @transform_8(%arg0: i32) -> (i32, i32) {
    %c0_i32 = arith.constant 0 : i32
    %c0_i32_0 = arith.constant 0 : i32
    %c0_i32_1 = arith.constant 0 : i32
    return %c0_i32, %c0_i32_0 : i32, i32
  }
  func.func @transform_9(%arg0: i32) -> (i32, i32) {
    %c0_i32 = arith.constant 0 : i32
    %c0_i32_0 = arith.constant 0 : i32
    return %arg0, %c0_i32 : i32, i32
  }
}

module attributes {stable_mosaic.version = 11 : i64} {
  func.func @_linear_kernel(%arg0: i32, %arg1: memref<8x32xf32, #tpu.memory_space<vmem>>, %arg2: memref<32x64xbf16, #tpu.memory_space<vmem>>, %arg3: memref<8x64xbf16, #tpu.memory_space<vmem>>) attributes {dimension_semantics = [#tpu.dimension_semantics<parallel>], iteration_bounds = array<i64: 1>, scalar_prefetch = 0 : i64, scratch_operands = 0 : i64, tpu.core_type = #tpu.core_type<tc>, window_params = [{transform_indices = @transform_0, window_bounds = array<i64: 8, 32>}, {pipeline_mode = #tpu.pipeline_mode<synchronous>, transform_indices = @transform_1, window_bounds = array<i64: 32, 64>}, {transform_indices = @transform_2, window_bounds = array<i64: 8, 64>}]} {
    %c0 = arith.constant 0 : index
    %c0_0 = arith.constant 0 : index
    %0 = vector.load %arg1[%c0, %c0_0] : memref<8x32xf32, #tpu.memory_space<vmem>>, vector<8x32xf32>
    %c0_1 = arith.constant 0 : index
    %c0_2 = arith.constant 0 : index
    %1 = vector.load %arg2[%c0_1, %c0_2] : memref<32x64xbf16, #tpu.memory_space<vmem>>, vector<32x64xbf16>
    %2 = arith.truncf %0 : vector<8x32xf32> to vector<8x32xbf16>
    %cst = arith.constant dense<0.000000e+00> : vector<8x64xf32>
    %3 = tpu.matmul %2, %1, %cst {dimension_numbers = #tpu.dot_dimension_numbers<[1], [0], [0], [1], [0, 0, 1, 1], [], []>} : vector<8x32xbf16>, vector<32x64xbf16>, vector<8x64xf32> -> vector<8x64xf32>
    %4 = arith.truncf %3 : vector<8x64xf32> to vector<8x64xbf16>
    %c0_3 = arith.constant 0 : index
    %c0_4 = arith.constant 0 : index
    %5 = vector.load %arg3[%c0_3, %c0_4] : memref<8x64xbf16, #tpu.memory_space<vmem>>, vector<8x64xbf16>
    tpu.vector_store %arg3[%c0_3, %c0_4], %4 {strides = array<i32>} : memref<8x64xbf16, #tpu.memory_space<vmem>>, vector<8x64xbf16>,
    return
  }
  func.func @transform_0(%arg0: i32) -> (i32, i32) {
    %c0_i32 = arith.constant 0 : i32
    %c0_i32_0 = arith.constant 0 : i32
    return %arg0, %c0_i32 : i32, i32
  }
  func.func @transform_1(%arg0: i32) -> (i32, i32) {
    %c0_i32 = arith.constant 0 : i32
    %c0_i32_0 = arith.constant 0 : i32
    %c0_i32_1 = arith.constant 0 : i32
    return %c0_i32, %c0_i32_0 : i32, i32
  }
  func.func @transform_2(%arg0: i32) -> (i32, i32) {
    %c0_i32 = arith.constant 0 : i32
    %c0_i32_0 = arith.constant 0 : i32
    return %arg0, %c0_i32 : i32, i32
  }
}

module attributes {stable_mosaic.version = 11 : i64} {
  func.func @_mhsa_module_kernel(%arg0: i32, %arg1: i32, %arg2: memref<1x8x32xbf16, #tpu.memory_space<vmem>>, %arg3: memref<1x8x32xbf16, #tpu.memory_space<vmem>>, %arg4: memref<1x1x8xf32, #tpu.memory_space<vmem>>, %arg5: memref<1x1x8xf32, #tpu.memory_space<vmem>>, %arg6: memref<8x32xbf16, #tpu.memory_space<vmem>>, %arg7: memref<1x32xf32, #tpu.memory_space<vmem>>, %arg8: memref<1x32xf32, #tpu.memory_space<vmem>>, %arg9: memref<32x32xbf16, #tpu.memory_space<vmem>>, %arg10: memref<1x32xf32, #tpu.memory_space<vmem>>, %arg11: memref<32x64xbf16, #tpu.memory_space<vmem>>, %arg12: memref<1x64xf32, #tpu.memory_space<vmem>>, %arg13: memref<1x32xf32, #tpu.memory_space<vmem>>, %arg14: memref<1x32xf32, #tpu.memory_space<vmem>>, %arg15: memref<32x32xbf16, #tpu.memory_space<vmem>>, %arg16: memref<1x32xf32, #tpu.memory_space<vmem>>, %arg17: memref<1x8x32xbf16, #tpu.memory_space<vmem>>, %arg18: memref<8x32xbf16, #tpu.memory_space<vmem>>, %arg19: memref<8x32xbf16, #tpu.memory_space<vmem>>, %arg20: memref<8x32xf32, #tpu.memory_space<vmem>>) attributes {dimension_semantics = [#tpu.dimension_semantics<parallel>, #tpu.dimension_semantics<arbitrary>], iteration_bounds = array<i64: 2, 1>, scalar_prefetch = 0 : i64, scratch_operands = 3 : i64, tpu.core_type = #tpu.core_type<tc>, window_params = [{transform_indices = @transform_0, window_bounds = array<i64: 1, 8, 32>}, {transform_indices = @transform_1, window_bounds = array<i64: 1, 8, 32>}, {transform_indices = @transform_2, window_bounds = array<i64: 1, 1, 8>}, {transform_indices = @transform_3, window_bounds = array<i64: 1, 1, 8>}, {pipeline_mode = #tpu.pipeline_mode<synchronous>, transform_indices = @transform_4, window_bounds = array<i64: 8, 32>}, {pipeline_mode = #tpu.pipeline_mode<synchronous>, transform_indices = @transform_5, window_bounds = array<i64: 1, 32>}, {pipeline_mode = #tpu.pipeline_mode<synchronous>, transform_indices = @transform_6, window_bounds = array<i64: 1, 32>}, {pipeline_mode = #tpu.pipeline_mode<synchronous>, transform_indices = @transform_7, window_bounds = array<i64: 32, 32>}, {pipeline_mode = #tpu.pipeline_mode<synchronous>, transform_indices = @transform_8, window_bounds = array<i64: 1, 32>}, {pipeline_mode = #tpu.pipeline_mode<synchronous>, transform_indices = @transform_9, window_bounds = array<i64: 32, 64>}, {pipeline_mode = #tpu.pipeline_mode<synchronous>, transform_indices = @transform_10, window_bounds = array<i64: 1, 64>}, {pipeline_mode = #tpu.pipeline_mode<synchronous>, transform_indices = @transform_11, window_bounds = array<i64: 1, 32>}, {pipeline_mode = #tpu.pipeline_mode<synchronous>, transform_indices = @transform_12, window_bounds = array<i64: 1, 32>}, {pipeline_mode = #tpu.pipeline_mode<synchronous>, transform_indices = @transform_13, window_bounds = array<i64: 32, 32>}, {pipeline_mode = #tpu.pipeline_mode<synchronous>, transform_indices = @transform_14, window_bounds = array<i64: 1, 32>}, {transform_indices = @transform_15, window_bounds = array<i64: 1, 8, 32>}]} {
    %c0_i32 = arith.constant 0 : i32
    %0 = arith.cmpi eq, %arg1, %c0_i32 : i32
    %1 = arith.extui %0 : i1 to i32
    %c0_i32_0 = arith.constant 0 : i32
    %2 = arith.cmpi ne, %1, %c0_i32_0 : i32
    scf.if %2 {
      %c0_69 = arith.constant 0 : index
      %c0_70 = arith.constant 0 : index
      %c0_71 = arith.constant 0 : index
      %167 = vector.load %arg2[%c0_69, %c0_70, %c0_71] : memref<1x8x32xbf16, #tpu.memory_space<vmem>>, vector<1x8x32xbf16>
      %168 = vector.shape_cast %167 : vector<1x8x32xbf16> to vector<8x32xbf16>
      %169 = arith.extf %168 : vector<8x32xbf16> to vector<8x32xf32>
      %c0_72 = arith.constant 0 : index
      %c0_73 = arith.constant 0 : index
      %170 = vector.load %arg7[%c0_72, %c0_73] : memref<1x32xf32, #tpu.memory_space<vmem>>, vector<1x32xf32>
      %c0_74 = arith.constant 0 : index
      %c0_75 = arith.constant 0 : index
      %171 = vector.load %arg8[%c0_74, %c0_75] : memref<1x32xf32, #tpu.memory_space<vmem>>, vector<1x32xf32>
      %cst_76 = arith.constant dense<0.000000e+00> : vector<8xf32>
      %172 = vector.multi_reduction <add>, %169, %cst_76 [1] : vector<8x32xf32> to vector<8xf32>
      %173 = vector.shape_cast %172 : vector<8xf32> to vector<8x1xf32>
      %cst_77 = arith.constant 3.200000e+01 : f32
      %174 = vector.broadcast %cst_77 : f32 to vector<8x1xf32>
      %175 = arith.divf %173, %174 : vector<8x1xf32>
      %176 = vector.broadcast %175 : vector<8x1xf32> to vector<8x32xf32>
      %177 = arith.subf %169, %176 : vector<8x32xf32>
      %178 = arith.mulf %177, %177 : vector<8x32xf32>
      %cst_78 = arith.constant dense<0.000000e+00> : vector<8xf32>
      %179 = vector.multi_reduction <add>, %178, %cst_78 [1] : vector<8x32xf32> to vector<8xf32>
      %180 = vector.shape_cast %179 : vector<8xf32> to vector<8x1xf32>
      %cst_79 = arith.constant 3.200000e+01 : f32
      %181 = vector.broadcast %cst_79 : f32 to vector<8x1xf32>
      %182 = arith.divf %180, %181 : vector<8x1xf32>
      %183 = vector.broadcast %175 : vector<8x1xf32> to vector<8x32xf32>
      %184 = arith.subf %169, %183 : vector<8x32xf32>
      %cst_80 = arith.constant 9.99999974E-6 : f32
      %185 = vector.broadcast %cst_80 : f32 to vector<8x1xf32>
      %186 = arith.addf %182, %185 : vector<8x1xf32>
      %187 = math.rsqrt %186 : vector<8x1xf32>
      %188 = vector.broadcast %187 : vector<8x1xf32> to vector<8x32xf32>
      %189 = arith.mulf %184, %188 : vector<8x32xf32>
      %190 = vector.broadcast %170 : vector<1x32xf32> to vector<8x32xf32>
      %191 = arith.mulf %189, %190 : vector<8x32xf32>
      %192 = vector.broadcast %171 : vector<1x32xf32> to vector<8x32xf32>
      %193 = arith.addf %191, %192 : vector<8x32xf32>
      %c0_81 = arith.constant 0 : index
      %c0_82 = arith.constant 0 : index
      %194 = vector.load %arg11[%c0_81, %c0_82] : memref<32x64xbf16, #tpu.memory_space<vmem>>, vector<32x64xbf16>
      %195 = arith.truncf %193 : vector<8x32xf32> to vector<8x32xbf16>
      %cst_83 = arith.constant dense<0.000000e+00> : vector<8x64xf32>
      %196 = tpu.matmul %195, %194, %cst_83 {dimension_numbers = #tpu.dot_dimension_numbers<[1], [0], [0], [1], [0, 0, 1, 1], [], []>} : vector<8x32xbf16>, vector<32x64xbf16>, vector<8x64xf32> -> vector<8x64xf32>
      %c0_84 = arith.constant 0 : index
      %c0_85 = arith.constant 0 : index
      %197 = vector.load %arg12[%c0_84, %c0_85] : memref<1x64xf32, #tpu.memory_space<vmem>>, vector<1x64xf32>
      %198 = vector.broadcast %197 : vector<1x64xf32> to vector<8x64xf32>
      %199 = arith.addf %196, %198 : vector<8x64xf32>
      %200 = vector.extract_strided_slice %199 {offsets = [0, 0], sizes = [8, 32], strides = [1, 1]} : vector<8x64xf32> to vector<8x32xf32>
      %201 = arith.truncf %200 : vector<8x32xf32> to vector<8x32xbf16>
      %c0_86 = arith.constant 0 : index
      %c0_87 = arith.constant 0 : index
      %202 = vector.load %arg18[%c0_86, %c0_87] : memref<8x32xbf16, #tpu.memory_space<vmem>>, vector<8x32xbf16>
      tpu.vector_store %arg18[%c0_86, %c0_87], %201 {strides = array<i32>} : memref<8x32xbf16, #tpu.memory_space<vmem>>, vector<8x32xbf16>,
      %203 = vector.extract_strided_slice %199 {offsets = [0, 32], sizes = [8, 32], strides = [1, 1]} : vector<8x64xf32> to vector<8x32xf32>
      %204 = arith.truncf %203 : vector<8x32xf32> to vector<8x32xbf16>
      %c0_88 = arith.constant 0 : index
      %c0_89 = arith.constant 0 : index
      %205 = vector.load %arg19[%c0_88, %c0_89] : memref<8x32xbf16, #tpu.memory_space<vmem>>, vector<8x32xbf16>
      tpu.vector_store %arg19[%c0_88, %c0_89], %204 {strides = array<i32>} : memref<8x32xbf16, #tpu.memory_space<vmem>>, vector<8x32xbf16>,
    } else {
    }
    %c0 = arith.constant 0 : index
    %c0_1 = arith.constant 0 : index
    %c0_2 = arith.constant 0 : index
    %3 = vector.load %arg3[%c0, %c0_1, %c0_2] : memref<1x8x32xbf16, #tpu.memory_space<vmem>>, vector<1x8x32xbf16>
    %4 = vector.shape_cast %3 : vector<1x8x32xbf16> to vector<8x32xbf16>
    %5 = arith.extf %4 : vector<8x32xbf16> to vector<8x32xf32>
    %c0_3 = arith.constant 0 : index
    %c0_4 = arith.constant 0 : index
    %6 = vector.load %arg7[%c0_3, %c0_4] : memref<1x32xf32, #tpu.memory_space<vmem>>, vector<1x32xf32>
    %c0_5 = arith.constant 0 : index
    %c0_6 = arith.constant 0 : index
    %7 = vector.load %arg8[%c0_5, %c0_6] : memref<1x32xf32, #tpu.memory_space<vmem>>, vector<1x32xf32>
    %cst = arith.constant dense<0.000000e+00> : vector<8xf32>
    %8 = vector.multi_reduction <add>, %5, %cst [1] : vector<8x32xf32> to vector<8xf32>
    %9 = vector.shape_cast %8 : vector<8xf32> to vector<8x1xf32>
    %cst_7 = arith.constant 3.200000e+01 : f32
    %10 = vector.broadcast %cst_7 : f32 to vector<8x1xf32>
    %11 = arith.divf %9, %10 : vector<8x1xf32>
    %12 = vector.broadcast %11 : vector<8x1xf32> to vector<8x32xf32>
    %13 = arith.subf %5, %12 : vector<8x32xf32>
    %14 = arith.mulf %13, %13 : vector<8x32xf32>
    %cst_8 = arith.constant dense<0.000000e+00> : vector<8xf32>
    %15 = vector.multi_reduction <add>, %14, %cst_8 [1] : vector<8x32xf32> to vector<8xf32>
    %16 = vector.shape_cast %15 : vector<8xf32> to vector<8x1xf32>
    %cst_9 = arith.constant 3.200000e+01 : f32
    %17 = vector.broadcast %cst_9 : f32 to vector<8x1xf32>
    %18 = arith.divf %16, %17 : vector<8x1xf32>
    %19 = vector.broadcast %11 : vector<8x1xf32> to vector<8x32xf32>
    %20 = arith.subf %5, %19 : vector<8x32xf32>
    %cst_10 = arith.constant 9.99999974E-6 : f32
    %21 = vector.broadcast %cst_10 : f32 to vector<8x1xf32>
    %22 = arith.addf %18, %21 : vector<8x1xf32>
    %23 = math.rsqrt %22 : vector<8x1xf32>
    %24 = vector.broadcast %23 : vector<8x1xf32> to vector<8x32xf32>
    %25 = arith.mulf %20, %24 : vector<8x32xf32>
    %26 = vector.broadcast %6 : vector<1x32xf32> to vector<8x32xf32>
    %27 = arith.mulf %25, %26 : vector<8x32xf32>
    %28 = vector.broadcast %7 : vector<1x32xf32> to vector<8x32xf32>
    %29 = arith.addf %27, %28 : vector<8x32xf32>
    %c0_11 = arith.constant 0 : index
    %c0_12 = arith.constant 0 : index
    %30 = vector.load %arg9[%c0_11, %c0_12] : memref<32x32xbf16, #tpu.memory_space<vmem>>, vector<32x32xbf16>
    %31 = arith.truncf %29 : vector<8x32xf32> to vector<8x32xbf16>
    %cst_13 = arith.constant dense<0.000000e+00> : vector<8x32xf32>
    %32 = tpu.matmul %31, %30, %cst_13 {dimension_numbers = #tpu.dot_dimension_numbers<[1], [0], [0], [1], [0, 0, 1, 1], [], []>} : vector<8x32xbf16>, vector<32x32xbf16>, vector<8x32xf32> -> vector<8x32xf32>
    %c0_14 = arith.constant 0 : index
    %c0_15 = arith.constant 0 : index
    %33 = vector.load %arg10[%c0_14, %c0_15] : memref<1x32xf32, #tpu.memory_space<vmem>>, vector<1x32xf32>
    %34 = vector.broadcast %33 : vector<1x32xf32> to vector<8x32xf32>
    %35 = arith.addf %32, %34 : vector<8x32xf32>
    %c0_16 = arith.constant 0 : index
    %c0_17 = arith.constant 0 : index
    %36 = vector.load %arg13[%c0_16, %c0_17] : memref<1x32xf32, #tpu.memory_space<vmem>>, vector<1x32xf32>
    %37 = vector.broadcast %36 : vector<1x32xf32> to vector<8x32xf32>
    %38 = arith.addf %35, %37 : vector<8x32xf32>
    %cst_18 = arith.constant 0.353553385 : f32
    %39 = vector.broadcast %cst_18 : f32 to vector<8x32xf32>
    %40 = arith.mulf %38, %39 : vector<8x32xf32>
    %41 = arith.truncf %40 : vector<8x32xf32> to vector<8x32xbf16>
    %c0_19 = arith.constant 0 : index
    %c0_20 = arith.constant 0 : index
    %42 = vector.load %arg14[%c0_19, %c0_20] : memref<1x32xf32, #tpu.memory_space<vmem>>, vector<1x32xf32>
    %43 = vector.broadcast %42 : vector<1x32xf32> to vector<8x32xf32>
    %44 = arith.addf %35, %43 : vector<8x32xf32>
    %cst_21 = arith.constant 0.353553385 : f32
    %45 = vector.broadcast %cst_21 : f32 to vector<8x32xf32>
    %46 = arith.mulf %44, %45 : vector<8x32xf32>
    %47 = arith.truncf %46 : vector<8x32xf32> to vector<8x32xbf16>
    %c0_22 = arith.constant 0 : index
    %c0_23 = arith.constant 0 : index
    %48 = vector.load %arg18[%c0_22, %c0_23] : memref<8x32xbf16, #tpu.memory_space<vmem>>, vector<8x32xbf16>
    %c0_24 = arith.constant 0 : index
    %c0_25 = arith.constant 0 : index
    %49 = vector.load %arg19[%c0_24, %c0_25] : memref<8x32xbf16, #tpu.memory_space<vmem>>, vector<8x32xbf16>
    %c0_26 = arith.constant 0 : index
    %c0_27 = arith.constant 0 : index
    %50 = vector.load %arg6[%c0_26, %c0_27] : memref<8x32xbf16, #tpu.memory_space<vmem>>, vector<8x32xbf16>
    %c0_28 = arith.constant 0 : index
    %c0_29 = arith.constant 0 : index
    %c0_30 = arith.constant 0 : index
    %51 = vector.load %arg4[%c0_28, %c0_29, %c0_30] : memref<1x1x8xf32, #tpu.memory_space<vmem>>, vector<1x1x8xf32>
    %52 = vector.shape_cast %51 : vector<1x1x8xf32> to vector<1x8xf32>
    %c0_31 = arith.constant 0 : index
    %c0_32 = arith.constant 0 : index
    %c0_33 = arith.constant 0 : index
    %53 = vector.load %arg5[%c0_31, %c0_32, %c0_33] : memref<1x1x8xf32, #tpu.memory_space<vmem>>, vector<1x1x8xf32>
    %54 = vector.shape_cast %53 : vector<1x1x8xf32> to vector<1x8xf32>
    %55 = vector.extract_strided_slice %41 {offsets = [0, 0], sizes = [8, 8], strides = [1, 1]} : vector<8x32xbf16> to vector<8x8xbf16>
    %56 = vector.extract_strided_slice %48 {offsets = [0, 0], sizes = [8, 8], strides = [1, 1]} : vector<8x32xbf16> to vector<8x8xbf16>
    %cst_34 = arith.constant dense<0.000000e+00> : vector<8x8xf32>
    %57 = tpu.matmul %55, %56, %cst_34 {dimension_numbers = #tpu.dot_dimension_numbers<[1], [1], [0], [0], [0, 0, 1, 0], [], []>} : vector<8x8xbf16>, vector<8x8xbf16>, vector<8x8xf32> -> vector<8x8xf32>
    %58 = vector.extract_strided_slice %47 {offsets = [0, 0], sizes = [8, 8], strides = [1, 1]} : vector<8x32xbf16> to vector<8x8xbf16>
    %59 = vector.extract_strided_slice %50 {offsets = [0, 0], sizes = [8, 8], strides = [1, 1]} : vector<8x32xbf16> to vector<8x8xbf16>
    %cst_35 = arith.constant dense<0.000000e+00> : vector<8x8xf32>
    %60 = tpu.matmul %58, %59, %cst_35 {dimension_numbers = #tpu.dot_dimension_numbers<[1], [1], [0], [0], [0, 0, 1, 0], [], []>} : vector<8x8xbf16>, vector<8x8xbf16>, vector<8x8xf32> -> vector<8x8xf32>
    %61 = arith.addf %57, %60 : vector<8x8xf32>
    %62 = vector.broadcast %54 : vector<1x8xf32> to vector<8x8xf32>
    %63 = arith.addf %61, %62 : vector<8x8xf32>
    %cst_36 = arith.constant dense<0xFF800000> : vector<8xf32>
    %64 = vector.multi_reduction <maximumf>, %63, %cst_36 [1] : vector<8x8xf32> to vector<8xf32>
    %65 = vector.shape_cast %64 : vector<8xf32> to vector<8x1xf32>
    %66 = vector.broadcast %65 : vector<8x1xf32> to vector<8x8xf32>
    %67 = arith.subf %63, %66 : vector<8x8xf32>
    %68 = math.exp %67 : vector<8x8xf32>
    %cst_37 = arith.constant dense<0.000000e+00> : vector<8xf32>
    %69 = vector.multi_reduction <add>, %68, %cst_37 [1] : vector<8x8xf32> to vector<8xf32>
    %70 = vector.shape_cast %69 : vector<8xf32> to vector<8x1xf32>
    %71 = tpu.reciprocal %70 {approx = true} : vector<8x1xf32> -> vector<8x1xf32>
    %72 = vector.broadcast %71 : vector<8x1xf32> to vector<8x8xf32>
    %73 = arith.mulf %68, %72 : vector<8x8xf32>
    %74 = vector.broadcast %52 : vector<1x8xf32> to vector<8x8xf32>
    %75 = arith.mulf %73, %74 : vector<8x8xf32>
    %76 = vector.extract_strided_slice %49 {offsets = [0, 0], sizes = [8, 8], strides = [1, 1]} : vector<8x32xbf16> to vector<8x8xbf16>
    %77 = arith.truncf %75 : vector<8x8xf32> to vector<8x8xbf16>
    %cst_38 = arith.constant dense<0.000000e+00> : vector<8x8xf32>
    %78 = tpu.matmul %77, %76, %cst_38 {dimension_numbers = #tpu.dot_dimension_numbers<[1], [0], [0], [1], [0, 0, 1, 1], [], []>} : vector<8x8xbf16>, vector<8x8xbf16>, vector<8x8xf32> -> vector<8x8xf32>
    %c0_39 = arith.constant 0 : index
    %c0_40 = arith.constant 0 : index
    %79 = vector.load %arg20[%c0_39, %c0_40] : memref<8x32xf32, #tpu.memory_space<vmem>>, vector<8x8xf32>
    tpu.vector_store %arg20[%c0_39, %c0_40], %78 {strides = array<i32>} : memref<8x32xf32, #tpu.memory_space<vmem>>, vector<8x8xf32>,
    %80 = vector.extract_strided_slice %41 {offsets = [0, 8], sizes = [8, 8], strides = [1, 1]} : vector<8x32xbf16> to vector<8x8xbf16>
    %81 = vector.extract_strided_slice %48 {offsets = [0, 8], sizes = [8, 8], strides = [1, 1]} : vector<8x32xbf16> to vector<8x8xbf16>
    %cst_41 = arith.constant dense<0.000000e+00> : vector<8x8xf32>
    %82 = tpu.matmul %80, %81, %cst_41 {dimension_numbers = #tpu.dot_dimension_numbers<[1], [1], [0], [0], [0, 0, 1, 0], [], []>} : vector<8x8xbf16>, vector<8x8xbf16>, vector<8x8xf32> -> vector<8x8xf32>
    %83 = vector.extract_strided_slice %47 {offsets = [0, 8], sizes = [8, 8], strides = [1, 1]} : vector<8x32xbf16> to vector<8x8xbf16>
    %84 = vector.extract_strided_slice %50 {offsets = [0, 8], sizes = [8, 8], strides = [1, 1]} : vector<8x32xbf16> to vector<8x8xbf16>
    %cst_42 = arith.constant dense<0.000000e+00> : vector<8x8xf32>
    %85 = tpu.matmul %83, %84, %cst_42 {dimension_numbers = #tpu.dot_dimension_numbers<[1], [1], [0], [0], [0, 0, 1, 0], [], []>} : vector<8x8xbf16>, vector<8x8xbf16>, vector<8x8xf32> -> vector<8x8xf32>
    %86 = arith.addf %82, %85 : vector<8x8xf32>
    %87 = vector.broadcast %54 : vector<1x8xf32> to vector<8x8xf32>
    %88 = arith.addf %86, %87 : vector<8x8xf32>
    %cst_43 = arith.constant dense<0xFF800000> : vector<8xf32>
    %89 = vector.multi_reduction <maximumf>, %88, %cst_43 [1] : vector<8x8xf32> to vector<8xf32>
    %90 = vector.shape_cast %89 : vector<8xf32> to vector<8x1xf32>
    %91 = vector.broadcast %90 : vector<8x1xf32> to vector<8x8xf32>
    %92 = arith.subf %88, %91 : vector<8x8xf32>
    %93 = math.exp %92 : vector<8x8xf32>
    %cst_44 = arith.constant dense<0.000000e+00> : vector<8xf32>
    %94 = vector.multi_reduction <add>, %93, %cst_44 [1] : vector<8x8xf32> to vector<8xf32>
    %95 = vector.shape_cast %94 : vector<8xf32> to vector<8x1xf32>
    %96 = tpu.reciprocal %95 {approx = true} : vector<8x1xf32> -> vector<8x1xf32>
    %97 = vector.broadcast %96 : vector<8x1xf32> to vector<8x8xf32>
    %98 = arith.mulf %93, %97 : vector<8x8xf32>
    %99 = vector.broadcast %52 : vector<1x8xf32> to vector<8x8xf32>
    %100 = arith.mulf %98, %99 : vector<8x8xf32>
    %101 = vector.extract_strided_slice %49 {offsets = [0, 8], sizes = [8, 8], strides = [1, 1]} : vector<8x32xbf16> to vector<8x8xbf16>
    %102 = arith.truncf %100 : vector<8x8xf32> to vector<8x8xbf16>
    %cst_45 = arith.constant dense<0.000000e+00> : vector<8x8xf32>
    %103 = tpu.matmul %102, %101, %cst_45 {dimension_numbers = #tpu.dot_dimension_numbers<[1], [0], [0], [1], [0, 0, 1, 1], [], []>} : vector<8x8xbf16>, vector<8x8xbf16>, vector<8x8xf32> -> vector<8x8xf32>
    %c0_46 = arith.constant 0 : index
    %c8 = arith.constant 8 : index
    %104 = vector.load %arg20[%c0_46, %c8] : memref<8x32xf32, #tpu.memory_space<vmem>>, vector<8x8xf32>
    tpu.vector_store %arg20[%c0_46, %c8], %103 {strides = array<i32>} : memref<8x32xf32, #tpu.memory_space<vmem>>, vector<8x8xf32>,
    %105 = vector.extract_strided_slice %41 {offsets = [0, 16], sizes = [8, 8], strides = [1, 1]} : vector<8x32xbf16> to vector<8x8xbf16>
    %106 = vector.extract_strided_slice %48 {offsets = [0, 16], sizes = [8, 8], strides = [1, 1]} : vector<8x32xbf16> to vector<8x8xbf16>
    %cst_47 = arith.constant dense<0.000000e+00> : vector<8x8xf32>
    %107 = tpu.matmul %105, %106, %cst_47 {dimension_numbers = #tpu.dot_dimension_numbers<[1], [1], [0], [0], [0, 0, 1, 0], [], []>} : vector<8x8xbf16>, vector<8x8xbf16>, vector<8x8xf32> -> vector<8x8xf32>
    %108 = vector.extract_strided_slice %47 {offsets = [0, 16], sizes = [8, 8], strides = [1, 1]} : vector<8x32xbf16> to vector<8x8xbf16>
    %109 = vector.extract_strided_slice %50 {offsets = [0, 16], sizes = [8, 8], strides = [1, 1]} : vector<8x32xbf16> to vector<8x8xbf16>
    %cst_48 = arith.constant dense<0.000000e+00> : vector<8x8xf32>
    %110 = tpu.matmul %108, %109, %cst_48 {dimension_numbers = #tpu.dot_dimension_numbers<[1], [1], [0], [0], [0, 0, 1, 0], [], []>} : vector<8x8xbf16>, vector<8x8xbf16>, vector<8x8xf32> -> vector<8x8xf32>
    %111 = arith.addf %107, %110 : vector<8x8xf32>
    %112 = vector.broadcast %54 : vector<1x8xf32> to vector<8x8xf32>
    %113 = arith.addf %111, %112 : vector<8x8xf32>
    %cst_49 = arith.constant dense<0xFF800000> : vector<8xf32>
    %114 = vector.multi_reduction <maximumf>, %113, %cst_49 [1] : vector<8x8xf32> to vector<8xf32>
    %115 = vector.shape_cast %114 : vector<8xf32> to vector<8x1xf32>
    %116 = vector.broadcast %115 : vector<8x1xf32> to vector<8x8xf32>
    %117 = arith.subf %113, %116 : vector<8x8xf32>
    %118 = math.exp %117 : vector<8x8xf32>
    %cst_50 = arith.constant dense<0.000000e+00> : vector<8xf32>
    %119 = vector.multi_reduction <add>, %118, %cst_50 [1] : vector<8x8xf32> to vector<8xf32>
    %120 = vector.shape_cast %119 : vector<8xf32> to vector<8x1xf32>
    %121 = tpu.reciprocal %120 {approx = true} : vector<8x1xf32> -> vector<8x1xf32>
    %122 = vector.broadcast %121 : vector<8x1xf32> to vector<8x8xf32>
    %123 = arith.mulf %118, %122 : vector<8x8xf32>
    %124 = vector.broadcast %52 : vector<1x8xf32> to vector<8x8xf32>
    %125 = arith.mulf %123, %124 : vector<8x8xf32>
    %126 = vector.extract_strided_slice %49 {offsets = [0, 16], sizes = [8, 8], strides = [1, 1]} : vector<8x32xbf16> to vector<8x8xbf16>
    %127 = arith.truncf %125 : vector<8x8xf32> to vector<8x8xbf16>
    %cst_51 = arith.constant dense<0.000000e+00> : vector<8x8xf32>
    %128 = tpu.matmul %127, %126, %cst_51 {dimension_numbers = #tpu.dot_dimension_numbers<[1], [0], [0], [1], [0, 0, 1, 1], [], []>} : vector<8x8xbf16>, vector<8x8xbf16>, vector<8x8xf32> -> vector<8x8xf32>
    %c0_52 = arith.constant 0 : index
    %c16 = arith.constant 16 : index
    %129 = vector.load %arg20[%c0_52, %c16] : memref<8x32xf32, #tpu.memory_space<vmem>>, vector<8x8xf32>
    tpu.vector_store %arg20[%c0_52, %c16], %128 {strides = array<i32>} : memref<8x32xf32, #tpu.memory_space<vmem>>, vector<8x8xf32>,
    %130 = vector.extract_strided_slice %41 {offsets = [0, 24], sizes = [8, 8], strides = [1, 1]} : vector<8x32xbf16> to vector<8x8xbf16>
    %131 = vector.extract_strided_slice %48 {offsets = [0, 24], sizes = [8, 8], strides = [1, 1]} : vector<8x32xbf16> to vector<8x8xbf16>
    %cst_53 = arith.constant dense<0.000000e+00> : vector<8x8xf32>
    %132 = tpu.matmul %130, %131, %cst_53 {dimension_numbers = #tpu.dot_dimension_numbers<[1], [1], [0], [0], [0, 0, 1, 0], [], []>} : vector<8x8xbf16>, vector<8x8xbf16>, vector<8x8xf32> -> vector<8x8xf32>
    %133 = vector.extract_strided_slice %47 {offsets = [0, 24], sizes = [8, 8], strides = [1, 1]} : vector<8x32xbf16> to vector<8x8xbf16>
    %134 = vector.extract_strided_slice %50 {offsets = [0, 24], sizes = [8, 8], strides = [1, 1]} : vector<8x32xbf16> to vector<8x8xbf16>
    %cst_54 = arith.constant dense<0.000000e+00> : vector<8x8xf32>
    %135 = tpu.matmul %133, %134, %cst_54 {dimension_numbers = #tpu.dot_dimension_numbers<[1], [1], [0], [0], [0, 0, 1, 0], [], []>} : vector<8x8xbf16>, vector<8x8xbf16>, vector<8x8xf32> -> vector<8x8xf32>
    %136 = arith.addf %132, %135 : vector<8x8xf32>
    %137 = vector.broadcast %54 : vector<1x8xf32> to vector<8x8xf32>
    %138 = arith.addf %136, %137 : vector<8x8xf32>
    %cst_55 = arith.constant dense<0xFF800000> : vector<8xf32>
    %139 = vector.multi_reduction <maximumf>, %138, %cst_55 [1] : vector<8x8xf32> to vector<8xf32>
    %140 = vector.shape_cast %139 : vector<8xf32> to vector<8x1xf32>
    %141 = vector.broadcast %140 : vector<8x1xf32> to vector<8x8xf32>
    %142 = arith.subf %138, %141 : vector<8x8xf32>
    %143 = math.exp %142 : vector<8x8xf32>
    %cst_56 = arith.constant dense<0.000000e+00> : vector<8xf32>
    %144 = vector.multi_reduction <add>, %143, %cst_56 [1] : vector<8x8xf32> to vector<8xf32>
    %145 = vector.shape_cast %144 : vector<8xf32> to vector<8x1xf32>
    %146 = tpu.reciprocal %145 {approx = true} : vector<8x1xf32> -> vector<8x1xf32>
    %147 = vector.broadcast %146 : vector<8x1xf32> to vector<8x8xf32>
    %148 = arith.mulf %143, %147 : vector<8x8xf32>
    %149 = vector.broadcast %52 : vector<1x8xf32> to vector<8x8xf32>
    %150 = arith.mulf %148, %149 : vector<8x8xf32>
    %151 = vector.extract_strided_slice %49 {offsets = [0, 24], sizes = [8, 8], strides = [1, 1]} : vector<8x32xbf16> to vector<8x8xbf16>
    %152 = arith.truncf %150 : vector<8x8xf32> to vector<8x8xbf16>
    %cst_57 = arith.constant dense<0.000000e+00> : vector<8x8xf32>
    %153 = tpu.matmul %152, %151, %cst_57 {dimension_numbers = #tpu.dot_dimension_numbers<[1], [0], [0], [1], [0, 0, 1, 1], [], []>} : vector<8x8xbf16>, vector<8x8xbf16>, vector<8x8xf32> -> vector<8x8xf32>
    %c0_58 = arith.constant 0 : index
    %c24 = arith.constant 24 : index
    %154 = vector.load %arg20[%c0_58, %c24] : memref<8x32xf32, #tpu.memory_space<vmem>>, vector<8x8xf32>
    tpu.vector_store %arg20[%c0_58, %c24], %153 {strides = array<i32>} : memref<8x32xf32, #tpu.memory_space<vmem>>, vector<8x8xf32>,
    %c0_59 = arith.constant 0 : index
    %c0_60 = arith.constant 0 : index
    %155 = vector.load %arg20[%c0_59, %c0_60] : memref<8x32xf32, #tpu.memory_space<vmem>>, vector<8x32xf32>
    %c0_61 = arith.constant 0 : index
    %c0_62 = arith.constant 0 : index
    %156 = vector.load %arg15[%c0_61, %c0_62] : memref<32x32xbf16, #tpu.memory_space<vmem>>, vector<32x32xbf16>
    %157 = arith.truncf %155 : vector<8x32xf32> to vector<8x32xbf16>
    %cst_63 = arith.constant dense<0.000000e+00> : vector<8x32xf32>
    %158 = tpu.matmul %157, %156, %cst_63 {dimension_numbers = #tpu.dot_dimension_numbers<[1], [0], [0], [1], [0, 0, 1, 1], [], []>} : vector<8x32xbf16>, vector<32x32xbf16>, vector<8x32xf32> -> vector<8x32xf32>
    %c0_64 = arith.constant 0 : index
    %c0_65 = arith.constant 0 : index
    %159 = vector.load %arg16[%c0_64, %c0_65] : memref<1x32xf32, #tpu.memory_space<vmem>>, vector<1x32xf32>
    %160 = vector.broadcast %159 : vector<1x32xf32> to vector<8x32xf32>
    %161 = arith.addf %158, %160 : vector<8x32xf32>
    %162 = arith.addf %5, %161 : vector<8x32xf32>
    %163 = arith.truncf %162 : vector<8x32xf32> to vector<8x32xbf16>
    %c0_66 = arith.constant 0 : index
    %c0_67 = arith.constant 0 : index
    %c0_68 = arith.constant 0 : index
    %164 = vector.load %arg17[%c0_66, %c0_67, %c0_68] : memref<1x8x32xbf16, #tpu.memory_space<vmem>>, vector<1x8x32xbf16>
    %165 = vector.shape_cast %164 : vector<1x8x32xbf16> to vector<8x32xbf16>
    %166 = vector.shape_cast %163 : vector<8x32xbf16> to vector<1x8x32xbf16>
    tpu.vector_store %arg17[%c0_66, %c0_67, %c0_68], %166 {strides = array<i32>} : memref<1x8x32xbf16, #tpu.memory_space<vmem>>, vector<1x8x32xbf16>,
    return
  }
  func.func @transform_0(%arg0: i32, %arg1: i32) -> (i32, i32, i32) {
    %c0_i32 = arith.constant 0 : i32
    %c0_i32_0 = arith.constant 0 : i32
    %c0_i32_1 = arith.constant 0 : i32
    return %arg0, %c0_i32, %c0_i32_0 : i32, i32, i32
  }
  func.func @transform_1(%arg0: i32, %arg1: i32) -> (i32, i32, i32) {
    %c0_i32 = arith.constant 0 : i32
    %c0_i32_0 = arith.constant 0 : i32
    return %arg0, %arg1, %c0_i32 : i32, i32, i32
  }
  func.func @transform_2(%arg0: i32, %arg1: i32) -> (i32, i32, i32) {
    %c0_i32 = arith.constant 0 : i32
    %c0_i32_0 = arith.constant 0 : i32
    %c0_i32_1 = arith.constant 0 : i32
    return %arg0, %c0_i32, %c0_i32_0 : i32, i32, i32
  }
  func.func @transform_3(%arg0: i32, %arg1: i32) -> (i32, i32, i32) {
    %c0_i32 = arith.constant 0 : i32
    %c0_i32_0 = arith.constant 0 : i32
    %c0_i32_1 = arith.constant 0 : i32
    return %arg0, %c0_i32, %c0_i32_0 : i32, i32, i32
  }
  func.func @transform_4(%arg0: i32, %arg1: i32) -> (i32, i32) {
    %c0_i32 = arith.constant 0 : i32
    %c0_i32_0 = arith.constant 0 : i32
    %c0_i32_1 = arith.constant 0 : i32
    return %c0_i32, %c0_i32_0 : i32, i32
  }
  func.func @transform_5(%arg0: i32, %arg1: i32) -> (i32, i32) {
    %c0_i32 = arith.constant 0 : i32
    %c0_i32_0 = arith.constant 0 : i32
    %c0_i32_1 = arith.constant 0 : i32
    return %c0_i32, %c0_i32_0 : i32, i32
  }
  func.func @transform_6(%arg0: i32, %arg1: i32) -> (i32, i32) {
    %c0_i32 = arith.constant 0 : i32
    %c0_i32_0 = arith.constant 0 : i32
    %c0_i32_1 = arith.constant 0 : i32
    return %c0_i32, %c0_i32_0 : i32, i32
  }
  func.func @transform_7(%arg0: i32, %arg1: i32) -> (i32, i32) {
    %c0_i32 = arith.constant 0 : i32
    %c0_i32_0 = arith.constant 0 : i32
    %c0_i32_1 = arith.constant 0 : i32
    return %c0_i32, %c0_i32_0 : i32, i32
  }
  func.func @transform_8(%arg0: i32, %arg1: i32) -> (i32, i32) {
    %c0_i32 = arith.constant 0 : i32
    %c0_i32_0 = arith.constant 0 : i32
    %c0_i32_1 = arith.constant 0 : i32
    return %c0_i32, %c0_i32_0 : i32, i32
  }
  func.func @transform_9(%arg0: i32, %arg1: i32) -> (i32, i32) {
    %c0_i32 = arith.constant 0 : i32
    %c0_i32_0 = arith.constant 0 : i32
    %c0_i32_1 = arith.constant 0 : i32
    return %c0_i32, %c0_i32_0 : i32, i32
  }
  func.func @transform_10(%arg0: i32, %arg1: i32) -> (i32, i32) {
    %c0_i32 = arith.constant 0 : i32
    %c0_i32_0 = arith.constant 0 : i32
    %c0_i32_1 = arith.constant 0 : i32
    return %c0_i32, %c0_i32_0 : i32, i32
  }
  func.func @transform_11(%arg0: i32, %arg1: i32) -> (i32, i32) {
    %c0_i32 = arith.constant 0 : i32
    %c0_i32_0 = arith.constant 0 : i32
    %c0_i32_1 = arith.constant 0 : i32
    return %c0_i32, %c0_i32_0 : i32, i32
  }
  func.func @transform_12(%arg0: i32, %arg1: i32) -> (i32, i32) {
    %c0_i32 = arith.constant 0 : i32
    %c0_i32_0 = arith.constant 0 : i32
    %c0_i32_1 = arith.constant 0 : i32
    return %c0_i32, %c0_i32_0 : i32, i32
  }
  func.func @transform_13(%arg0: i32, %arg1: i32) -> (i32, i32) {
    %c0_i32 = arith.constant 0 : i32
    %c0_i32_0 = arith.constant 0 : i32
    %c0_i32_1 = arith.constant 0 : i32
    return %c0_i32, %c0_i32_0 : i32, i32
  }
  func.func @transform_14(%arg0: i32, %arg1: i32) -> (i32, i32) {
    %c0_i32 = arith.constant 0 : i32
    %c0_i32_0 = arith.constant 0 : i32
    %c0_i32_1 = arith.constant 0 : i32
    return %c0_i32, %c0_i32_0 : i32, i32
  }
  func.func @transform_15(%arg0: i32, %arg1: i32) -> (i32, i32, i32) {
    %c0_i32 = arith.constant 0 : i32
    %c0_i32_0 = arith.constant 0 : i32
    return %arg0, %arg1, %c0_i32 : i32, i32, i32
  }
}

module attributes {stable_mosaic.version = 11 : i64} {
  func.func @_conv_module_kernel(%arg0: i32, %arg1: memref<1x8x32xbf16, #tpu.memory_space<vmem>>, %arg2: memref<1x8x1xf32, #tpu.memory_space<vmem>>, %arg3: memref<1x32xf32, #tpu.memory_space<vmem>>, %arg4: memref<1x32xf32, #tpu.memory_space<vmem>>, %arg5: memref<32x64xbf16, #tpu.memory_space<vmem>>, %arg6: memref<1x64xf32, #tpu.memory_space<vmem>>, %arg7: memref<15x32xf32, #tpu.memory_space<vmem>>, %arg8: memref<1x32xf32, #tpu.memory_space<vmem>>, %arg9: memref<1x32xf32, #tpu.memory_space<vmem>>, %arg10: memref<1x32xf32, #tpu.memory_space<vmem>>, %arg11: memref<32x32xbf16, #tpu.memory_space<vmem>>, %arg12: memref<1x32xf32, #tpu.memory_space<vmem>>, %arg13: memref<1x8x32xbf16, #tpu.memory_space<vmem>>, %arg14: memref<22x32xf32, #tpu.memory_space<vmem>>) attributes {dimension_semantics = [#tpu.dimension_semantics<parallel>], iteration_bounds = array<i64: 2>, scalar_prefetch = 0 : i64, scratch_operands = 1 : i64, tpu.core_type = #tpu.core_type<tc>, window_params = [{transform_indices = @transform_0, window_bounds = array<i64: 1, 8, 32>}, {transform_indices = @transform_1, window_bounds = array<i64: 1, 8, 1>}, {pipeline_mode = #tpu.pipeline_mode<synchronous>, transform_indices = @transform_2, window_bounds = array<i64: 1, 32>}, {pipeline_mode = #tpu.pipeline_mode<synchronous>, transform_indices = @transform_3, window_bounds = array<i64: 1, 32>}, {pipeline_mode = #tpu.pipeline_mode<synchronous>, transform_indices = @transform_4, window_bounds = array<i64: 32, 64>}, {pipeline_mode = #tpu.pipeline_mode<synchronous>, transform_indices = @transform_5, window_bounds = array<i64: 1, 64>}, {pipeline_mode = #tpu.pipeline_mode<synchronous>, transform_indices = @transform_6, window_bounds = array<i64: 15, 32>}, {pipeline_mode = #tpu.pipeline_mode<synchronous>, transform_indices = @transform_7, window_bounds = array<i64: 1, 32>}, {pipeline_mode = #tpu.pipeline_mode<synchronous>, transform_indices = @transform_8, window_bounds = array<i64: 1, 32>}, {pipeline_mode = #tpu.pipeline_mode<synchronous>, transform_indices = @transform_9, window_bounds = array<i64: 1, 32>}, {pipeline_mode = #tpu.pipeline_mode<synchronous>, transform_indices = @transform_10, window_bounds = array<i64: 32, 32>}, {pipeline_mode = #tpu.pipeline_mode<synchronous>, transform_indices = @transform_11, window_bounds = array<i64: 1, 32>}, {transform_indices = @transform_12, window_bounds = array<i64: 1, 8, 32>}]} {
    %c0 = arith.constant 0 : index
    %c0_0 = arith.constant 0 : index
    %c0_1 = arith.constant 0 : index
    %0 = vector.load %arg1[%c0, %c0_0, %c0_1] : memref<1x8x32xbf16, #tpu.memory_space<vmem>>, vector<1x8x32xbf16>
    %1 = vector.shape_cast %0 : vector<1x8x32xbf16> to vector<8x32xbf16>
    %2 = arith.extf %1 : vector<8x32xbf16> to vector<8x32xf32>
    %c0_2 = arith.constant 0 : index
    %c0_3 = arith.constant 0 : index
    %c0_4 = arith.constant 0 : index
    %3 = vector.load %arg2[%c0_2, %c0_3, %c0_4] : memref<1x8x1xf32, #tpu.memory_space<vmem>>, vector<1x8x1xf32>
    %4 = vector.shape_cast %3 : vector<1x8x1xf32> to vector<8x1xf32>
    %c0_5 = arith.constant 0 : index
    %c0_6 = arith.constant 0 : index
    %5 = vector.load %arg3[%c0_5, %c0_6] : memref<1x32xf32, #tpu.memory_space<vmem>>, vector<1x32xf32>
    %c0_7 = arith.constant 0 : index
    %c0_8 = arith.constant 0 : index
    %6 = vector.load %arg4[%c0_7, %c0_8] : memref<1x32xf32, #tpu.memory_space<vmem>>, vector<1x32xf32>
    %cst = arith.constant dense<0.000000e+00> : vector<8xf32>
    %7 = vector.multi_reduction <add>, %2, %cst [1] : vector<8x32xf32> to vector<8xf32>
    %8 = vector.shape_cast %7 : vector<8xf32> to vector<8x1xf32>
    %cst_9 = arith.constant 3.200000e+01 : f32
    %9 = vector.broadcast %cst_9 : f32 to vector<8x1xf32>
    %10 = arith.divf %8, %9 : vector<8x1xf32>
    %11 = vector.broadcast %10 : vector<8x1xf32> to vector<8x32xf32>
    %12 = arith.subf %2, %11 : vector<8x32xf32>
    %13 = arith.mulf %12, %12 : vector<8x32xf32>
    %cst_10 = arith.constant dense<0.000000e+00> : vector<8xf32>
    %14 = vector.multi_reduction <add>, %13, %cst_10 [1] : vector<8x32xf32> to vector<8xf32>
    %15 = vector.shape_cast %14 : vector<8xf32> to vector<8x1xf32>
    %cst_11 = arith.constant 3.200000e+01 : f32
    %16 = vector.broadcast %cst_11 : f32 to vector<8x1xf32>
    %17 = arith.divf %15, %16 : vector<8x1xf32>
    %18 = vector.broadcast %10 : vector<8x1xf32> to vector<8x32xf32>
    %19 = arith.subf %2, %18 : vector<8x32xf32>
    %cst_12 = arith.constant 9.99999974E-6 : f32
    %20 = vector.broadcast %cst_12 : f32 to vector<8x1xf32>
    %21 = arith.addf %17, %20 : vector<8x1xf32>
    %22 = math.rsqrt %21 : vector<8x1xf32>
    %23 = vector.broadcast %22 : vector<8x1xf32> to vector<8x32xf32>
    %24 = arith.mulf %19, %23 : vector<8x32xf32>
    %25 = vector.broadcast %5 : vector<1x32xf32> to vector<8x32xf32>
    %26 = arith.mulf %24, %25 : vector<8x32xf32>
    %27 = vector.broadcast %6 : vector<1x32xf32> to vector<8x32xf32>
    %28 = arith.addf %26, %27 : vector<8x32xf32>
    %29 = vector.broadcast %4 : vector<8x1xf32> to vector<8x32xf32>
    %30 = arith.mulf %28, %29 : vector<8x32xf32>
    %c0_13 = arith.constant 0 : index
    %c0_14 = arith.constant 0 : index
    %31 = vector.load %arg5[%c0_13, %c0_14] : memref<32x64xbf16, #tpu.memory_space<vmem>>, vector<32x64xbf16>
    %32 = arith.truncf %30 : vector<8x32xf32> to vector<8x32xbf16>
    %cst_15 = arith.constant dense<0.000000e+00> : vector<8x64xf32>
    %33 = tpu.matmul %32, %31, %cst_15 {dimension_numbers = #tpu.dot_dimension_numbers<[1], [0], [0], [1], [0, 0, 1, 1], [], []>} : vector<8x32xbf16>, vector<32x64xbf16>, vector<8x64xf32> -> vector<8x64xf32>
    %c0_16 = arith.constant 0 : index
    %c0_17 = arith.constant 0 : index
    %34 = vector.load %arg6[%c0_16, %c0_17] : memref<1x64xf32, #tpu.memory_space<vmem>>, vector<1x64xf32>
    %35 = vector.broadcast %34 : vector<1x64xf32> to vector<8x64xf32>
    %36 = arith.addf %33, %35 : vector<8x64xf32>
    %37 = vector.extract_strided_slice %36 {offsets = [0, 0], sizes = [8, 32], strides = [1, 1]} : vector<8x64xf32> to vector<8x32xf32>
    %38 = vector.extract_strided_slice %36 {offsets = [0, 32], sizes = [8, 32], strides = [1, 1]} : vector<8x64xf32> to vector<8x32xf32>
    %39 = arith.negf %38 : vector<8x32xf32>
    %40 = math.exp %39 : vector<8x32xf32>
    %cst_18 = arith.constant 1.000000e+00 : f32
    %41 = vector.broadcast %cst_18 : f32 to vector<8x32xf32>
    %42 = arith.addf %41, %40 : vector<8x32xf32>
    %43 = arith.divf %41, %42 : vector<8x32xf32>
    %44 = arith.mulf %37, %43 : vector<8x32xf32>
    %cst_19 = arith.constant 0.000000e+00 : f32
    %45 = vector.broadcast %cst_19 : f32 to vector<7x32xf32>
    %c0_20 = arith.constant 0 : index
    %c0_21 = arith.constant 0 : index
    %46 = vector.load %arg14[%c0_20, %c0_21] : memref<22x32xf32, #tpu.memory_space<vmem>>, vector<7x32xf32>
    tpu.vector_store %arg14[%c0_20, %c0_21], %45 {strides = array<i32>} : memref<22x32xf32, #tpu.memory_space<vmem>>, vector<7x32xf32>,
    %c7 = arith.constant 7 : index
    %c0_22 = arith.constant 0 : index
    %47 = vector.load %arg14[%c7, %c0_22] : memref<22x32xf32, #tpu.memory_space<vmem>>, vector<8x32xf32>
    tpu.vector_store %arg14[%c7, %c0_22], %44 {strides = array<i32>} : memref<22x32xf32, #tpu.memory_space<vmem>>, vector<8x32xf32>,
    %cst_23 = arith.constant 0.000000e+00 : f32
    %48 = vector.broadcast %cst_23 : f32 to vector<7x32xf32>
    %c15 = arith.constant 15 : index
    %c0_24 = arith.constant 0 : index
    %49 = vector.load %arg14[%c15, %c0_24] : memref<22x32xf32, #tpu.memory_space<vmem>>, vector<7x32xf32>
    tpu.vector_store %arg14[%c15, %c0_24], %48 {strides = array<i32>} : memref<22x32xf32, #tpu.memory_space<vmem>>, vector<7x32xf32>,
    %c0_25 = arith.constant 0 : index
    %c0_26 = arith.constant 0 : index
    %50 = vector.load %arg14[%c0_25, %c0_26] : memref<22x32xf32, #tpu.memory_space<vmem>>, vector<22x32xf32>
    %c0_27 = arith.constant 0 : index
    %c0_28 = arith.constant 0 : index
    %51 = vector.load %arg7[%c0_27, %c0_28] : memref<15x32xf32, #tpu.memory_space<vmem>>, vector<15x32xf32>
    %cst_29 = arith.constant 0.000000e+00 : f32
    %52 = vector.broadcast %cst_29 : f32 to vector<8x32xf32>
    %53 = vector.extract_strided_slice %50 {offsets = [0, 0], sizes = [8, 32], strides = [1, 1]} : vector<22x32xf32> to vector<8x32xf32>
    %54 = vector.extract_strided_slice %51 {offsets = [0, 0], sizes = [1, 32], strides = [1, 1]} : vector<15x32xf32> to vector<1x32xf32>
    %55 = vector.broadcast %54 : vector<1x32xf32> to vector<8x32xf32>
    %56 = arith.mulf %53, %55 : vector<8x32xf32>
    %57 = arith.addf %52, %56 : vector<8x32xf32>
    %58 = vector.extract_strided_slice %50 {offsets = [1, 0], sizes = [8, 32], strides = [1, 1]} : vector<22x32xf32> to vector<8x32xf32>
    %59 = vector.extract_strided_slice %51 {offsets = [1, 0], sizes = [1, 32], strides = [1, 1]} : vector<15x32xf32> to vector<1x32xf32>
    %60 = vector.broadcast %59 : vector<1x32xf32> to vector<8x32xf32>
    %61 = arith.mulf %58, %60 : vector<8x32xf32>
    %62 = arith.addf %57, %61 : vector<8x32xf32>
    %63 = vector.extract_strided_slice %50 {offsets = [2, 0], sizes = [8, 32], strides = [1, 1]} : vector<22x32xf32> to vector<8x32xf32>
    %64 = vector.extract_strided_slice %51 {offsets = [2, 0], sizes = [1, 32], strides = [1, 1]} : vector<15x32xf32> to vector<1x32xf32>
    %65 = vector.broadcast %64 : vector<1x32xf32> to vector<8x32xf32>
    %66 = arith.mulf %63, %65 : vector<8x32xf32>
    %67 = arith.addf %62, %66 : vector<8x32xf32>
    %68 = vector.extract_strided_slice %50 {offsets = [3, 0], sizes = [8, 32], strides = [1, 1]} : vector<22x32xf32> to vector<8x32xf32>
    %69 = vector.extract_strided_slice %51 {offsets = [3, 0], sizes = [1, 32], strides = [1, 1]} : vector<15x32xf32> to vector<1x32xf32>
    %70 = vector.broadcast %69 : vector<1x32xf32> to vector<8x32xf32>
    %71 = arith.mulf %68, %70 : vector<8x32xf32>
    %72 = arith.addf %67, %71 : vector<8x32xf32>
    %73 = vector.extract_strided_slice %50 {offsets = [4, 0], sizes = [8, 32], strides = [1, 1]} : vector<22x32xf32> to vector<8x32xf32>
    %74 = vector.extract_strided_slice %51 {offsets = [4, 0], sizes = [1, 32], strides = [1, 1]} : vector<15x32xf32> to vector<1x32xf32>
    %75 = vector.broadcast %74 : vector<1x32xf32> to vector<8x32xf32>
    %76 = arith.mulf %73, %75 : vector<8x32xf32>
    %77 = arith.addf %72, %76 : vector<8x32xf32>
    %78 = vector.extract_strided_slice %50 {offsets = [5, 0], sizes = [8, 32], strides = [1, 1]} : vector<22x32xf32> to vector<8x32xf32>
    %79 = vector.extract_strided_slice %51 {offsets = [5, 0], sizes = [1, 32], strides = [1, 1]} : vector<15x32xf32> to vector<1x32xf32>
    %80 = vector.broadcast %79 : vector<1x32xf32> to vector<8x32xf32>
    %81 = arith.mulf %78, %80 : vector<8x32xf32>
    %82 = arith.addf %77, %81 : vector<8x32xf32>
    %83 = vector.extract_strided_slice %50 {offsets = [6, 0], sizes = [8, 32], strides = [1, 1]} : vector<22x32xf32> to vector<8x32xf32>
    %84 = vector.extract_strided_slice %51 {offsets = [6, 0], sizes = [1, 32], strides = [1, 1]} : vector<15x32xf32> to vector<1x32xf32>
    %85 = vector.broadcast %84 : vector<1x32xf32> to vector<8x32xf32>
    %86 = arith.mulf %83, %85 : vector<8x32xf32>
    %87 = arith.addf %82, %86 : vector<8x32xf32>
    %88 = vector.extract_strided_slice %50 {offsets = [7, 0], sizes = [8, 32], strides = [1, 1]} : vector<22x32xf32> to vector<8x32xf32>
    %89 = vector.extract_strided_slice %51 {offsets = [7, 0], sizes = [1, 32], strides = [1, 1]} : vector<15x32xf32> to vector<1x32xf32>
    %90 = vector.broadcast %89 : vector<1x32xf32> to vector<8x32xf32>
    %91 = arith.mulf %88, %90 : vector<8x32xf32>
    %92 = arith.addf %87, %91 : vector<8x32xf32>
    %93 = vector.extract_strided_slice %50 {offsets = [8, 0], sizes = [8, 32], strides = [1, 1]} : vector<22x32xf32> to vector<8x32xf32>
    %94 = vector.extract_strided_slice %51 {offsets = [8, 0], sizes = [1, 32], strides = [1, 1]} : vector<15x32xf32> to vector<1x32xf32>
    %95 = vector.broadcast %94 : vector<1x32xf32> to vector<8x32xf32>
    %96 = arith.mulf %93, %95 : vector<8x32xf32>
    %97 = arith.addf %92, %96 : vector<8x32xf32>
    %98 = vector.extract_strided_slice %50 {offsets = [9, 0], sizes = [8, 32], strides = [1, 1]} : vector<22x32xf32> to vector<8x32xf32>
    %99 = vector.extract_strided_slice %51 {offsets = [9, 0], sizes = [1, 32], strides = [1, 1]} : vector<15x32xf32> to vector<1x32xf32>
    %100 = vector.broadcast %99 : vector<1x32xf32> to vector<8x32xf32>
    %101 = arith.mulf %98, %100 : vector<8x32xf32>
    %102 = arith.addf %97, %101 : vector<8x32xf32>
    %103 = vector.extract_strided_slice %50 {offsets = [10, 0], sizes = [8, 32], strides = [1, 1]} : vector<22x32xf32> to vector<8x32xf32>
    %104 = vector.extract_strided_slice %51 {offsets = [10, 0], sizes = [1, 32], strides = [1, 1]} : vector<15x32xf32> to vector<1x32xf32>
    %105 = vector.broadcast %104 : vector<1x32xf32> to vector<8x32xf32>
    %106 = arith.mulf %103, %105 : vector<8x32xf32>
    %107 = arith.addf %102, %106 : vector<8x32xf32>
    %108 = vector.extract_strided_slice %50 {offsets = [11, 0], sizes = [8, 32], strides = [1, 1]} : vector<22x32xf32> to vector<8x32xf32>
    %109 = vector.extract_strided_slice %51 {offsets = [11, 0], sizes = [1, 32], strides = [1, 1]} : vector<15x32xf32> to vector<1x32xf32>
    %110 = vector.broadcast %109 : vector<1x32xf32> to vector<8x32xf32>
    %111 = arith.mulf %108, %110 : vector<8x32xf32>
    %112 = arith.addf %107, %111 : vector<8x32xf32>
    %113 = vector.extract_strided_slice %50 {offsets = [12, 0], sizes = [8, 32], strides = [1, 1]} : vector<22x32xf32> to vector<8x32xf32>
    %114 = vector.extract_strided_slice %51 {offsets = [12, 0], sizes = [1, 32], strides = [1, 1]} : vector<15x32xf32> to vector<1x32xf32>
    %115 = vector.broadcast %114 : vector<1x32xf32> to vector<8x32xf32>
    %116 = arith.mulf %113, %115 : vector<8x32xf32>
    %117 = arith.addf %112, %116 : vector<8x32xf32>
    %118 = vector.extract_strided_slice %50 {offsets = [13, 0], sizes = [8, 32], strides = [1, 1]} : vector<22x32xf32> to vector<8x32xf32>
    %119 = vector.extract_strided_slice %51 {offsets = [13, 0], sizes = [1, 32], strides = [1, 1]} : vector<15x32xf32> to vector<1x32xf32>
    %120 = vector.broadcast %119 : vector<1x32xf32> to vector<8x32xf32>
    %121 = arith.mulf %118, %120 : vector<8x32xf32>
    %122 = arith.addf %117, %121 : vector<8x32xf32>
    %123 = vector.extract_strided_slice %50 {offsets = [14, 0], sizes = [8, 32], strides = [1, 1]} : vector<22x32xf32> to vector<8x32xf32>
    %124 = vector.extract_strided_slice %51 {offsets = [14, 0], sizes = [1, 32], strides = [1, 1]} : vector<15x32xf32> to vector<1x32xf32>
    %125 = vector.broadcast %124 : vector<1x32xf32> to vector<8x32xf32>
    %126 = arith.mulf %123, %125 : vector<8x32xf32>
    %127 = arith.addf %122, %126 : vector<8x32xf32>
    %c0_30 = arith.constant 0 : index
    %c0_31 = arith.constant 0 : index
    %128 = vector.load %arg8[%c0_30, %c0_31] : memref<1x32xf32, #tpu.memory_space<vmem>>, vector<1x32xf32>
    %129 = vector.broadcast %128 : vector<1x32xf32> to vector<8x32xf32>
    %130 = arith.addf %127, %129 : vector<8x32xf32>
    %c0_32 = arith.constant 0 : index
    %c0_33 = arith.constant 0 : index
    %131 = vector.load %arg9[%c0_32, %c0_33] : memref<1x32xf32, #tpu.memory_space<vmem>>, vector<1x32xf32>
    %132 = vector.broadcast %131 : vector<1x32xf32> to vector<8x32xf32>
    %133 = arith.mulf %130, %132 : vector<8x32xf32>
    %c0_34 = arith.constant 0 : index
    %c0_35 = arith.constant 0 : index
    %134 = vector.load %arg10[%c0_34, %c0_35] : memref<1x32xf32, #tpu.memory_space<vmem>>, vector<1x32xf32>
    %135 = vector.broadcast %134 : vector<1x32xf32> to vector<8x32xf32>
    %136 = arith.addf %133, %135 : vector<8x32xf32>
    %137 = arith.negf %136 : vector<8x32xf32>
    %138 = math.exp %137 : vector<8x32xf32>
    %cst_36 = arith.constant 1.000000e+00 : f32
    %139 = vector.broadcast %cst_36 : f32 to vector<8x32xf32>
    %140 = arith.addf %139, %138 : vector<8x32xf32>
    %141 = arith.divf %139, %140 : vector<8x32xf32>
    %142 = arith.mulf %136, %141 : vector<8x32xf32>
    %c0_37 = arith.constant 0 : index
    %c0_38 = arith.constant 0 : index
    %143 = vector.load %arg11[%c0_37, %c0_38] : memref<32x32xbf16, #tpu.memory_space<vmem>>, vector<32x32xbf16>
    %144 = arith.truncf %142 : vector<8x32xf32> to vector<8x32xbf16>
    %cst_39 = arith.constant dense<0.000000e+00> : vector<8x32xf32>
    %145 = tpu.matmul %144, %143, %cst_39 {dimension_numbers = #tpu.dot_dimension_numbers<[1], [0], [0], [1], [0, 0, 1, 1], [], []>} : vector<8x32xbf16>, vector<32x32xbf16>, vector<8x32xf32> -> vector<8x32xf32>
    %c0_40 = arith.constant 0 : index
    %c0_41 = arith.constant 0 : index
    %146 = vector.load %arg12[%c0_40, %c0_41] : memref<1x32xf32, #tpu.memory_space<vmem>>, vector<1x32xf32>
    %147 = vector.broadcast %146 : vector<1x32xf32> to vector<8x32xf32>
    %148 = arith.addf %145, %147 : vector<8x32xf32>
    %149 = vector.broadcast %4 : vector<8x1xf32> to vector<8x32xf32>
    %150 = arith.mulf %148, %149 : vector<8x32xf32>
    %151 = arith.addf %2, %150 : vector<8x32xf32>
    %152 = arith.truncf %151 : vector<8x32xf32> to vector<8x32xbf16>
    %c0_42 = arith.constant 0 : index
    %c0_43 = arith.constant 0 : index
    %c0_44 = arith.constant 0 : index
    %153 = vector.load %arg13[%c0_42, %c0_43, %c0_44] : memref<1x8x32xbf16, #tpu.memory_space<vmem>>, vector<1x8x32xbf16>
    %154 = vector.shape_cast %153 : vector<1x8x32xbf16> to vector<8x32xbf16>
    %155 = vector.shape_cast %152 : vector<8x32xbf16> to vector<1x8x32xbf16>
    tpu.vector_store %arg13[%c0_42, %c0_43, %c0_44], %155 {strides = array<i32>} : memref<1x8x32xbf16, #tpu.memory_space<vmem>>, vector<1x8x32xbf16>,
    return
  }
  func.func @transform_0(%arg0: i32) -> (i32, i32, i32) {
    %c0_i32 = arith.constant 0 : i32
    %c0_i32_0 = arith.constant 0 : i32
    %c0_i32_1 = arith.constant 0 : i32
    return %arg0, %c0_i32, %c0_i32_0 : i32, i32, i32
  }
  func.func @transform_1(%arg0: i32) -> (i32, i32, i32) {
    %c0_i32 = arith.constant 0 : i32
    %c0_i32_0 = arith.constant 0 : i32
    %c0_i32_1 = arith.constant 0 : i32
    return %arg0, %c0_i32, %c0_i32_0 : i32, i32, i32
  }
  func.func @transform_2(%arg0: i32) -> (i32, i32) {
    %c0_i32 = arith.constant 0 : i32
    %c0_i32_0 = arith.constant 0 : i32
    %c0_i32_1 = arith.constant 0 : i32
    return %c0_i32, %c0_i32_0 : i32, i32
  }
  func.func @transform_3(%arg0: i32) -> (i32, i32) {
    %c0_i32 = arith.constant 0 : i32
    %c0_i32_0 = arith.constant 0 : i32
    %c0_i32_1 = arith.constant 0 : i32
    return %c0_i32, %c0_i32_0 : i32, i32
  }
  func.func @transform_4(%arg0: i32) -> (i32, i32) {
    %c0_i32 = arith.constant 0 : i32
    %c0_i32_0 = arith.constant 0 : i32
    %c0_i32_1 = arith.constant 0 : i32
    return %c0_i32, %c0_i32_0 : i32, i32
  }
  func.func @transform_5(%arg0: i32) -> (i32, i32) {
    %c0_i32 = arith.constant 0 : i32
    %c0_i32_0 = arith.constant 0 : i32
    %c0_i32_1 = arith.constant 0 : i32
    return %c0_i32, %c0_i32_0 : i32, i32
  }
  func.func @transform_6(%arg0: i32) -> (i32, i32) {
    %c0_i32 = arith.constant 0 : i32
    %c0_i32_0 = arith.constant 0 : i32
    %c0_i32_1 = arith.constant 0 : i32
    return %c0_i32, %c0_i32_0 : i32, i32
  }
  func.func @transform_7(%arg0: i32) -> (i32, i32) {
    %c0_i32 = arith.constant 0 : i32
    %c0_i32_0 = arith.constant 0 : i32
    %c0_i32_1 = arith.constant 0 : i32
    return %c0_i32, %c0_i32_0 : i32, i32
  }
  func.func @transform_8(%arg0: i32) -> (i32, i32) {
    %c0_i32 = arith.constant 0 : i32
    %c0_i32_0 = arith.constant 0 : i32
    %c0_i32_1 = arith.constant 0 : i32
    return %c0_i32, %c0_i32_0 : i32, i32
  }
  func.func @transform_9(%arg0: i32) -> (i32, i32) {
    %c0_i32 = arith.constant 0 : i32
    %c0_i32_0 = arith.constant 0 : i32
    %c0_i32_1 = arith.constant 0 : i32
    return %c0_i32, %c0_i32_0 : i32, i32
  }
  func.func @transform_10(%arg0: i32) -> (i32, i32) {
    %c0_i32 = arith.constant 0 : i32
    %c0_i32_0 = arith.constant 0 : i32
    %c0_i32_1 = arith.constant 0 : i32
    return %c0_i32, %c0_i32_0 : i32, i32
  }
  func.func @transform_11(%arg0: i32) -> (i32, i32) {
    %c0_i32 = arith.constant 0 : i32
    %c0_i32_0 = arith.constant 0 : i32
    %c0_i32_1 = arith.constant 0 : i32
    return %c0_i32, %c0_i32_0 : i32, i32
  }
  func.func @transform_12(%arg0: i32) -> (i32, i32, i32) {
    %c0_i32 = arith.constant 0 : i32
    %c0_i32_0 = arith.constant 0 : i32
    %c0_i32_1 = arith.constant 0 : i32
    return %arg0, %c0_i32, %c0_i32_0 : i32, i32, i32
  }
}

module attributes {stable_mosaic.version = 11 : i64} {
  func.func @_ffn_module_kernel(%arg0: i32, %arg1: memref<16x32xbf16, #tpu.memory_space<vmem>>, %arg2: memref<1x32xf32, #tpu.memory_space<vmem>>, %arg3: memref<1x32xf32, #tpu.memory_space<vmem>>, %arg4: memref<32x64xbf16, #tpu.memory_space<vmem>>, %arg5: memref<1x64xf32, #tpu.memory_space<vmem>>, %arg6: memref<64x32xbf16, #tpu.memory_space<vmem>>, %arg7: memref<1x32xf32, #tpu.memory_space<vmem>>, %arg8: memref<1x32xf32, #tpu.memory_space<vmem>>, %arg9: memref<1x32xf32, #tpu.memory_space<vmem>>, %arg10: memref<16x32xbf16, #tpu.memory_space<vmem>>) attributes {dimension_semantics = [#tpu.dimension_semantics<parallel>], iteration_bounds = array<i64: 1>, scalar_prefetch = 0 : i64, scratch_operands = 0 : i64, tpu.core_type = #tpu.core_type<tc>, window_params = [{transform_indices = @transform_0, window_bounds = array<i64: 16, 32>}, {pipeline_mode = #tpu.pipeline_mode<synchronous>, transform_indices = @transform_1, window_bounds = array<i64: 1, 32>}, {pipeline_mode = #tpu.pipeline_mode<synchronous>, transform_indices = @transform_2, window_bounds = array<i64: 1, 32>}, {pipeline_mode = #tpu.pipeline_mode<synchronous>, transform_indices = @transform_3, window_bounds = array<i64: 32, 64>}, {pipeline_mode = #tpu.pipeline_mode<synchronous>, transform_indices = @transform_4, window_bounds = array<i64: 1, 64>}, {pipeline_mode = #tpu.pipeline_mode<synchronous>, transform_indices = @transform_5, window_bounds = array<i64: 64, 32>}, {pipeline_mode = #tpu.pipeline_mode<synchronous>, transform_indices = @transform_6, window_bounds = array<i64: 1, 32>}, {pipeline_mode = #tpu.pipeline_mode<synchronous>, transform_indices = @transform_7, window_bounds = array<i64: 1, 32>}, {pipeline_mode = #tpu.pipeline_mode<synchronous>, transform_indices = @transform_8, window_bounds = array<i64: 1, 32>}, {transform_indices = @transform_9, window_bounds = array<i64: 16, 32>}]} {
    %c0 = arith.constant 0 : index
    %c0_0 = arith.constant 0 : index
    %0 = vector.load %arg1[%c0, %c0_0] : memref<16x32xbf16, #tpu.memory_space<vmem>>, vector<16x32xbf16>
    %1 = arith.extf %0 : vector<16x32xbf16> to vector<16x32xf32>
    %c0_1 = arith.constant 0 : index
    %c0_2 = arith.constant 0 : index
    %2 = vector.load %arg2[%c0_1, %c0_2] : memref<1x32xf32, #tpu.memory_space<vmem>>, vector<1x32xf32>
    %c0_3 = arith.constant 0 : index
    %c0_4 = arith.constant 0 : index
    %3 = vector.load %arg3[%c0_3, %c0_4] : memref<1x32xf32, #tpu.memory_space<vmem>>, vector<1x32xf32>
    %cst = arith.constant dense<0.000000e+00> : vector<16xf32>
    %4 = vector.multi_reduction <add>, %1, %cst [1] : vector<16x32xf32> to vector<16xf32>
    %5 = vector.shape_cast %4 : vector<16xf32> to vector<16x1xf32>
    %cst_5 = arith.constant 3.200000e+01 : f32
    %6 = vector.broadcast %cst_5 : f32 to vector<16x1xf32>
    %7 = arith.divf %5, %6 : vector<16x1xf32>
    %8 = vector.broadcast %7 : vector<16x1xf32> to vector<16x32xf32>
    %9 = arith.subf %1, %8 : vector<16x32xf32>
    %10 = arith.mulf %9, %9 : vector<16x32xf32>
    %cst_6 = arith.constant dense<0.000000e+00> : vector<16xf32>
    %11 = vector.multi_reduction <add>, %10, %cst_6 [1] : vector<16x32xf32> to vector<16xf32>
    %12 = vector.shape_cast %11 : vector<16xf32> to vector<16x1xf32>
    %cst_7 = arith.constant 3.200000e+01 : f32
    %13 = vector.broadcast %cst_7 : f32 to vector<16x1xf32>
    %14 = arith.divf %12, %13 : vector<16x1xf32>
    %15 = vector.broadcast %7 : vector<16x1xf32> to vector<16x32xf32>
    %16 = arith.subf %1, %15 : vector<16x32xf32>
    %cst_8 = arith.constant 9.99999974E-6 : f32
    %17 = vector.broadcast %cst_8 : f32 to vector<16x1xf32>
    %18 = arith.addf %14, %17 : vector<16x1xf32>
    %19 = math.rsqrt %18 : vector<16x1xf32>
    %20 = vector.broadcast %19 : vector<16x1xf32> to vector<16x32xf32>
    %21 = arith.mulf %16, %20 : vector<16x32xf32>
    %22 = vector.broadcast %2 : vector<1x32xf32> to vector<16x32xf32>
    %23 = arith.mulf %21, %22 : vector<16x32xf32>
    %24 = vector.broadcast %3 : vector<1x32xf32> to vector<16x32xf32>
    %25 = arith.addf %23, %24 : vector<16x32xf32>
    %c0_9 = arith.constant 0 : index
    %c0_10 = arith.constant 0 : index
    %26 = vector.load %arg4[%c0_9, %c0_10] : memref<32x64xbf16, #tpu.memory_space<vmem>>, vector<32x64xbf16>
    %27 = arith.truncf %25 : vector<16x32xf32> to vector<16x32xbf16>
    %cst_11 = arith.constant dense<0.000000e+00> : vector<16x64xf32>
    %28 = tpu.matmul %27, %26, %cst_11 {dimension_numbers = #tpu.dot_dimension_numbers<[1], [0], [0], [1], [0, 0, 1, 1], [], []>} : vector<16x32xbf16>, vector<32x64xbf16>, vector<16x64xf32> -> vector<16x64xf32>
    %c0_12 = arith.constant 0 : index
    %c0_13 = arith.constant 0 : index
    %29 = vector.load %arg5[%c0_12, %c0_13] : memref<1x64xf32, #tpu.memory_space<vmem>>, vector<1x64xf32>
    %30 = vector.broadcast %29 : vector<1x64xf32> to vector<16x64xf32>
    %31 = arith.addf %28, %30 : vector<16x64xf32>
    %32 = arith.negf %31 : vector<16x64xf32>
    %33 = math.exp %32 : vector<16x64xf32>
    %cst_14 = arith.constant 1.000000e+00 : f32
    %34 = vector.broadcast %cst_14 : f32 to vector<16x64xf32>
    %35 = arith.addf %34, %33 : vector<16x64xf32>
    %36 = arith.divf %34, %35 : vector<16x64xf32>
    %37 = arith.mulf %31, %36 : vector<16x64xf32>
    %c0_15 = arith.constant 0 : index
    %c0_16 = arith.constant 0 : index
    %38 = vector.load %arg6[%c0_15, %c0_16] : memref<64x32xbf16, #tpu.memory_space<vmem>>, vector<64x32xbf16>
    %39 = arith.truncf %37 : vector<16x64xf32> to vector<16x64xbf16>
    %cst_17 = arith.constant dense<0.000000e+00> : vector<16x32xf32>
    %40 = tpu.matmul %39, %38, %cst_17 {dimension_numbers = #tpu.dot_dimension_numbers<[1], [0], [0], [1], [0, 0, 1, 1], [], []>} : vector<16x64xbf16>, vector<64x32xbf16>, vector<16x32xf32> -> vector<16x32xf32>
    %c0_18 = arith.constant 0 : index
    %c0_19 = arith.constant 0 : index
    %41 = vector.load %arg7[%c0_18, %c0_19] : memref<1x32xf32, #tpu.memory_space<vmem>>, vector<1x32xf32>
    %42 = vector.broadcast %41 : vector<1x32xf32> to vector<16x32xf32>
    %43 = arith.addf %40, %42 : vector<16x32xf32>
    %cst_20 = arith.constant 5.000000e-01 : f32
    %44 = vector.broadcast %cst_20 : f32 to vector<16x32xf32>
    %45 = arith.mulf %44, %43 : vector<16x32xf32>
    %46 = arith.addf %1, %45 : vector<16x32xf32>
    %c0_21 = arith.constant 0 : index
    %c0_22 = arith.constant 0 : index
    %47 = vector.load %arg8[%c0_21, %c0_22] : memref<1x32xf32, #tpu.memory_space<vmem>>, vector<1x32xf32>
    %c0_23 = arith.constant 0 : index
    %c0_24 = arith.constant 0 : index
    %48 = vector.load %arg9[%c0_23, %c0_24] : memref<1x32xf32, #tpu.memory_space<vmem>>, vector<1x32xf32>
    %cst_25 = arith.constant dense<0.000000e+00> : vector<16xf32>
    %49 = vector.multi_reduction <add>, %46, %cst_25 [1] : vector<16x32xf32> to vector<16xf32>
    %50 = vector.shape_cast %49 : vector<16xf32> to vector<16x1xf32>
    %cst_26 = arith.constant 3.200000e+01 : f32
    %51 = vector.broadcast %cst_26 : f32 to vector<16x1xf32>
    %52 = arith.divf %50, %51 : vector<16x1xf32>
    %53 = vector.broadcast %52 : vector<16x1xf32> to vector<16x32xf32>
    %54 = arith.subf %46, %53 : vector<16x32xf32>
    %55 = arith.mulf %54, %54 : vector<16x32xf32>
    %cst_27 = arith.constant dense<0.000000e+00> : vector<16xf32>
    %56 = vector.multi_reduction <add>, %55, %cst_27 [1] : vector<16x32xf32> to vector<16xf32>
    %57 = vector.shape_cast %56 : vector<16xf32> to vector<16x1xf32>
    %cst_28 = arith.constant 3.200000e+01 : f32
    %58 = vector.broadcast %cst_28 : f32 to vector<16x1xf32>
    %59 = arith.divf %57, %58 : vector<16x1xf32>
    %60 = vector.broadcast %52 : vector<16x1xf32> to vector<16x32xf32>
    %61 = arith.subf %46, %60 : vector<16x32xf32>
    %cst_29 = arith.constant 9.99999974E-6 : f32
    %62 = vector.broadcast %cst_29 : f32 to vector<16x1xf32>
    %63 = arith.addf %59, %62 : vector<16x1xf32>
    %64 = math.rsqrt %63 : vector<16x1xf32>
    %65 = vector.broadcast %64 : vector<16x1xf32> to vector<16x32xf32>
    %66 = arith.mulf %61, %65 : vector<16x32xf32>
    %67 = vector.broadcast %47 : vector<1x32xf32> to vector<16x32xf32>
    %68 = arith.mulf %66, %67 : vector<16x32xf32>
    %69 = vector.broadcast %48 : vector<1x32xf32> to vector<16x32xf32>
    %70 = arith.addf %68, %69 : vector<16x32xf32>
    %71 = arith.truncf %70 : vector<16x32xf32> to vector<16x32xbf16>
    %c0_30 = arith.constant 0 : index
    %c0_31 = arith.constant 0 : index
    %72 = vector.load %arg10[%c0_30, %c0_31] : memref<16x32xbf16, #tpu.memory_space<vmem>>, vector<16x32xbf16>
    tpu.vector_store %arg10[%c0_30, %c0_31], %71 {strides = array<i32>} : memref<16x32xbf16, #tpu.memory_space<vmem>>, vector<16x32xbf16>,
    return
  }
  func.func @transform_0(%arg0: i32) -> (i32, i32) {
    %c0_i32 = arith.constant 0 : i32
    %c0_i32_0 = arith.constant 0 : i32
    return %arg0, %c0_i32 : i32, i32
  }
  func.func @transform_1(%arg0: i32) -> (i32, i32) {
    %c0_i32 = arith.constant 0 : i32
    %c0_i32_0 = arith.constant 0 : i32
    %c0_i32_1 = arith.constant 0 : i32
    return %c0_i32, %c0_i32_0 : i32, i32
  }
  func.func @transform_2(%arg0: i32) -> (i32, i32) {
    %c0_i32 = arith.constant 0 : i32
    %c0_i32_0 = arith.constant 0 : i32
    %c0_i32_1 = arith.constant 0 : i32
    return %c0_i32, %c0_i32_0 : i32, i32
  }
  func.func @transform_3(%arg0: i32) -> (i32, i32) {
    %c0_i32 = arith.constant 0 : i32
    %c0_i32_0 = arith.constant 0 : i32
    %c0_i32_1 = arith.constant 0 : i32
    return %c0_i32, %c0_i32_0 : i32, i32
  }
  func.func @transform_4(%arg0: i32) -> (i32, i32) {
    %c0_i32 = arith.constant 0 : i32
    %c0_i32_0 = arith.constant 0 : i32
    %c0_i32_1 = arith.constant 0 : i32
    return %c0_i32, %c0_i32_0 : i32, i32
  }
  func.func @transform_5(%arg0: i32) -> (i32, i32) {
    %c0_i32 = arith.constant 0 : i32
    %c0_i32_0 = arith.constant 0 : i32
    %c0_i32_1 = arith.constant 0 : i32
    return %c0_i32, %c0_i32_0 : i32, i32
  }
  func.func @transform_6(%arg0: i32) -> (i32, i32) {
    %c0_i32 = arith.constant 0 : i32
    %c0_i32_0 = arith.constant 0 : i32
    %c0_i32_1 = arith.constant 0 : i32
    return %c0_i32, %c0_i32_0 : i32, i32
  }
  func.func @transform_7(%arg0: i32) -> (i32, i32) {
    %c0_i32 = arith.constant 0 : i32
    %c0_i32_0 = arith.constant 0 : i32
    %c0_i32_1 = arith.constant 0 : i32
    return %c0_i32, %c0_i32_0 : i32, i32
  }
  func.func @transform_8(%arg0: i32) -> (i32, i32) {
    %c0_i32 = arith.constant 0 : i32
    %c0_i32_0 = arith.constant 0 : i32
    %c0_i32_1 = arith.constant 0 : i32
    return %c0_i32, %c0_i32_0 : i32, i32
  }
  func.func @transform_9(%arg0: i32) -> (i32, i32) {
    %c0_i32 = arith.constant 0 : i32
    %c0_i32_0 = arith.constant 0 : i32
    return %arg0, %c0_i32 : i32, i32
  }
}

module attributes {stable_mosaic.version = 11 : i64} {
  func.func @_layernorm_kernel(%arg0: i32, %arg1: memref<14x32xbf16, #tpu.memory_space<vmem>>, %arg2: memref<1x32xf32, #tpu.memory_space<vmem>>, %arg3: memref<1x32xf32, #tpu.memory_space<vmem>>, %arg4: memref<14x32xf32, #tpu.memory_space<vmem>>) attributes {dimension_semantics = [#tpu.dimension_semantics<parallel>], iteration_bounds = array<i64: 1>, scalar_prefetch = 0 : i64, scratch_operands = 0 : i64, tpu.core_type = #tpu.core_type<tc>, window_params = [{transform_indices = @transform_0, window_bounds = array<i64: 14, 32>}, {pipeline_mode = #tpu.pipeline_mode<synchronous>, transform_indices = @transform_1, window_bounds = array<i64: 1, 32>}, {pipeline_mode = #tpu.pipeline_mode<synchronous>, transform_indices = @transform_2, window_bounds = array<i64: 1, 32>}, {transform_indices = @transform_3, window_bounds = array<i64: 14, 32>}]} {
    %c0 = arith.constant 0 : index
    %c0_0 = arith.constant 0 : index
    %0 = vector.load %arg1[%c0, %c0_0] : memref<14x32xbf16, #tpu.memory_space<vmem>>, vector<14x32xbf16>
    %1 = arith.extf %0 : vector<14x32xbf16> to vector<14x32xf32>
    %c0_1 = arith.constant 0 : index
    %c0_2 = arith.constant 0 : index
    %2 = vector.load %arg2[%c0_1, %c0_2] : memref<1x32xf32, #tpu.memory_space<vmem>>, vector<1x32xf32>
    %c0_3 = arith.constant 0 : index
    %c0_4 = arith.constant 0 : index
    %3 = vector.load %arg3[%c0_3, %c0_4] : memref<1x32xf32, #tpu.memory_space<vmem>>, vector<1x32xf32>
    %cst = arith.constant dense<0.000000e+00> : vector<14xf32>
    %4 = vector.multi_reduction <add>, %1, %cst [1] : vector<14x32xf32> to vector<14xf32>
    %5 = vector.shape_cast %4 : vector<14xf32> to vector<14x1xf32>
    %cst_5 = arith.constant 3.200000e+01 : f32
    %6 = vector.broadcast %cst_5 : f32 to vector<14x1xf32>
    %7 = arith.divf %5, %6 : vector<14x1xf32>
    %8 = vector.broadcast %7 : vector<14x1xf32> to vector<14x32xf32>
    %9 = arith.subf %1, %8 : vector<14x32xf32>
    %10 = arith.mulf %9, %9 : vector<14x32xf32>
    %cst_6 = arith.constant dense<0.000000e+00> : vector<14xf32>
    %11 = vector.multi_reduction <add>, %10, %cst_6 [1] : vector<14x32xf32> to vector<14xf32>
    %12 = vector.shape_cast %11 : vector<14xf32> to vector<14x1xf32>
    %cst_7 = arith.constant 3.200000e+01 : f32
    %13 = vector.broadcast %cst_7 : f32 to vector<14x1xf32>
    %14 = arith.divf %12, %13 : vector<14x1xf32>
    %15 = vector.broadcast %7 : vector<14x1xf32> to vector<14x32xf32>
    %16 = arith.subf %1, %15 : vector<14x32xf32>
    %cst_8 = arith.constant 9.99999974E-6 : f32
    %17 = vector.broadcast %cst_8 : f32 to vector<14x1xf32>
    %18 = arith.addf %14, %17 : vector<14x1xf32>
    %19 = math.rsqrt %18 : vector<14x1xf32>
    %20 = vector.broadcast %19 : vector<14x1xf32> to vector<14x32xf32>
    %21 = arith.mulf %16, %20 : vector<14x32xf32>
    %22 = vector.broadcast %2 : vector<1x32xf32> to vector<14x32xf32>
    %23 = arith.mulf %21, %22 : vector<14x32xf32>
    %24 = vector.broadcast %3 : vector<1x32xf32> to vector<14x32xf32>
    %25 = arith.addf %23, %24 : vector<14x32xf32>
    %c0_9 = arith.constant 0 : index
    %c0_10 = arith.constant 0 : index
    %26 = vector.load %arg4[%c0_9, %c0_10] : memref<14x32xf32, #tpu.memory_space<vmem>>, vector<14x32xf32>
    tpu.vector_store %arg4[%c0_9, %c0_10], %25 {strides = array<i32>} : memref<14x32xf32, #tpu.memory_space<vmem>>, vector<14x32xf32>,
    return
  }
  func.func @transform_0(%arg0: i32) -> (i32, i32) {
    %c0_i32 = arith.constant 0 : i32
    %c0_i32_0 = arith.constant 0 : i32
    return %arg0, %c0_i32 : i32, i32
  }
  func.func @transform_1(%arg0: i32) -> (i32, i32) {
    %c0_i32 = arith.constant 0 : i32
    %c0_i32_0 = arith.constant 0 : i32
    %c0_i32_1 = arith.constant 0 : i32
    return %c0_i32, %c0_i32_0 : i32, i32
  }
  func.func @transform_2(%arg0: i32) -> (i32, i32) {
    %c0_i32 = arith.constant 0 : i32
    %c0_i32_0 = arith.constant 0 : i32
    %c0_i32_1 = arith.constant 0 : i32
    return %c0_i32, %c0_i32_0 : i32, i32
  }
  func.func @transform_3(%arg0: i32) -> (i32, i32) {
    %c0_i32 = arith.constant 0 : i32
    %c0_i32_0 = arith.constant 0 : i32
    return %arg0, %c0_i32 : i32, i32
  }
}

</mosaic_0001>

<bundles_post_ra>
// kernel: conformer_encoder_forward.15
= control target key start
LH: loop header
LB: loop body
LE: loop exit
PB: predicated region body
PF: predicated region fallthrough
CT: control target
= control target key end

     0   :  { %v183_v0 = vmov 0.0   ;;  %vm184_vm0 = vmmov 0   ;;  %vm77_vm1 = vcmask 785408   ;;  %vm130_vm2 = vcmask 257024   ;;  %s235_s1 = inlined_call_operand.vmem [shape: bf16[96,32], index: 1, kind: input, shape index: {}]   ;;  %s236_s0 = inlined_call_operand.vmem [shape: bf16[14,96], index: 0, kind: input, shape index: {}]   ;;  %s237_s2 = inlined_call_operand.vmem [shape: f32[1,32], index: 2, kind: input, shape index: {}]   ;;  %s238_s3 = inlined_call_operand.vmem [shape: bf16[14,32], index: 3, kind: output, shape index: {}]  }
   0x1   :  { %158 = vmatprep.subr.bf16.mxu0 %v183_v0  ;;  %v176_v1 = vld [vmem:[%s235_s1] sm:$0xff]   ;;  %170 = vmatprep.mubr.msk.bf16.mxu0 %vm184_vm0, %v183_v0  ;;  %v177_v2 = vld [vmem:[%s235_s1 + $0x8] sm:$0xff]   ;;  %v178_v3 = vld [vmem:[%s235_s1 + $0x10] sm:$0xff]   ;;  %vm132_vm3 = vcmask 256000  }
   0x2   :  { %159 = vmatpush3.bf16.msra.mxu0 %v176_v1  ;;  %v179_v4 = vld [vmem:[%s235_s1 + $0x18] sm:$0xff]   ;;  %v180_v5 = vld [vmem:[%s235_s1 + $0x20] sm:$0xff]   ;;  %v181_v6 = vld [vmem:[%s235_s1 + $0x28] sm:$0xff]  }
   0x3   :  { %160 = vmatprep.subr.bf16.mxu0 %v183_v0  ;;  %v182_v7 = vld [vmem:[%s236_s0] sm:$0x7f]  }
   0x4   :  { %v138_v8 = vld [vmem:[%s237_s2] ss:$0 sm:$0xff] }
   0x6   :  { %161 = vmatpush3.bf16.msra.mxu0 %v177_v2 }
   0x7   :  { %162 = vmatprep.subr.bf16.mxu0 %v183_v0 }
   0xa   :  { %163 = vmatpush3.bf16.msra.mxu0 %v178_v3 }
   0xb   :  { %164 = vmatprep.subr.bf16.mxu0 %v183_v0 }
   0xe   :  { %165 = vmatpush3.bf16.msra.mxu0 %v179_v4 }
   0xf   :  { %166 = vmatprep.subr.bf16.mxu0 %v183_v0 }
  0x12   :  { %167 = vmatpush3.bf16.msra.mxu0 %v180_v5 }
  0x13   :  { %168 = vmatprep.subr.bf16.mxu0 %v183_v0 }
  0x16   :  { %169 = vmatpush3.bf16.msra.mxu0 %v181_v6 }
  0x19   :  { %171 = vmatmul.mubr.msk.bf16.vlgmr.msra.gmra.mrb[0].mxu0 %vm77_vm1, %v182_v7 }
  0xec   :  { %v115_v9 = vpop.f32.mrb[0].mxu0 }
  0xed   :  { %v116_v10 = vadd.f32 %v138_v8, %v115_v9  ;;  %v172_v11 = vpop.f32.mrb[1].mxu0 }
  0xee   :  { %v118_v12 = vpop.f32.mrb[2].mxu0 }
  0xef   :  { %v149_v13 = vpack.c.bf16 %v116_v10, %v116_v10  ;;  %v119_v14 = vadd.f32 %v138_v8, %v118_v12  ;;  %v173_v15 = vpop.f32.mrb[3].mxu0 }
  0xf1   :  { %131 = vst.msk [vmem:[%s238_s3] sm:$0xf] %vm130_vm2, %v149_v13  ;;  %v150_v16 = vpack.c.bf16 %v119_v14, %v119_v14 }
  0xf3   :  { %133 = vst.msk [vmem:[%s238_s3 + $0x4] sm:$0x7] %vm132_vm3, %v150_v16 }

// kernel: conformer_encoder_forward.13
= control target key start
LH: loop header
LB: loop body
LE: loop exit
PB: predicated region body
PF: predicated region fallthrough
CT: control target
= control target key end

     0   :  { %vm113_vm0 = vcmask 1043456   ;;  %vm114_vm1 = vcmask 1044480   ;;  %v552_v1 = vmov 65535   ;;  %vm70_vm2 = vcmask 72704   ;;  %s810_s1 = inlined_call_operand.vmem [shape: bf16[9,32], index: 1, kind: input, shape index: {}]   ;;  %s811_s0 = inlined_call_operand.vmem [shape: f32[210,9], index: 0, kind: input, shape index: {}]   ;;  %s812_s2 = inlined_call_operand.vmem [shape: f32[1,32], index: 2, kind: input, shape index: {}]   ;;  %s813_s3 = inlined_call_operand.vmem [shape: bf16[210,32], index: 3, kind: output, shape index: {}]  }
   0x1   :  { %v551_v0 = vld [vmem:[%s810_s1] sm:$0x1f]   ;;  %v115_v2 = vsel %vm113_vm0, 4294967295, %v552_v1  ;;  %v16_v4 = vld [vmem:[%s811_s0 + $0x8] sm:$0xff]  ;;  %v17_v5 = vld [vmem:[%s811_s0 + $0x10] sm:$0xff]  ;;  %vm400_vm3 = vcmask 257024  }
   0x2   :  { %v15_v3 = vld [vmem:[%s811_s0] sm:$0xff]  ;;  %v116_v6 = vsel %vm114_vm1, %v115_v2, 0  ;;  %v18_v8 = vld [vmem:[%s811_s0 + $0x18] sm:$0xff]  ;;  %v32_v10 = vld [vmem:[%s811_s0 + $0x88] sm:$0xff]  ;;  %vm427_vm4 = vcmask 253952  }
   0x3   :  { %v44_v7 = vpack.c.bf16 %v16_v4, %v15_v3  ;;  %v31_v9 = vld [vmem:[%s811_s0 + $0x80] sm:$0xff]  ;;  %v118_v11 = vand.u32 %v551_v0, %v116_v6  ;;  %v33_v13 = vld [vmem:[%s811_s0 + $0x90] sm:$0xff]  ;;  %v34_v14 = vld [vmem:[%s811_s0 + $0x98] sm:$0xff]  ;;  %v45_v17 = vpack.c.bf16 %v18_v8, %v17_v5 }
   0x4   :  { %v52_v12 = vpack.c.bf16 %v32_v10, %v31_v9  ;;  %v19_v15 = vld [vmem:[%s811_s0 + $0x20] sm:$0xff]  ;;  %v20_v16 = vld [vmem:[%s811_s0 + $0x28] sm:$0xff]  ;;  %v53_v18 = vpack.c.bf16 %v34_v14, %v33_v13  ;;  %v21_v23 = vld [vmem:[%s811_s0 + $0x30] sm:$0xff] }
   0x5   :  { %520 = vmatprep.mubr.msk.bf16.mxu0 %vm70_vm2, %v44_v7  ;;  %518 = vmatprep.subr.bf16.mxu0 %v118_v11  ;;  %v35_v19 = vld [vmem:[%s811_s0 + $0xa0] sm:$0xff]  ;;  %v36_v20 = vld [vmem:[%s811_s0 + $0xa8] sm:$0xff]  ;;  %v46_v21 = vpack.c.bf16 %v20_v16, %v19_v15  ;;  %v22_v24 = vld [vmem:[%s811_s0 + $0x38] sm:$0xff] }
   0x6   :  { %548 = vmatprep.subr.bf16.mxu1 %v118_v11  ;;  %519 = vmatpush3.bf16.msra.mxu0 %v118_v11  ;;  %v54_v22 = vpack.c.bf16 %v36_v20, %v35_v19  ;;  %v37_v25 = vld [vmem:[%s811_s0 + $0xb0] sm:$0xff]  ;;  %v38_v26 = vld [vmem:[%s811_s0 + $0xb8] sm:$0xff]  ;;  %v23_v27 = vld [vmem:[%s811_s0 + $0x40] sm:$0xff]  ;;  %v47_v31 = vpack.c.bf16 %v22_v24, %v21_v23 }
   0x7   :  { %549 = vmatpush3.bf16.msra.mxu1 %v118_v11  ;;  %536 = vmatprep.mubr.msk.bf16.mxu1 %vm70_vm2, %v52_v12  ;;  %v24_v28 = vld [vmem:[%s811_s0 + $0x48] sm:$0xff]  ;;  %v39_v29 = vld [vmem:[%s811_s0 + $0xc0] sm:$0xff]  ;;  %v55_v32 = vpack.c.bf16 %v38_v26, %v37_v25  ;;  %v25_v35 = vld [vmem:[%s811_s0 + $0x50] sm:$0xff] }
   0x8   :  { %v40_v30 = vld [vmem:[%s811_s0 + $0xc8] sm:$0xff]  ;;  %v48_v33 = vpack.c.bf16 %v24_v28, %v23_v27  ;;  %v26_v36 = vld [vmem:[%s811_s0 + $0x58] sm:$0xff]  ;;  %v41_v37 = vld [vmem:[%s811_s0 + $0xd0] sm:$0x3] }
   0x9   :  { %521 = vmatmul.mubr.msk.bf16.vlgmr.msra.gmra.mrb[0].mxu0 %vm70_vm2, %v45_v17  ;;  %v56_v34 = vpack.c.bf16 %v40_v30, %v39_v29  ;;  %v27_v38 = vld [vmem:[%s811_s0 + $0x60] sm:$0xff]  ;;  %v28_v39 = vld [vmem:[%s811_s0 + $0x68] sm:$0xff]  ;;  %v49_v40 = vpack.c.bf16 %v26_v36, %v25_v35  ;;  %v57_v41 = vpack.c.bf16 %v41_v37, %v41_v37  ;;  %v29_v43 = vld [vmem:[%s811_s0 + $0x70] sm:$0xff] }
   0xa   :  { %537 = vmatmul.mubr.msk.bf16.vlgmr.msra.gmra.mrb[0].mxu1 %vm70_vm2, %v53_v18  ;;  %524 = vmatprep.mubr.msk.bf16.mxu0 %vm70_vm2, %v46_v21  ;;  %v50_v42 = vpack.c.bf16 %v28_v39, %v27_v38  ;;  %v30_v44 = vld [vmem:[%s811_s0 + $0x78] sm:$0xff]  ;;  %v674_v46 = vld [vmem:[%s812_s2] ss:$0 sm:$0xff] }
   0xb   :  { %540 = vmatprep.mubr.msk.bf16.mxu1 %vm70_vm2, %v54_v22  ;;  %v51_v45 = vpack.c.bf16 %v30_v44, %v29_v43 }
  0x11   :  { %525 = vmatmul.mubr.msk.bf16.gmra.mrb[4].mxu0 %vm70_vm2, %v47_v31 }
  0x12   :  { %541 = vmatmul.mubr.msk.bf16.gmra.mrb[4].mxu1 %vm70_vm2, %v55_v32  ;;  %528 = vmatprep.mubr.msk.bf16.mxu0 %vm70_vm2, %v48_v33 }
  0x13   :  { %544 = vmatprep.mubr.msk.bf16.mxu1 %vm70_vm2, %v56_v34 }
  0x19   :  { %529 = vmatmul.mubr.msk.bf16.gmra.mrb[8].mxu0 %vm70_vm2, %v49_v40 }
  0x1a   :  { %545 = vmatmul.mubr.msk.bf16.gmra.mrb[8].mxu1 %vm70_vm2, %v57_v41  ;;  %532 = vmatprep.mubr.msk.bf16.mxu0 %vm70_vm2, %v50_v42 }
  0x21   :  { %533 = vmatmul.mubr.msk.bf16.gmra.mrb[12].mxu0 %vm70_vm2, %v51_v45 }
  0xdc   :  { %v522_v47 = vpop.f32.mrb[0].mxu0 }
  0xdd   :  { %v538_v48 = vpop.f32.mrb[0].mxu1  ;;  %v163_v49 = vadd.f32 %v522_v47, %v674_v46  ;;  %v154_v50 = vpop.f32.mrb[1].mxu0 }
  0xde   :  { %v227_v51 = vadd.f32 %v538_v48, %v674_v46  ;;  %v218_v52 = vpop.f32.mrb[1].mxu1  ;;  %v155_v53 = vadd.f32 %v674_v46, %v154_v50  ;;  %v523_v54 = vpop.f32.mrb[2].mxu0 }
  0xdf   :  { %v219_v55 = vadd.f32 %v674_v46, %v218_v52  ;;  %v539_v56 = vpop.f32.mrb[2].mxu1  ;;  %v266_v57 = vmax.f32 %v163_v49, 0.0  ;;  %v166_v58 = vadd.f32 %v523_v54, %v674_v46  ;;  %v157_v59 = vpop.f32.mrb[3].mxu0 }
  0xe0   :  { %v282_v60 = vmax.f32 %v227_v51, 0.0  ;;  %v230_v61 = vadd.f32 %v539_v56, %v674_v46  ;;  %v221_v62 = vpop.f32.mrb[3].mxu1  ;;  %v264_v63 = vmax.f32 %v155_v53, 0.0  ;;  %v158_v0 = vadd.f32 %v674_v46, %v157_v59 }
  0xe1   :  { %v280_v1 = vmax.f32 %v219_v55, 0.0  ;;  %v222_v2 = vadd.f32 %v674_v46, %v221_v62  ;;  %v478_v3 = vpack.c.bf16 %v266_v57, %v266_v57  ;;  %v267_v4 = vmax.f32 %v166_v58, 0.0 }
  0xe2   :  { %v494_v5 = vpack.c.bf16 %v282_v60, %v282_v60  ;;  %v283_v6 = vmax.f32 %v230_v61, 0.0  ;;  %v476_v7 = vpack.c.bf16 %v264_v63, %v264_v63  ;;  %v265_v8 = vmax.f32 %v158_v0, 0.0 }
  0xe3   :  { %v492_v9 = vpack.c.bf16 %v280_v1, %v280_v1  ;;  %v281_v10 = vmax.f32 %v222_v2, 0.0  ;;  %403 = vst.msk [vmem:[%s813_s3 + $0x8] sm:$0xf] %vm400_vm3, %v478_v3  ;;  %v479_v11 = vpack.c.bf16 %v267_v4, %v267_v4 }
  0xe4   :  { %419 = vst.msk [vmem:[%s813_s3 + $0x48] sm:$0xf] %vm400_vm3, %v494_v5  ;;  %v495_v12 = vpack.c.bf16 %v283_v6, %v283_v6  ;;  %401 = vst.msk [vmem:[%s813_s3] sm:$0xf] %vm400_vm3, %v476_v7  ;;  %v477_v13 = vpack.c.bf16 %v265_v8, %v265_v8  ;;  %v526_v14 = vpop.f32.mrb[4].mxu0 }
  0xe5   :  { %417 = vst.msk [vmem:[%s813_s3 + $0x40] sm:$0xf] %vm400_vm3, %v492_v9  ;;  %v493_v15 = vpack.c.bf16 %v281_v10, %v281_v10  ;;  %v542_v16 = vpop.f32.mrb[4].mxu1  ;;  %404 = vst.msk [vmem:[%s813_s3 + $0xc] sm:$0xf] %vm400_vm3, %v479_v11  ;;  %v179_v17 = vadd.f32 %v526_v14, %v674_v46  ;;  %v170_v18 = vpop.f32.mrb[5].mxu0 }
  0xe6   :  { %420 = vst.msk [vmem:[%s813_s3 + $0x4c] sm:$0xf] %vm400_vm3, %v495_v12  ;;  %v243_v19 = vadd.f32 %v542_v16, %v674_v46  ;;  %v234_v20 = vpop.f32.mrb[5].mxu1  ;;  %402 = vst.msk [vmem:[%s813_s3 + $0x4] sm:$0xf] %vm400_vm3, %v477_v13  ;;  %v171_v21 = vadd.f32 %v674_v46, %v170_v18  ;;  %v527_v22 = vpop.f32.mrb[6].mxu0 }
  0xe7   :  { %418 = vst.msk [vmem:[%s813_s3 + $0x44] sm:$0xf] %vm400_vm3, %v493_v15  ;;  %v235_v23 = vadd.f32 %v674_v46, %v234_v20  ;;  %v543_v24 = vpop.f32.mrb[6].mxu1  ;;  %v270_v25 = vmax.f32 %v179_v17, 0.0  ;;  %v182_v26 = vadd.f32 %v527_v22, %v674_v46  ;;  %v173_v27 = vpop.f32.mrb[7].mxu0 }
  0xe8   :  { %v286_v28 = vmax.f32 %v243_v19, 0.0  ;;  %v246_v29 = vadd.f32 %v543_v24, %v674_v46  ;;  %v237_v30 = vpop.f32.mrb[7].mxu1  ;;  %v268_v31 = vmax.f32 %v171_v21, 0.0  ;;  %v174_v32 = vadd.f32 %v674_v46, %v173_v27 }
  0xe9   :  { %v284_v33 = vmax.f32 %v235_v23, 0.0  ;;  %v238_v34 = vadd.f32 %v674_v46, %v237_v30  ;;  %v482_v35 = vpack.c.bf16 %v270_v25, %v270_v25  ;;  %v271_v36 = vmax.f32 %v182_v26, 0.0 }
  0xea   :  { %v498_v37 = vpack.c.bf16 %v286_v28, %v286_v28  ;;  %v287_v38 = vmax.f32 %v246_v29, 0.0  ;;  %v480_v39 = vpack.c.bf16 %v268_v31, %v268_v31  ;;  %v269_v40 = vmax.f32 %v174_v32, 0.0 }
  0xeb   :  { %v496_v41 = vpack.c.bf16 %v284_v33, %v284_v33  ;;  %v285_v42 = vmax.f32 %v238_v34, 0.0  ;;  %407 = vst.msk [vmem:[%s813_s3 + $0x18] sm:$0xf] %vm400_vm3, %v482_v35  ;;  %v483_v43 = vpack.c.bf16 %v271_v36, %v271_v36 }
  0xec   :  { %423 = vst.msk [vmem:[%s813_s3 + $0x58] sm:$0xf] %vm400_vm3, %v498_v37  ;;  %v499_v44 = vpack.c.bf16 %v287_v38, %v287_v38  ;;  %405 = vst.msk [vmem:[%s813_s3 + $0x10] sm:$0xf] %vm400_vm3, %v480_v39  ;;  %v481_v45 = vpack.c.bf16 %v269_v40, %v269_v40  ;;  %v530_v47 = vpop.f32.mrb[8].mxu0 }
  0xed   :  { %421 = vst.msk [vmem:[%s813_s3 + $0x50] sm:$0xf] %vm400_vm3, %v496_v41  ;;  %v497_v48 = vpack.c.bf16 %v285_v42, %v285_v42  ;;  %v546_v49 = vpop.f32.mrb[8].mxu1  ;;  %408 = vst.msk [vmem:[%s813_s3 + $0x1c] sm:$0xf] %vm400_vm3, %v483_v43  ;;  %v195_v50 = vadd.f32 %v530_v47, %v674_v46  ;;  %v186_v51 = vpop.f32.mrb[9].mxu0 }
  0xee   :  { %424 = vst.msk [vmem:[%s813_s3 + $0x5c] sm:$0xf] %vm400_vm3, %v499_v44  ;;  %v259_v52 = vadd.f32 %v546_v49, %v674_v46  ;;  %v250_v53 = vpop.f32.mrb[9].mxu1  ;;  %406 = vst.msk [vmem:[%s813_s3 + $0x14] sm:$0xf] %vm400_vm3, %v481_v45  ;;  %v187_v54 = vadd.f32 %v674_v46, %v186_v51  ;;  %v531_v55 = vpop.f32.mrb[10].mxu0 }
  0xef   :  { %422 = vst.msk [vmem:[%s813_s3 + $0x54] sm:$0xf] %vm400_vm3, %v497_v48  ;;  %v251_v56 = vadd.f32 %v674_v46, %v250_v53  ;;  %v547_v57 = vpop.f32.mrb[10].mxu1  ;;  %v274_v58 = vmax.f32 %v195_v50, 0.0  ;;  %v198_v59 = vadd.f32 %v531_v55, %v674_v46  ;;  %v189_v60 = vpop.f32.mrb[11].mxu0 }
  0xf0   :  { %v290_v61 = vmax.f32 %v259_v52, 0.0  ;;  %v253_v62 = vpop.f32.mrb[11].mxu1  ;;  %v272_v63 = vmax.f32 %v187_v54, 0.0  ;;  %v190_v0 = vadd.f32 %v674_v46, %v189_v60 }
  0xf1   :  { %v288_v1 = vmax.f32 %v251_v56, 0.0  ;;  %v254_v2 = vadd.f32 %v674_v46, %v253_v62  ;;  %v486_v3 = vpack.c.bf16 %v274_v58, %v274_v58  ;;  %v275_v4 = vmax.f32 %v198_v59, 0.0 }
  0xf2   :  { %v502_v5 = vpack.c.bf16 %v290_v61, %v290_v61  ;;  %v484_v6 = vpack.c.bf16 %v272_v63, %v272_v63  ;;  %v273_v7 = vmax.f32 %v190_v0, 0.0 }
  0xf3   :  { %v500_v8 = vpack.c.bf16 %v288_v1, %v288_v1  ;;  %v289_v9 = vmax.f32 %v254_v2, 0.0  ;;  %411 = vst.msk [vmem:[%s813_s3 + $0x28] sm:$0xf] %vm400_vm3, %v486_v3  ;;  %v487_v10 = vpack.c.bf16 %v275_v4, %v275_v4 }
  0xf4   :  { %428 = vst.msk [vmem:[%s813_s3 + $0x68] sm:$0x1] %vm427_vm4, %v502_v5  ;;  %v485_v11 = vpack.c.bf16 %v273_v7, %v273_v7  ;;  %v534_v12 = vpop.f32.mrb[12].mxu0 }
  0xf5   :  { %409 = vst.msk [vmem:[%s813_s3 + $0x20] sm:$0xf] %vm400_vm3, %v484_v6  ;;  %425 = vst.msk [vmem:[%s813_s3 + $0x60] sm:$0xf] %vm400_vm3, %v500_v8  ;;  %v501_v13 = vpack.c.bf16 %v289_v9, %v289_v9  ;;  %v211_v14 = vadd.f32 %v534_v12, %v674_v46  ;;  %v202_v15 = vpop.f32.mrb[13].mxu0 }
  0xf6   :  { %412 = vst.msk [vmem:[%s813_s3 + $0x2c] sm:$0xf] %vm400_vm3, %v487_v10  ;;  %410 = vst.msk [vmem:[%s813_s3 + $0x24] sm:$0xf] %vm400_vm3, %v485_v11  ;;  %v203_v16 = vadd.f32 %v674_v46, %v202_v15  ;;  %v535_v17 = vpop.f32.mrb[14].mxu0 }
  0xf7   :  { %426 = vst.msk [vmem:[%s813_s3 + $0x64] sm:$0xf] %vm400_vm3, %v501_v13  ;;  %v278_v18 = vmax.f32 %v211_v14, 0.0  ;;  %v214_v19 = vadd.f32 %v535_v17, %v674_v46  ;;  %v205_v20 = vpop.f32.mrb[15].mxu0 }
  0xf8   :  { %v276_v21 = vmax.f32 %v203_v16, 0.0  ;;  %v206_v22 = vadd.f32 %v674_v46, %v205_v20 }
  0xf9   :  { %v490_v23 = vpack.c.bf16 %v278_v18, %v278_v18  ;;  %v279_v24 = vmax.f32 %v214_v19, 0.0 }
  0xfa   :  { %v488_v25 = vpack.c.bf16 %v276_v21, %v276_v21  ;;  %v277_v26 = vmax.f32 %v206_v22, 0.0 }
  0xfb   :  { %415 = vst.msk [vmem:[%s813_s3 + $0x38] sm:$0xf] %vm400_vm3, %v490_v23  ;;  %v491_v27 = vpack.c.bf16 %v279_v24, %v279_v24 }
  0xfc   :  { %413 = vst.msk [vmem:[%s813_s3 + $0x30] sm:$0xf] %vm400_vm3, %v488_v25  ;;  %v489_v28 = vpack.c.bf16 %v277_v26, %v277_v26 }
  0xfd   :  { %416 = vst.msk [vmem:[%s813_s3 + $0x3c] sm:$0xf] %vm400_vm3, %v491_v27 }
  0xfe   :  { %414 = vst.msk [vmem:[%s813_s3 + $0x34] sm:$0xf] %vm400_vm3, %v489_v28 }

// kernel: conformer_encoder_forward.14
= control target key start
LH: loop header
LB: loop body
LE: loop exit
PB: predicated region body
PF: predicated region fallthrough
CT: control target
= control target key end

     0   :  { %v519_v1 = vmov 0.0   ;;  %vm520_vm0 = vmmov 0   ;;  %vm223_vm1 = vcmask 261120   ;;  %vm377_vm2 = vcmask 257024   ;;  %s654_s1 = inlined_call_operand.vmem [shape: bf16[288,32], index: 1, kind: input, shape index: {}]   ;;  %s655_s0 = inlined_call_operand.vmem [shape: bf16[42,288], index: 0, kind: input, shape index: {}]   ;;  %s656_s2 = inlined_call_operand.vmem [shape: f32[1,32], index: 2, kind: input, shape index: {}]   ;;  %s657_s3 = inlined_call_operand.vmem [shape: bf16[42,32], index: 3, kind: output, shape index: {}]  }
   0x1   :  { %v489_v0 = vld [vmem:[%s654_s1 + $0x40] sm:$0xff]   ;;  %471 = vmatprep.subr.bf16.mxu1 %v519_v1  ;;  %475 = vmatprep.mubr.msk.bf16.mxu1 %vm520_vm0, %v519_v1  ;;  %v491_v3 = vld [vmem:[%s654_s1 + $0x48] sm:$0xff]   ;;  %v493_v5 = vld [vmem:[%s654_s1 + $0x50] sm:$0xff]   ;;  %vm383_vm3 = vcmask 253952  }
   0x2   :  { %v490_v2 = vld [vmem:[%s654_s1] sm:$0xff]   ;;  %432 = vmatprep.subr.bf16.mxu0 %v489_v0  ;;  %v492_v4 = vld [vmem:[%s654_s1 + $0x8] sm:$0xff]   ;;  %v494_v6 = vld [vmem:[%s654_s1 + $0x10] sm:$0xff]  }
   0x3   :  { %433 = vmatpush3.bf16.msra.mxu0 %v490_v2  ;;  %v495_v7 = vld [vmem:[%s654_s1 + $0x58] sm:$0xff]   ;;  %v497_v9 = vld [vmem:[%s654_s1 + $0x60] sm:$0xff]   ;;  %v499_v12 = vld [vmem:[%s654_s1 + $0x68] sm:$0xff]  }
   0x4   :  { %434 = vmatprep.subr.bf16.mxu0 %v491_v3  ;;  %v496_v8 = vld [vmem:[%s654_s1 + $0x18] sm:$0xff]   ;;  %v503_v10 = vld [vmem:[%s654_s1 + $0x80] sm:$0xff]   ;;  %v500_v13 = vld [vmem:[%s654_s1 + $0x28] sm:$0xff]  }
   0x5   :  { %v498_v11 = vld [vmem:[%s654_s1 + $0x20] sm:$0xff]   ;;  %472 = vmatpush3.bf16.msra.mxu1 %v503_v10  ;;  %v501_v14 = vld [vmem:[%s654_s1 + $0x70] sm:$0xff]   ;;  %v509_v16 = vld [vmem:[%s654_s1 + $0x88] sm:$0xff]  }
   0x6   :  { %473 = vmatprep.subr.bf16.mxu1 %v519_v1  ;;  %v508_v15 = vld [vmem:[%s655_s0 + $0x4] ss:$12 sps:$4 sm:$0xff]   ;;  %v510_v17 = vld [vmem:[%s655_s0 + $0x8] ss:$12 sps:$4 sm:$0xff]   ;;  %v504_v19 = vld [vmem:[%s654_s1 + $0x78] sm:$0xff]  }
   0x7   :  { %435 = vmatpush3.bf16.msra.mxu0 %v492_v4  ;;  %265 = vmatprep.mubr.bf16.mxu0 %v508_v15  ;;  %v502_v18 = vld [vmem:[%s654_s1 + $0x30] sm:$0xff]   ;;  %v505_v20 = vld [vmem:[%s654_s1 + $0x38] sm:$0xff]   ;;  %v514_v21 = vld [vmem:[%s655_s0 + $0x20] ss:$12 sps:$4 sm:$0xff]  }
   0x8   :  { %436 = vmatprep.subr.bf16.mxu0 %v493_v5  ;;  %v506_v22 = vld [vmem:[%s655_s0] ss:$12 sps:$4 sm:$0xff]   ;;  %v511_v23 = vld [vmem:[%s655_s0 + $0x1c] ss:$12 sps:$4 sm:$0xff]   ;;  %v513_v25 = vld [vmem:[%s655_s0 + $0x18] ss:$12 sps:$4 sm:$0xff]  }
   0x9   :  { %474 = vmatpush3.bf16.msra.mxu1 %v509_v16  ;;  %v518_v24 = vld [vmem:[%s655_s0 + $0x38] ss:$12 sps:$4 sm:$0x1f]   ;;  %v515_v26 = vld [vmem:[%s655_s0 + $0x34] ss:$12 sps:$4 sm:$0x1f]  }
   0xa   :  { %v517_v27 = vld [vmem:[%s655_s0 + $0x30] ss:$12 sps:$4 sm:$0x1f]   ;;  %v389_v37 = vld [vmem:[%s656_s2] ss:$0 sm:$0xff] }
   0xb   :  { %437 = vmatpush3.bf16.msra.mxu0 %v494_v6 }
   0xc   :  { %438 = vmatprep.subr.bf16.mxu0 %v495_v7  ;;  %476 = vmatmul.mubr.msk.bf16.vlgmr.msra.gmra.mrb[0].mxu1 %vm223_vm1, %v510_v17 }
   0xd   :  { %479 = vmatprep.mubr.msk.bf16.mxu1 %vm520_vm0, %v519_v1 }
   0xf   :  { %439 = vmatpush3.bf16.msra.mxu0 %v496_v8 }
  0x10   :  { %440 = vmatprep.subr.bf16.mxu0 %v497_v9 }
  0x13   :  { %441 = vmatpush3.bf16.msra.mxu0 %v498_v11 }
  0x14   :  { %442 = vmatprep.subr.bf16.mxu0 %v499_v12  ;;  %480 = vmatmul.mubr.msk.bf16.gmra.mrb[4].mxu1 %vm223_vm1, %v514_v21 }
  0x15   :  { %483 = vmatprep.mubr.msk.bf16.mxu1 %vm520_vm0, %v519_v1 }
  0x17   :  { %443 = vmatpush3.bf16.msra.mxu0 %v500_v13 }
  0x18   :  { %444 = vmatprep.subr.bf16.mxu0 %v501_v14 }
  0x1b   :  { %445 = vmatpush3.bf16.msra.mxu0 %v502_v18 }
  0x1c   :  { %446 = vmatprep.subr.bf16.mxu0 %v504_v19  ;;  %484 = vmatmul.mubr.msk.bf16.gmra.mrb[8].mxu1 %vm223_vm1, %v518_v24 }
  0x1f   :  { %447 = vmatpush3.bf16.msra.mxu0 %v505_v20 }
  0x22   :  { %266 = vmatmul.mubr.bf16.vlgmr.msra.gmra.mrb[0].mxu0 %v506_v22 }
  0x23   :  { %273 = vmatprep.mubr.bf16.mxu0 %v511_v23 }
  0x2a   :  { %274 = vmatmul.mubr.bf16.gmra.mrb[4].mxu0 %v513_v25 }
  0x2b   :  { %281 = vmatprep.mubr.bf16.mxu0 %v515_v26 }
  0x32   :  { %282 = vmatmul.mubr.bf16.gmra.mrb[8].mxu0 %v517_v27 }
  0xdf   :  { %v324_v28 = vpop.f32.mrb[0].mxu1 }
  0xe0   :  { %v477_v29 = vpop.f32.mrb[1].mxu1 }
  0xe1   :  { %v327_v30 = vpop.f32.mrb[2].mxu1 }
  0xe2   :  { %v478_v31 = vpop.f32.mrb[3].mxu1 }
  0xe7   :  { %v332_v32 = vpop.f32.mrb[4].mxu1 }
  0xe8   :  { %v481_v33 = vpop.f32.mrb[5].mxu1 }
  0xe9   :  { %v335_v35 = vpop.f32.mrb[6].mxu1 }
  0xea   :  { %v482_v38 = vpop.f32.mrb[7].mxu1 }
  0xef   :  { %v340_v46 = vpop.f32.mrb[8].mxu1 }
  0xf0   :  { %v485_v47 = vpop.f32.mrb[9].mxu1 }
  0xf1   :  { %v343_v51 = vpop.f32.mrb[10].mxu1 }
  0xf2   :  { %v486_v53 = vpop.f32.mrb[11].mxu1 }
  0xf5   :  { %v448_v34 = vpop.f32.mrb[0].mxu0 }
  0xf6   :  { %v449_v36 = vpop.f32.mrb[1].mxu0 }
  0xf7   :  { %v450_v39 = vadd.f32 %v449_v36, %v448_v34  ;;  %v451_v40 = vpop.f32.mrb[2].mxu0 }
  0xf8   :  { %v452_v41 = vpop.f32.mrb[3].mxu0 }
  0xf9   :  { %v268_v42 = vadd.f32 %v450_v39, %v389_v37  ;;  %v453_v43 = vadd.f32 %v452_v41, %v451_v40 }
  0xfb   :  { %v325_v44 = vadd.f32 %v324_v28, %v268_v42  ;;  %v271_v45 = vadd.f32 %v453_v43, %v389_v37 }
  0xfd   :  { %v347_v48 = vmax.f32 %v325_v44, 0.0  ;;  %v328_v49 = vadd.f32 %v327_v30, %v271_v45  ;;  %v454_v50 = vpop.f32.mrb[4].mxu0 }
  0xfe   :  { %v455_v52 = vpop.f32.mrb[5].mxu0 }
  0xff   :  { %v426_v54 = vpack.c.bf16 %v347_v48, %v347_v48  ;;  %v348_v55 = vmax.f32 %v328_v49, 0.0  ;;  %v456_v56 = vadd.f32 %v455_v52, %v454_v50  ;;  %v457_v57 = vpop.f32.mrb[6].mxu0 }
 0x100   :  { %v458_v58 = vpop.f32.mrb[7].mxu0 }
 0x101   :  { %378 = vst.msk [vmem:[%s657_s3] sm:$0xf] %vm377_vm2, %v426_v54  ;;  %v427_v59 = vpack.c.bf16 %v348_v55, %v348_v55  ;;  %v276_v60 = vadd.f32 %v456_v56, %v389_v37  ;;  %v459_v61 = vadd.f32 %v458_v58, %v457_v57 }
 0x103   :  { %379 = vst.msk [vmem:[%s657_s3 + $0x4] sm:$0xf] %vm377_vm2, %v427_v59  ;;  %v333_v62 = vadd.f32 %v332_v32, %v276_v60  ;;  %v279_v63 = vadd.f32 %v459_v61, %v389_v37 }
 0x105   :  { %v349_v0 = vmax.f32 %v333_v62, 0.0  ;;  %v336_v1 = vadd.f32 %v335_v35, %v279_v63  ;;  %v460_v2 = vpop.f32.mrb[8].mxu0 }
 0x106   :  { %v461_v3 = vpop.f32.mrb[9].mxu0 }
 0x107   :  { %v428_v4 = vpack.c.bf16 %v349_v0, %v349_v0  ;;  %v350_v5 = vmax.f32 %v336_v1, 0.0  ;;  %v462_v6 = vadd.f32 %v461_v3, %v460_v2  ;;  %v463_v7 = vpop.f32.mrb[10].mxu0 }
 0x108   :  { %v464_v8 = vpop.f32.mrb[11].mxu0 }
 0x109   :  { %380 = vst.msk [vmem:[%s657_s3 + $0x8] sm:$0xf] %vm377_vm2, %v428_v4  ;;  %v429_v9 = vpack.c.bf16 %v350_v5, %v350_v5  ;;  %v284_v10 = vadd.f32 %v462_v6, %v389_v37  ;;  %v465_v11 = vadd.f32 %v464_v8, %v463_v7 }
 0x10b   :  { %381 = vst.msk [vmem:[%s657_s3 + $0xc] sm:$0xf] %vm377_vm2, %v429_v9  ;;  %v341_v12 = vadd.f32 %v340_v46, %v284_v10  ;;  %v287_v13 = vadd.f32 %v465_v11, %v389_v37 }
 0x10d   :  { %v351_v14 = vmax.f32 %v341_v12, 0.0  ;;  %v344_v15 = vadd.f32 %v343_v51, %v287_v13 }
 0x10f   :  { %v430_v16 = vpack.c.bf16 %v351_v14, %v351_v14  ;;  %v352_v17 = vmax.f32 %v344_v15, 0.0 }
 0x111   :  { %382 = vst.msk [vmem:[%s657_s3 + $0x10] sm:$0xf] %vm377_vm2, %v430_v16  ;;  %v431_v18 = vpack.c.bf16 %v352_v17, %v352_v17 }
 0x113   :  { %384 = vst.msk [vmem:[%s657_s3 + $0x14] sm:$0x1] %vm383_vm3, %v431_v18 }

// kernel: conformer_encoder_forward.17
= control target key start
LH: loop header
LB: loop body
LE: loop exit
PB: predicated region body
PF: predicated region fallthrough
CT: control target
= control target key end

     0   :  { %vm39_vm0 = vcmask 261120   ;;  %v339_v16 = vmov 0.0   ;;  %vm340_vm1 = vmmov 0   ;;  %vm205_vm2 = vcmask 523264   ;;  %s445_s0 = inlined_call_operand.vmem [shape: bf16[16,32], index: 0, kind: input, shape index: {}]   ;;  %s446_s7 = inlined_call_operand.vmem [shape: f32[1,32], index: 7, kind: input, shape index: {}, may-alias: {1,7}]   ;;  %s447_s8 = inlined_call_operand.vmem [shape: f32[1,32], index: 8, kind: input, shape index: {}, may-alias: {2,8}]   ;;  %s448_s3 = inlined_call_operand.vmem [shape: bf16[32,64], index: 3, kind: input, shape index: {}]   ;;  %s449_s1 = inlined_call_operand.vmem [shape: f32[1,32], index: 1, kind: input, shape index: {}, may-alias: {1,7}]   ;;  %s450_s2 = inlined_call_operand.vmem [shape: f32[1,32], index: 2, kind: input, shape index: {}, may-alias: {2,8}]   ;;  %s451_s5 = inlined_call_operand.vmem [shape: bf16[64,32], index: 5, kind: input, shape index: {}]   ;;  %s452_s4 = inlined_call_operand.vmem [shape: f32[1,64], index: 4, kind: input, shape index: {}]   ;;  %s453_s6 = inlined_call_operand.vmem [shape: f32[1,32], index: 6, kind: input, shape index: {}]   ;;  %s454_s9 = inlined_call_operand.vmem [shape: bf16[16,32], index: 9, kind: output, shape index: {}]  }
   0x1   :  { %v288_v0 = vld [vmem:[%s445_s0] sm:$0xff]   ;;  %299 = vmatprep.subr.bf16.mxu0 %v339_v16  ;;  %307 = vmatprep.subr.bf16.mxu1 %v339_v16  ;;  %v322_v17 = vld [vmem:[%s448_s3 + $0x8] sm:$0xff]   ;;  %v325_v37 = vld [vmem:[%s451_s5 + $0x10] sm:$0xff]   ;;  %vm262_vm3 = vcmask 257024  }
   0x2   :  { %v394_v1 = vunpack.c.l.bf16 %v288_v0  ;;  %v396_v2 = vunpack.c.h.bf16 %v288_v0  ;;  %v321_v15 = vld [vmem:[%s448_s3] sm:$0xff]   ;;  %303 = vmatprep.mubr.msk.bf16.mxu0 %vm340_vm1, %v339_v16  ;;  %315 = vmatprep.mubr.msk.bf16.mxu1 %vm340_vm1, %v339_v16  ;;  %v324_v36 = vld [vmem:[%s451_s5 + $0x8] sm:$0xff]   ;;  %v326_v38 = vld [vmem:[%s451_s5 + $0x18] sm:$0xff]  }
   0x3   :  { %300 = vmatpush3.bf16.msra.mxu0 %v321_v15  ;;  %v269_v26 = vld [vmem:[%s449_s1] ss:$0 sm:$0xff] }
   0x4   :  { %v40_v3 = vsel %vm39_vm0, %v394_v1, 0.0  ;;  %v43_v4 = vsel %vm39_vm0, %v396_v2, 0.0  ;;  %301 = vmatprep.subr.bf16.mxu0 %v339_v16  ;;  %v270_v30 = vld [vmem:[%s450_s2] ss:$0 sm:$0xff] }
   0x5   :  { %41 = vadd.xlane.f32.xlu0 %v40_v3  ;;  %v323_v35 = vld [vmem:[%s451_s5] sm:$0xff]  }
   0x6   :  { %308 = vmatpush3.bf16.msra.mxu1 %v323_v35  ;;  %v271_v39 = vld [vmem:[%s452_s4] ss:$0 sm:$0xff] }
   0x7   :  { %302 = vmatpush3.bf16.msra.mxu0 %v322_v17  ;;  %309 = vmatprep.subr.bf16.mxu1 %v339_v16  ;;  %v277_v57 = vld [vmem:[%s453_s6] ss:$0 sm:$0xff] }
   0x9   :  { %44 = vadd.xlane.f32.xlu0 %v43_v4 }
   0xa   :  { %310 = vmatpush3.bf16.msra.mxu1 %v324_v36 }
   0xb   :  { %311 = vmatprep.subr.bf16.mxu1 %v339_v16 }
   0xe   :  { %312 = vmatpush3.bf16.msra.mxu1 %v325_v37 }
   0xf   :  { %313 = vmatprep.subr.bf16.mxu1 %v339_v16 }
  0x12   :  { %314 = vmatpush3.bf16.msra.mxu1 %v326_v38 }
  0x92   :  { %v42_v5 = vpop.xlane.xlu0 %41 }
  0x93   :  { %v47_v6 = vmul.f32 0.03125, %v42_v5 }
  0x95   :  { %v49_v7 = vsub.f32 %v394_v1, %v47_v6 }
  0x96   :  { %v45_v8 = vpop.xlane.xlu0 %44 }
  0x97   :  { %v48_v9 = vmul.f32 0.03125, %v45_v8  ;;  %v51_v10 = vmul.f32 %v49_v7, %v49_v7 }
  0x99   :  { %v50_v11 = vsub.f32 %v396_v2, %v48_v9  ;;  %v53_v12 = vsel %vm39_vm0, %v51_v10, 0.0 }
  0x9a   :  { %54 = vadd.xlane.f32.xlu1 %v53_v12 }
  0x9b   :  { %v52_v13 = vmul.f32 %v50_v11, %v50_v11 }
  0x9d   :  { %v56_v14 = vsel %vm39_vm0, %v52_v13, 0.0 }
  0x9e   :  { %57 = vadd.xlane.f32.xlu1 %v56_v14 }
 0x127   :  { %v55_v18 = vpop.xlane.xlu1 %54 }
 0x128   :  { %v59_v19 = vmul.f32 0.03125, %v55_v18 }
 0x12a   :  { %v61_v20 = vadd.f32 1e-05, %v59_v19 }
 0x12b   :  { %v58_v21 = vpop.xlane.xlu1 %57 }
 0x12c   :  { %327 = vrsqrt.f32 %v61_v20  ;;  %v60_v22 = vmul.f32 0.03125, %v58_v21 }
 0x12e   :  { %v62_v23 = vadd.f32 1e-05, %v60_v22 }
 0x130   :  { %329 = vrsqrt.f32 %v62_v23 }
 0x136   :  { %v328_v24 = vpop.eup %327 }
 0x137   :  { %v65_v25 = vmul.f32 %v328_v24, %v49_v7 }
 0x139   :  { %v73_v29 = vmul.f32 %v269_v26, %v65_v25 }
 0x13a   :  { %v330_v27 = vpop.eup %329 }
 0x13b   :  { %v66_v28 = vmul.f32 %v330_v27, %v50_v11  ;;  %v81_v32 = vadd.f32 %v270_v30, %v73_v29 }
 0x13d   :  { %v74_v31 = vmul.f32 %v269_v26, %v66_v28 }
 0x13f   :  { %v82_v33 = vadd.f32 %v270_v30, %v74_v31 }
 0x141   :  { %v87_v34 = vpack.c.bf16 %v82_v33, %v81_v32 }
 0x143   :  { %304 = vmatmul.mubr.msk.bf16.vlgmr.msra.gmra.mrb[0].mxu0 %vm39_vm0, %v87_v34 }
 0x216   :  { %v144_v40 = vpop.f32.mrb[0].mxu0 }
 0x217   :  { %v145_v41 = vadd.f32 %v271_v39, %v144_v40  ;;  %v305_v42 = vpop.f32.mrb[1].mxu0 }
 0x218   :  { %v147_v43 = vpop.f32.mrb[2].mxu0 }
 0x219   :  { %v275_v44 = vmul.f32 -1.442695, %v145_v41  ;;  %v148_v45 = vadd.f32 %v271_v39, %v147_v43  ;;  %v306_v46 = vpop.f32.mrb[3].mxu0 }
 0x21b   :  { %331 = vpow2.f32 %v275_v44  ;;  %v276_v47 = vmul.f32 -1.442695, %v148_v45 }
 0x21d   :  { %333 = vpow2.f32 %v276_v47 }
 0x225   :  { %v332_v48 = vpop.eup %331 }
 0x226   :  { %v157_v49 = vadd.f32 1.0, %v332_v48 }
 0x227   :  { %v334_v50 = vpop.eup %333 }
 0x228   :  { %335 = vrcp.f32 %v157_v49  ;;  %v158_v51 = vadd.f32 1.0, %v334_v50 }
 0x22a   :  { %337 = vrcp.f32 %v158_v51 }
 0x232   :  { %v336_v52 = vpop.eup %335 }
 0x233   :  { %v163_v54 = vmul.f32 %v336_v52, %v145_v41 }
 0x234   :  { %v338_v53 = vpop.eup %337 }
 0x235   :  { %v164_v55 = vmul.f32 %v338_v53, %v148_v45 }
 0x237   :  { %v173_v56 = vpack.c.bf16 %v164_v55, %v163_v54 }
 0x239   :  { %316 = vmatmul.mubr.msk.bf16.vlgmr.msra.gmra.mrb[0].mxu1 %vm205_vm2, %v173_v56 }
 0x30c   :  { %v243_v58 = vpop.f32.mrb[0].mxu1 }
 0x30d   :  { %v244_v59 = vadd.f32 %v277_v57, %v243_v58  ;;  %v317_v60 = vpop.f32.mrb[1].mxu1 }
 0x30e   :  { %v246_v61 = vpop.f32.mrb[2].mxu1 }
 0x30f   :  { %v250_v62 = vmul.f32 0.5, %v244_v59  ;;  %v247_v63 = vadd.f32 %v277_v57, %v246_v61  ;;  %v318_v0 = vpop.f32.mrb[3].mxu1 }
 0x311   :  { %v252_v3 = vadd.f32 %v394_v1, %v250_v62  ;;  %v251_v4 = vmul.f32 0.5, %v247_v63 }
 0x313   :  { %v285_v5 = vpack.c.bf16 %v252_v3, %v252_v3  ;;  %v253_v6 = vadd.f32 %v396_v2, %v251_v4 }
 0x315   :  { %263 = vst.msk [vmem:[%s454_s9] sm:$0xf] %vm262_vm3, %v285_v5  ;;  %v286_v7 = vpack.c.bf16 %v253_v6, %v253_v6 }
 0x317   :  { %264 = vst.msk [vmem:[%s454_s9 + $0x4] sm:$0xf] %vm262_vm3, %v286_v7 }

// kernel: conformer_encoder_forward.16
= control target key start
LH: loop header
LB: loop body
LE: loop exit
PB: predicated region body
PF: predicated region fallthrough
CT: control target
= control target key end

     0   :  { %v99_v0 = vmov 0.0   ;;  %vm100_vm0 = vmmov 0   ;;  %vm30_vm1 = vcmask 261120   ;;  %vm75_vm2 = vcmask 519168   ;;  %s128_s1 = inlined_call_operand.vmem [shape: bf16[32,64], index: 1, kind: input, shape index: {}]   ;;  %s129_s0 = inlined_call_operand.vmem [shape: f32[8,32], index: 0, kind: input, shape index: {}]   ;;  %s130_s2 = inlined_call_operand.vmem [shape: bf16[8,64], index: 2, kind: output, shape index: {}]  }
   0x1   :  { %87 = vmatprep.subr.bf16.mxu0 %v99_v0  ;;  %v97_v1 = vld [vmem:[%s128_s1] sm:$0xff]   ;;  %91 = vmatprep.mubr.msk.bf16.mxu0 %vm100_vm0, %v99_v0  ;;  %v98_v2 = vld [vmem:[%s128_s1 + $0x8] sm:$0xff]  }
   0x2   :  { %88 = vmatpush3.bf16.msra.mxu0 %v97_v1  ;;  %v12_v3 = vld [vmem:[%s129_s0] sm:$0xff] }
   0x3   :  { %89 = vmatprep.subr.bf16.mxu0 %v99_v0  ;;  %v17_v4 = vpack.c.bf16 %v12_v3, %v12_v3 }
   0x6   :  { %90 = vmatpush3.bf16.msra.mxu0 %v98_v2 }
   0x9   :  { %92 = vmatmul.mubr.msk.bf16.vlgmr.msra.gmra.mrb[0].mxu0 %vm30_vm1, %v17_v4 }
  0xdc   :  { %v68_v5 = vpop.f32.mrb[0].mxu0 }
  0xdd   :  { %v74_v6 = vpack.c.bf16 %v68_v5, %v68_v5  ;;  %v93_v7 = vpop.f32.mrb[1].mxu0 }
  0xde   :  { %v71_v8 = vpop.f32.mrb[2].mxu0 }
  0xdf   :  { %76 = vst.msk [vmem:[%s130_s2] sm:$0xf] %vm75_vm2, %v74_v6  ;;  %v94_v9 = vpop.f32.mrb[3].mxu0 }

// kernel: conformer_encoder_forward.25
= control target key start
LH: loop header
LB: loop body
LE: loop exit
PB: predicated region body
PF: predicated region fallthrough
CT: control target
= control target key end

     0   :  { %vm20_vm0 = vcmask 261120   ;;  %vm24_vm1 = vcmask 259072   ;;  %s121_s0 = inlined_call_operand.vmem [shape: bf16[14,32], index: 0, kind: input, shape index: {}]   ;;  %s122_s1 = inlined_call_operand.vmem [shape: f32[1,32], index: 1, kind: input, shape index: {}]   ;;  %s123_s2 = inlined_call_operand.vmem [shape: f32[1,32], index: 2, kind: input, shape index: {}]   ;;  %s124_s3 = inlined_call_operand.vmem [shape: f32[14,32], index: 3, kind: output, shape index: {}]  }
   0x1   :  { %v14_v0 = vld [vmem:[%s121_s0] sm:$0xf]  ;;  %v15_v1 = vld [vmem:[%s121_s0 + $0x4] sm:$0x7] }
   0x2   :  { %v16_v2 = vunpack.c.l.bf16 %v14_v0  ;;  %v17_v3 = vunpack.c.l.bf16 %v15_v1  ;;  %v71_v23 = vld [vmem:[%s122_s1] ss:$0 sm:$0xff] }
   0x3   :  { %v72_v25 = vld [vmem:[%s123_s2] ss:$0 sm:$0xff] }
   0x4   :  { %v21_v4 = vsel %vm20_vm0, %v16_v2, 0.0  ;;  %v25_v5 = vsel %vm24_vm1, %v17_v3, 0.0 }
   0x5   :  { %22 = vadd.xlane.f32.xlu0 %v21_v4 }
   0x9   :  { %26 = vadd.xlane.f32.xlu0 %v25_v5 }
  0x92   :  { %v23_v6 = vpop.xlane.xlu0 %22 }
  0x93   :  { %v29_v7 = vmul.f32 0.03125, %v23_v6 }
  0x95   :  { %v31_v8 = vsub.f32 %v16_v2, %v29_v7 }
  0x96   :  { %v27_v9 = vpop.xlane.xlu0 %26 }
  0x97   :  { %v30_v10 = vmul.f32 0.03125, %v27_v9  ;;  %v33_v11 = vmul.f32 %v31_v8, %v31_v8 }
  0x99   :  { %v32_v12 = vsub.f32 %v17_v3, %v30_v10  ;;  %v35_v13 = vsel %vm20_vm0, %v33_v11, 0.0 }
  0x9a   :  { %36 = vadd.xlane.f32.xlu1 %v35_v13 }
  0x9b   :  { %v34_v14 = vmul.f32 %v32_v12, %v32_v12 }
  0x9d   :  { %v38_v15 = vsel %vm24_vm1, %v34_v14, 0.0 }
  0x9e   :  { %39 = vadd.xlane.f32.xlu1 %v38_v15 }
 0x127   :  { %v37_v16 = vpop.xlane.xlu1 %36 }
 0x128   :  { %v41_v17 = vmul.f32 0.03125, %v37_v16 }
 0x12a   :  { %v43_v18 = vadd.f32 1e-05, %v41_v17 }
 0x12b   :  { %v40_v19 = vpop.xlane.xlu1 %39 }
 0x12c   :  { %73 = vrsqrt.f32 %v43_v18  ;;  %v42_v20 = vmul.f32 0.03125, %v40_v19 }
 0x12e   :  { %v44_v21 = vadd.f32 1e-05, %v42_v20 }
 0x130   :  { %75 = vrsqrt.f32 %v44_v21 }
 0x136   :  { %v74_v22 = vpop.eup %73 }
 0x137   :  { %v47_v24 = vmul.f32 %v74_v22, %v31_v8 }
 0x139   :  { %v55_v26 = vmul.f32 %v71_v23, %v47_v24 }
 0x13a   :  { %v76_v27 = vpop.eup %75 }
 0x13b   :  { %v63_v28 = vadd.f32 %v72_v25, %v55_v26  ;;  %v48_v29 = vmul.f32 %v76_v27, %v32_v12 }
 0x13d   :  { %65 = vst.msk [vmem:[%s124_s3] sm:$0xff] %vm20_vm0, %v63_v28  ;;  %v56_v30 = vmul.f32 %v71_v23, %v48_v29 }
 0x13f   :  { %v64_v31 = vadd.f32 %v72_v25, %v56_v30 }
 0x141   :  { %66 = vst.msk [vmem:[%s124_s3 + $0x8] sm:$0x3f] %vm24_vm1, %v64_v31 }

// kernel: conformer_encoder_forward.20
= control target key start
LH: loop header
LB: loop body
LE: loop exit
PB: predicated region body
PF: predicated region fallthrough
CT: control target
= control target key end

     0   :  { %vm39_vm0 = vcmask 261120   ;;  %v389_v16 = vmov 0.0   ;;  %vm390_vm1 = vmmov 0   ;;  %vm205_vm2 = vcmask 523264   ;;  %s505_s0 = inlined_call_operand.vmem [shape: bf16[16,32], index: 0, kind: input, shape index: {}]   ;;  %s506_s3 = inlined_call_operand.vmem [shape: bf16[32,64], index: 3, kind: input, shape index: {}]   ;;  %s507_s1 = inlined_call_operand.vmem [shape: f32[1,32], index: 1, kind: input, shape index: {}]   ;;  %s508_s2 = inlined_call_operand.vmem [shape: f32[1,32], index: 2, kind: input, shape index: {}]   ;;  %s509_s5 = inlined_call_operand.vmem [shape: bf16[64,32], index: 5, kind: input, shape index: {}]   ;;  %s510_s4 = inlined_call_operand.vmem [shape: f32[1,64], index: 4, kind: input, shape index: {}]   ;;  %s511_s6 = inlined_call_operand.vmem [shape: f32[1,32], index: 6, kind: input, shape index: {}]   ;;  %s512_s7 = inlined_call_operand.vmem [shape: f32[1,32], index: 7, kind: input, shape index: {}]   ;;  %s513_s8 = inlined_call_operand.vmem [shape: f32[1,32], index: 8, kind: input, shape index: {}]   ;;  %s514_s9 = inlined_call_operand.vmem [shape: bf16[16,32], index: 9, kind: output, shape index: {}]  }
   0x1   :  { %v334_v0 = vld [vmem:[%s505_s0] sm:$0xff]   ;;  %345 = vmatprep.subr.bf16.mxu0 %v389_v16  ;;  %353 = vmatprep.subr.bf16.mxu1 %v389_v16  ;;  %v368_v17 = vld [vmem:[%s506_s3 + $0x8] sm:$0xff]   ;;  %v371_v37 = vld [vmem:[%s509_s5 + $0x10] sm:$0xff]   ;;  %vm306_vm3 = vcmask 257024  }
   0x2   :  { %v444_v1 = vunpack.c.l.bf16 %v334_v0  ;;  %v446_v2 = vunpack.c.h.bf16 %v334_v0  ;;  %v367_v15 = vld [vmem:[%s506_s3] sm:$0xff]   ;;  %349 = vmatprep.mubr.msk.bf16.mxu0 %vm390_vm1, %v389_v16  ;;  %361 = vmatprep.mubr.msk.bf16.mxu1 %vm390_vm1, %v389_v16  ;;  %v370_v36 = vld [vmem:[%s509_s5 + $0x8] sm:$0xff]   ;;  %v372_v38 = vld [vmem:[%s509_s5 + $0x18] sm:$0xff]  }
   0x3   :  { %346 = vmatpush3.bf16.msra.mxu0 %v367_v15  ;;  %v313_v26 = vld [vmem:[%s507_s1] ss:$0 sm:$0xff] }
   0x4   :  { %v40_v3 = vsel %vm39_vm0, %v444_v1, 0.0  ;;  %v43_v4 = vsel %vm39_vm0, %v446_v2, 0.0  ;;  %347 = vmatprep.subr.bf16.mxu0 %v389_v16  ;;  %v314_v30 = vld [vmem:[%s508_s2] ss:$0 sm:$0xff] }
   0x5   :  { %41 = vadd.xlane.f32.xlu0 %v40_v3  ;;  %v369_v35 = vld [vmem:[%s509_s5] sm:$0xff]  }
   0x6   :  { %354 = vmatpush3.bf16.msra.mxu1 %v369_v35  ;;  %v315_v39 = vld [vmem:[%s510_s4] ss:$0 sm:$0xff] }
   0x7   :  { %348 = vmatpush3.bf16.msra.mxu0 %v368_v17  ;;  %355 = vmatprep.subr.bf16.mxu1 %v389_v16  ;;  %v321_v57 = vld [vmem:[%s511_s6] ss:$0 sm:$0xff] }
   0x9   :  { %44 = vadd.xlane.f32.xlu0 %v43_v4 }
   0xa   :  { %356 = vmatpush3.bf16.msra.mxu1 %v370_v36 }
   0xb   :  { %357 = vmatprep.subr.bf16.mxu1 %v389_v16 }
   0xe   :  { %358 = vmatpush3.bf16.msra.mxu1 %v371_v37 }
   0xf   :  { %359 = vmatprep.subr.bf16.mxu1 %v389_v16 }
  0x12   :  { %360 = vmatpush3.bf16.msra.mxu1 %v372_v38 }
  0x92   :  { %v42_v5 = vpop.xlane.xlu0 %41 }
  0x93   :  { %v47_v6 = vmul.f32 0.03125, %v42_v5 }
  0x95   :  { %v49_v7 = vsub.f32 %v444_v1, %v47_v6 }
  0x96   :  { %v45_v8 = vpop.xlane.xlu0 %44 }
  0x97   :  { %v48_v9 = vmul.f32 0.03125, %v45_v8  ;;  %v51_v10 = vmul.f32 %v49_v7, %v49_v7 }
  0x99   :  { %v50_v11 = vsub.f32 %v446_v2, %v48_v9  ;;  %v53_v12 = vsel %vm39_vm0, %v51_v10, 0.0 }
  0x9a   :  { %54 = vadd.xlane.f32.xlu1 %v53_v12 }
  0x9b   :  { %v52_v13 = vmul.f32 %v50_v11, %v50_v11 }
  0x9d   :  { %v56_v14 = vsel %vm39_vm0, %v52_v13, 0.0 }
  0x9e   :  { %57 = vadd.xlane.f32.xlu1 %v56_v14 }
 0x127   :  { %v55_v18 = vpop.xlane.xlu1 %54 }
 0x128   :  { %v59_v19 = vmul.f32 0.03125, %v55_v18 }
 0x12a   :  { %v61_v20 = vadd.f32 1e-05, %v59_v19 }
 0x12b   :  { %v58_v21 = vpop.xlane.xlu1 %57 }
 0x12c   :  { %373 = vrsqrt.f32 %v61_v20  ;;  %v60_v22 = vmul.f32 0.03125, %v58_v21 }
 0x12e   :  { %v62_v23 = vadd.f32 1e-05, %v60_v22 }
 0x130   :  { %375 = vrsqrt.f32 %v62_v23  ;;  %v327_v23 = vld [vmem:[%s512_s7] ss:$0 sm:$0xff] }
 0x136   :  { %v374_v24 = vpop.eup %373 }
 0x137   :  { %v65_v25 = vmul.f32 %v374_v24, %v49_v7 }
 0x139   :  { %v73_v29 = vmul.f32 %v313_v26, %v65_v25 }
 0x13a   :  { %v376_v27 = vpop.eup %375 }
 0x13b   :  { %v66_v28 = vmul.f32 %v376_v27, %v50_v11  ;;  %v81_v32 = vadd.f32 %v314_v30, %v73_v29 }
 0x13d   :  { %v74_v31 = vmul.f32 %v313_v26, %v66_v28  ;;  %v328_v26 = vld [vmem:[%s513_s8] ss:$0 sm:$0xff] }
 0x13f   :  { %v82_v33 = vadd.f32 %v314_v30, %v74_v31 }
 0x141   :  { %v87_v34 = vpack.c.bf16 %v82_v33, %v81_v32 }
 0x143   :  { %350 = vmatmul.mubr.msk.bf16.vlgmr.msra.gmra.mrb[0].mxu0 %vm39_vm0, %v87_v34 }
 0x216   :  { %v144_v40 = vpop.f32.mrb[0].mxu0 }
 0x217   :  { %v145_v41 = vadd.f32 %v315_v39, %v144_v40  ;;  %v351_v42 = vpop.f32.mrb[1].mxu0 }
 0x218   :  { %v147_v43 = vpop.f32.mrb[2].mxu0 }
 0x219   :  { %v319_v44 = vmul.f32 -1.442695, %v145_v41  ;;  %v148_v45 = vadd.f32 %v315_v39, %v147_v43  ;;  %v352_v46 = vpop.f32.mrb[3].mxu0 }
 0x21b   :  { %377 = vpow2.f32 %v319_v44  ;;  %v320_v47 = vmul.f32 -1.442695, %v148_v45 }
 0x21d   :  { %379 = vpow2.f32 %v320_v47 }
 0x225   :  { %v378_v48 = vpop.eup %377 }
 0x226   :  { %v157_v49 = vadd.f32 1.0, %v378_v48 }
 0x227   :  { %v380_v50 = vpop.eup %379 }
 0x228   :  { %381 = vrcp.f32 %v157_v49  ;;  %v158_v51 = vadd.f32 1.0, %v380_v50 }
 0x22a   :  { %383 = vrcp.f32 %v158_v51 }
 0x232   :  { %v382_v52 = vpop.eup %381 }
 0x233   :  { %v163_v54 = vmul.f32 %v382_v52, %v145_v41 }
 0x234   :  { %v384_v53 = vpop.eup %383 }
 0x235   :  { %v164_v55 = vmul.f32 %v384_v53, %v148_v45 }
 0x237   :  { %v173_v56 = vpack.c.bf16 %v164_v55, %v163_v54 }
 0x239   :  { %362 = vmatmul.mubr.msk.bf16.vlgmr.msra.gmra.mrb[0].mxu1 %vm205_vm2, %v173_v56 }
 0x30c   :  { %v243_v58 = vpop.f32.mrb[0].mxu1 }
 0x30d   :  { %v244_v59 = vadd.f32 %v321_v57, %v243_v58  ;;  %v363_v60 = vpop.f32.mrb[1].mxu1 }
 0x30e   :  { %v246_v61 = vpop.f32.mrb[2].mxu1 }
 0x30f   :  { %v250_v62 = vmul.f32 0.5, %v244_v59  ;;  %v247_v63 = vadd.f32 %v321_v57, %v246_v61  ;;  %v364_v0 = vpop.f32.mrb[3].mxu1 }
 0x311   :  { %v251_v3 = vmul.f32 0.5, %v247_v63  ;;  %v252_v4 = vadd.f32 %v444_v1, %v250_v62 }
 0x313   :  { %v256_v5 = vsel %vm39_vm0, %v252_v4, 0.0  ;;  %v253_v6 = vadd.f32 %v446_v2, %v251_v3 }
 0x314   :  { %257 = vadd.xlane.f32.xlu0 %v256_v5 }
 0x315   :  { %v259_v7 = vsel %vm39_vm0, %v253_v6, 0.0 }
 0x316   :  { %260 = vadd.xlane.f32.xlu1 %v259_v7 }
 0x3a1   :  { %v258_v8 = vpop.xlane.xlu0 %257 }
 0x3a2   :  { %v262_v9 = vmul.f32 0.03125, %v258_v8 }
 0x3a3   :  { %v261_v10 = vpop.xlane.xlu1 %260 }
 0x3a4   :  { %v264_v11 = vsub.f32 %v252_v4, %v262_v9  ;;  %v263_v12 = vmul.f32 0.03125, %v261_v10 }
 0x3a6   :  { %v265_v13 = vsub.f32 %v253_v6, %v263_v12  ;;  %v266_v14 = vmul.f32 %v264_v11, %v264_v11 }
 0x3a8   :  { %v268_v15 = vsel %vm39_vm0, %v266_v14, 0.0  ;;  %v267_v16 = vmul.f32 %v265_v13, %v265_v13 }
 0x3a9   :  { %269 = vadd.xlane.f32.xlu0 %v268_v15 }
 0x3aa   :  { %v271_v1 = vsel %vm39_vm0, %v267_v16, 0.0 }
 0x3ab   :  { %272 = vadd.xlane.f32.xlu1 %v271_v1 }
 0x436   :  { %v270_v17 = vpop.xlane.xlu0 %269 }
 0x437   :  { %v274_v2 = vmul.f32 0.03125, %v270_v17 }
 0x438   :  { %v273_v18 = vpop.xlane.xlu1 %272 }
 0x439   :  { %v276_v19 = vadd.f32 1e-05, %v274_v2  ;;  %v275_v20 = vmul.f32 0.03125, %v273_v18 }
 0x43b   :  { %385 = vrsqrt.f32 %v276_v19  ;;  %v277_v21 = vadd.f32 1e-05, %v275_v20 }
 0x43d   :  { %387 = vrsqrt.f32 %v277_v21 }
 0x445   :  { %v386_v22 = vpop.eup %385 }
 0x446   :  { %v280_v24 = vmul.f32 %v386_v22, %v264_v11 }
 0x447   :  { %v388_v25 = vpop.eup %387 }
 0x448   :  { %v288_v27 = vmul.f32 %v327_v23, %v280_v24  ;;  %v281_v28 = vmul.f32 %v388_v25, %v265_v13 }
 0x44a   :  { %v296_v29 = vadd.f32 %v328_v26, %v288_v27  ;;  %v289_v30 = vmul.f32 %v327_v23, %v281_v28 }
 0x44c   :  { %v331_v31 = vpack.c.bf16 %v296_v29, %v296_v29  ;;  %v297_v32 = vadd.f32 %v328_v26, %v289_v30 }
 0x44e   :  { %307 = vst.msk [vmem:[%s514_s9] sm:$0xf] %vm306_vm3, %v331_v31  ;;  %v332_v33 = vpack.c.bf16 %v297_v32, %v297_v32 }
 0x450   :  { %308 = vst.msk [vmem:[%s514_s9 + $0x4] sm:$0xf] %vm306_vm3, %v332_v33 }

// kernel: conformer_encoder_forward.19
= control target key start
LH: loop header
LB: loop body
LE: loop exit
PB: predicated region body
PF: predicated region fallthrough
CT: control target
= control target key end

     0   :  { %s1062_s21 = smov 0   ;;  %s1197_s0 = inlined_call_operand.vmem [shape: bf16[2,8,32], index: 0, kind: input, shape index: {}]   ;;  %s1198_s1 = inlined_call_operand.vmem [shape: f32[2,8,1], index: 1, kind: input, shape index: {}]   ;;  %s1199_s2 = inlined_call_operand.vmem [shape: f32[1,32], index: 2, kind: input, shape index: {}]   ;;  %s1200_s3 = inlined_call_operand.vmem [shape: f32[1,32], index: 3, kind: input, shape index: {}]   ;;  %s1201_s4 = inlined_call_operand.vmem [shape: bf16[32,64], index: 4, kind: input, shape index: {}]   ;;  %s1202_s5 = inlined_call_operand.vmem [shape: f32[1,64], index: 5, kind: input, shape index: {}]   ;;  %s1203_s6 = inlined_call_operand.vmem [shape: f32[15,32], index: 6, kind: input, shape index: {}]   ;;  %s1204_s7 = inlined_call_operand.vmem [shape: f32[1,32], index: 7, kind: input, shape index: {}]   ;;  %s1205_s8 = inlined_call_operand.vmem [shape: f32[1,32], index: 8, kind: input, shape index: {}]   ;;  %s1206_s9 = inlined_call_operand.vmem [shape: f32[1,32], index: 9, kind: input, shape index: {}]   ;;  %s1207_s10 = inlined_call_operand.vmem [shape: bf16[32,32], index: 10, kind: input, shape index: {}]   ;;  %s1208_s11 = inlined_call_operand.vmem [shape: f32[1,32], index: 11, kind: input, shape index: {}]   ;;  %s1209_s12 = inlined_call_operand.vmem [shape: bf16[2,8,32], index: 12, kind: output, shape index: {}]  }
   0x1 LB: > { %s910_s22 = sadd.s32 4294967295, %s991_s21   ;;  %p914_p0 = scmp.ge.s32.totalorder %s991_s21, 1  ;;  %s991_s21 = sphi %s1062_s21, %s22_s21  }
   0x2   : > { %p370_p1 = scmp.lt.s32.totalorder %s991_s21, 3 }
   0x4   : > { %p371_p2 = pnand %p914_p0, %p370_p1 }
   0x5   : > { %p414_p3 = scmp.lt.s32.totalorder (!%p371_p2), %s910_s22, 1  ;;  %vm432_vm0 = vcmask (!%p371_p2), 261120   ;;  %v993_v3 = vmov (!%p371_p2), 0   ;;  %vm545_vm1 = vcmask (!%p371_p2), 260096   ;;  %v971_v10 = vld [vmem:[%s1201_s4] sm:$0xff] (!%p371_p2)   ;;  %v994_v11 = vmov (!%p371_p2), 0.0  }
   0x6   : > { %374 = sbr.rel (%p371_p2) target bundleno = 991 (0x3df), region = 68  ;;  %969 = vset.pattern.permute.xlu1 (!%p371_p2), %v993_v3  ;;  %970 = vset.pattern.permute.xlu0 (!%p371_p2), %v993_v3  ;;  %546 = vst.msk [vmem:[#allocation2] sm:$0x7f] (!%p371_p2), %vm545_vm1, %v994_v11  ;;  %548 = vst.msk [vmem:[#allocation2 + $0xf] sm:$0x7f] (!%p371_p2), %vm545_vm1, %v994_v11  ;;  %v972_v12 = vld [vmem:[%s1201_s4 + $0x8] sm:$0xff] (!%p371_p2)   ;;  %v554_v37 = vlaneseq (!%p371_p2) }
   0x7   : > { %941 = vmatprep.subr.bf16.mxu0 (!%p371_p2), %v994_v11  ;;  %949 = vmatprep.subr.bf16.mxu1 (!%p371_p2), %v994_v11  ;;  %vm995_vm2 = vmmov (!%p371_p2), 0   ;;  %v918_v17 = vld [vmem:[%s1199_s2] ss:$0 sm:$0xff] (!%p371_p2)  ;;  %v974_v35 = vld [vmem:[%s1207_s10 + $0x8] sm:$0xff] (!%p371_p2)   ;;  %vm568_vm3 = vcmask (!%p371_p2), 1046528   ;;  %vm582_vm4 = vcmask (!%p371_p2), 1045504  }
   0x8   : > { %942 = vmatpush3.bf16.msra.mxu0 (!%p371_p2), %v971_v10  ;;  %945 = vmatprep.mubr.msk.bf16.mxu0 (!%p371_p2), %vm995_vm2, %v994_v11  ;;  %v919_v19 = vld [vmem:[%s1200_s3] ss:$0 sm:$0xff] (!%p371_p2)  ;;  %v1113_v38 = vshrl.u32 (!%p371_p2), %v554_v37, 7  ;;  %vm596_vm5 = vcmask (!%p371_p2), 1044480   ;;  %vm610_vm6 = vcmask (!%p371_p2), 1043456   ;;  %vm624_vm7 = vcmask (!%p371_p2), 1042432  }
   0x9   : > { %943 = vmatprep.subr.bf16.mxu0 (!%p371_p2), %v994_v11  ;;  %953 = vmatprep.mubr.msk.bf16.mxu1 (!%p371_p2), %vm995_vm2, %v994_v11  ;;  %v920_v25 = vld [vmem:[%s1202_s5] ss:$0 sm:$0xff] (!%p371_p2)  ;;  %vm638_vm8 = vcmask (!%p371_p2), 1041408   ;;  %vm652_vm9 = vcmask (!%p371_p2), 1040384   ;;  %vm843_vm10 = vcmask (!%p371_p2), 257024  }
   0xa   : > { %v973_v34 = vld [vmem:[%s1207_s10] sm:$0xff] (!%p371_p2)   ;;  %v562_v41 = vsub.s32 (!%p371_p2), 1, %v1113_v38  ;;  %v576_v42 = vsub.s32 (!%p371_p2), 2, %v1113_v38  ;;  %v590_v44 = vsub.s32 (!%p371_p2), 3, %v1113_v38  ;;  %v604_v45 = vsub.s32 (!%p371_p2), 4, %v1113_v38 }
   0xb   : > { %950 = vmatpush3.bf16.msra.mxu1 (!%p371_p2), %v973_v34  ;;  %v552_v43 = vld [vmem:[%s1203_s6] sm:$0xff] (!%p371_p2)  ;;  %v556_v46 = vsub.s32 (!%p371_p2), 0, %v1113_v38  ;;  %v618_v47 = vsub.s32 (!%p371_p2), 5, %v1113_v38  ;;  %v632_v48 = vsub.s32 (!%p371_p2), 6, %v1113_v38  ;;  %v646_v58 = vsub.s32 (!%p371_p2), 7, %v1113_v38 }
   0xc   : > { %944 = vmatpush3.bf16.msra.mxu0 (!%p371_p2), %v972_v12  ;;  %951 = vmatprep.subr.bf16.mxu1 (!%p371_p2), %v994_v11  ;;  %v563_v49 = vrot.slane (!%p371_p2), %v552_v43, %v562_v41  ;;  %v577_v50 = vrot.slane (!%p371_p2), %v552_v43, %v576_v42  ;;  %v591_v51 = vrot.slane (!%p371_p2), %v552_v43, %v590_v44  ;;  %v553_v11 = vld [vmem:[%s1203_s6 + $0x8] sm:$0x7f] (!%p371_p2) }
   0xd   : > { %s1211_s22 = smov (!%p414_p3, %s910_s22), 1  ;;  %v605_v52 = vrot.slane %v552_v43, %v604_v45  ;;  %v557_v53 = vrot.slane %v552_v43, %v556_v46  ;;  %v619_v56 = vrot.slane %v552_v43, %v618_v47  ;;  %v633_v57 = vrot.slane %v552_v43, %v632_v48 }
   0xe   : > { %s915_s23 = sshll.u32 %s1211_s22, 2  ;;  %s916_s27 = sshll.u32 %s1211_s22, 3 }
   0xf   : > { %s417_s26 = scalar_lea.vmem %s1197_s0, %s915_s23  ;;  %s421_s30 = scalar_lea.vmem %s1198_s1, %s916_s27  ;;  %952 = vmatpush3.bf16.msra.mxu1 %v974_v35  ;;  %v680_v35 = vrot.slane %v553_v11, %v576_v42 }
  0x10   : > { %v427_v0 = vld [vmem:[%s417_s26] sm:$0xf] }
  0x11   : > { %v1078_v1 = vunpack.c.l.bf16 %v427_v0  ;;  %v429_v4 = vld [vmem:[%s421_s30] sm:$0xff]  ;;  %s996_s30 = smov 96  }
  0x12   : > { %463 = vperm.xlu1 %969, %v429_v4  }
  0x13   : > { %v433_v2 = vsel %vm432_vm0, %v1078_v1, 0.0 }
  0x14   : > { %434 = vadd.xlane.f32.xlu0 %v433_v2 }
  0x91   : > { %v1100_v21 = vpop.permute.xlu1 %463 }
  0xa1   : > { %v435_v5 = vpop.xlane.xlu0 %434 }
  0xa2   : > { %v437_v6 = vmul.f32 0.03125, %v435_v5 }
  0xa4   : > { %v438_v7 = vsub.f32 %v1078_v1, %v437_v6 }
  0xa6   : > { %v439_v8 = vmul.f32 %v438_v7, %v438_v7 }
  0xa8   : > { %v440_v9 = vsel %vm432_vm0, %v439_v8, 0.0 }
  0xa9   : > { %441 = vadd.xlane.f32.xlu0 %v440_v9 }
 0x136   : > { %v442_v13 = vpop.xlane.xlu0 %441 }
 0x137   : > { %v443_v14 = vmul.f32 0.03125, %v442_v13 }
 0x139   : > { %v444_v15 = vadd.f32 1e-05, %v443_v14 }
 0x13b   : > { %975 = vrsqrt.f32 %v444_v15  ;;  %v647_v15 = vrot.slane %v552_v43, %v646_v58 }
 0x145   : > { %v976_v16 = vpop.eup %975 }
 0x146   : > { %v446_v18 = vmul.f32 %v976_v16, %v438_v7 }
 0x148   : > { %v453_v20 = vmul.f32 %v918_v17, %v446_v18 }
 0x14a   : > { %v460_v22 = vadd.f32 %v919_v19, %v453_v20 }
 0x14c   : > { %v466_v23 = vmul.f32 %v1100_v21, %v460_v22 }
 0x14e   : > { %v471_v24 = vpack.c.bf16 %v466_v23, %v466_v23 }
 0x150   : > { %946 = vmatmul.mubr.msk.bf16.vlgmr.msra.gmra.mrb[0].mxu0 %vm432_vm0, %v471_v24 }
 0x223   : > { %v528_v26 = vpop.f32.mrb[0].mxu0 }
 0x224   : > { %v529_v27 = vadd.f32 %v920_v25, %v528_v26  ;;  %v947_v28 = vpop.f32.mrb[1].mxu0  ;;  %v667_v25 = vrot.slane %v553_v11, %v562_v41  ;;  %v551_v26 = vld [vmem:[#allocation2 + $0x10] sm:$0x3f] }
 0x225   : > { %v531_v29 = vpop.f32.mrb[2].mxu0 }
 0x226   : > { %v924_v30 = vmul.f32 -1.442695, %v529_v27  ;;  %v948_v31 = vpop.f32.mrb[3].mxu0  ;;  %v669_v37 = vmul.f32 %v667_v25, %v551_v26 }
 0x228   : > { %977 = vpow2.f32 %v924_v30 }
 0x232   : > { %v978_v32 = vpop.eup %977 }
 0x233   : > { %v537_v33 = vadd.f32 1.0, %v978_v32 }
 0x235   : > { %979 = vrcp.f32 %v537_v33 }
 0x23f   : > { %v980_v36 = vpop.eup %979 }
 0x240   : > { %541 = vrot.lane.b32.xlu1 %v980_v36, %s996_s30  ;;  %s425_s30 = scalar_lea.vmem %s1209_s12, %s915_s23 }
 0x2b2   : > { %v542_v39 = vpop.permute.xlu1 %541 }
 0x2b3   : > { %v544_v40 = vmul.f32 %v542_v39, %v529_v27  ;;  %v693_v39 = vrot.slane %v553_v11, %v590_v44 }
 0x2b5   : > { %547 = vst.msk [vmem:[#allocation2 + $0x7] sm:$0xff] %vm432_vm0, %v544_v40 }
 0x2bc   : > { %v549_v54 = vld [vmem:[#allocation2] sm:$0xff]  ;;  %v1130_v55 = vld [vmem:[#allocation2 + $0x8] sm:$0xff] }
 0x2bd   : > { %v564_v59 = vmul.f32 %v563_v49, %v549_v54  ;;  %v565_v60 = vmul.f32 %v563_v49, %v1130_v55  ;;  %v578_v61 = vmul.f32 %v577_v50, %v549_v54  ;;  %v579_v62 = vmul.f32 %v577_v50, %v1130_v55 }
 0x2be   : > { %v592_v63 = vmul.f32 %v591_v51, %v549_v54  ;;  %v593_v0 = vmul.f32 %v591_v51, %v1130_v55  ;;  %v606_v2 = vmul.f32 %v605_v52, %v549_v54  ;;  %v607_v6 = vmul.f32 %v605_v52, %v1130_v55 }
 0x2bf   : > { %v569_v3 = vrot.slane %v564_v59, 1  ;;  %v570_v4 = vrot.slane %v565_v60, 1  ;;  %v583_v5 = vrot.slane %v578_v61, 2  ;;  %v558_v7 = vmul.f32 %v557_v53, %v549_v54 }
 0x2c0   : > { %v584_v8 = vrot.slane %v579_v62, 2  ;;  %v597_v9 = vrot.slane %v592_v63, 3  ;;  %v598_v10 = vrot.slane %v593_v0, 3  ;;  %v620_v13 = vmul.f32 %v619_v56, %v549_v54 }
 0x2c1   : > { %v571_v12 = vsel %vm568_vm3, %v569_v3, %v570_v4  ;;  %v621_v14 = vmul.f32 %v619_v56, %v1130_v55  ;;  %v611_v17 = vrot.slane %v606_v2, 4  ;;  %v612_v19 = vrot.slane %v607_v6, 4 }
 0x2c2   : > { %v573_v16 = vadd.f32 %v571_v12, %v558_v7  ;;  %v585_v18 = vsel %vm582_vm4, %v583_v5, %v584_v8  ;;  %v634_v20 = vmul.f32 %v633_v57, %v549_v54  ;;  %v635_v22 = vmul.f32 %v633_v57, %v1130_v55 }
 0x2c3   : > { %v599_v24 = vsel %vm596_vm5, %v597_v9, %v598_v10  ;;  %v625_v27 = vrot.slane %v620_v13, 5  ;;  %v626_v28 = vrot.slane %v621_v14, 5  ;;  %v648_v29 = vmul.f32 %v647_v15, %v549_v54 }
 0x2c4   : > { %v587_v23 = vadd.f32 %v585_v18, %v573_v16  ;;  %v649_v30 = vmul.f32 %v647_v15, %v1130_v55  ;;  %v613_v32 = vsel %vm610_vm6, %v611_v17, %v612_v19  ;;  %v639_v33 = vrot.slane %v634_v20, 6 }
 0x2c5   : > { %v640_v34 = vrot.slane %v635_v22, 6  ;;  %v627_v40 = vsel %vm624_vm7, %v625_v27, %v626_v28  ;;  %v653_v41 = vrot.slane %v648_v29, 7  ;;  %v668_v49 = vmul.f32 %v667_v25, %v1130_v55  ;;  %v926_v27 = vld [vmem:[%s1205_s8] ss:$0 sm:$0xff] }
 0x2c6   : > { %v601_v31 = vadd.f32 %v599_v24, %v587_v23  ;;  %v654_v43 = vrot.slane %v649_v30, 7  ;;  %v661_v51 = vrot.slane %v553_v11, %v556_v46  ;;  %v706_v52 = vrot.slane %v553_v11, %v604_v45  ;;  %v927_v29 = vld [vmem:[%s1206_s9] ss:$0 sm:$0xff] }
 0x2c7   : > { %v641_v42 = vsel %vm638_vm8, %v639_v33, %v640_v34  ;;  %v681_v53 = vmul.f32 %v680_v35, %v1130_v55  ;;  %v682_v54 = vmul.f32 %v680_v35, %v551_v26  ;;  %v673_v56 = vrot.slane %v669_v37, 1 }
 0x2c8   : > { %v615_v36 = vadd.f32 %v613_v32, %v601_v31  ;;  %v719_v57 = vrot.slane %v553_v11, %v618_v47  ;;  %v655_v58 = vsel %vm652_vm9, %v653_v41, %v654_v43  ;;  %v672_v59 = vrot.slane %v668_v49, 1 }
 0x2c9   : > { %v694_v60 = vmul.f32 %v693_v39, %v1130_v55  ;;  %v695_v61 = vmul.f32 %v693_v39, %v551_v26  ;;  %v662_v46 = vmul.f32 %v661_v51, %v1130_v55  ;;  %v708_v63 = vmul.f32 %v706_v52, %v551_v26  ;;  %v929_v39 = vld [vmem:[%s1208_s11] ss:$0 sm:$0xff] }
 0x2ca   : > { %v629_v50 = vadd.f32 %v627_v40, %v615_v36  ;;  %v685_v45 = vrot.slane %v681_v53, 2  ;;  %v686_v0 = vrot.slane %v682_v54, 2  ;;  %v707_v2 = vmul.f32 %v706_v52, %v1130_v55 }
 0x2cb   : > { %v732_v3 = vrot.slane %v553_v11, %v632_v48  ;;  %v721_v5 = vmul.f32 %v719_v57, %v551_v26  ;;  %v674_v47 = vsel %vm568_vm3, %v672_v59, %v673_v56  ;;  %v698_v6 = vrot.slane %v694_v60, 3 }
 0x2cc   : > { %v643_v44 = vadd.f32 %v641_v42, %v629_v50  ;;  %v699_v7 = vrot.slane %v695_v61, 3  ;;  %v720_v8 = vmul.f32 %v719_v57, %v1130_v55  ;;  %v712_v10 = vrot.slane %v708_v63, 4 }
 0x2cd   : > { %v687_v12 = vsel %vm582_vm4, %v685_v45, %v686_v0  ;;  %v711_v13 = vrot.slane %v707_v2, 4  ;;  %v733_v14 = vmul.f32 %v732_v3, %v1130_v55  ;;  %v734_v15 = vmul.f32 %v732_v3, %v551_v26  ;;  %v925_v55 = vld [vmem:[%s1204_s7] ss:$0 sm:$0xff] }
 0x2ce   : > { %v657_v62 = vadd.f32 %v655_v58, %v643_v44  ;;  %v700_v38 = vsel %vm596_vm5, %v698_v6, %v699_v7  ;;  %v724_v48 = vrot.slane %v720_v8, 5  ;;  %v725_v11 = vrot.slane %v721_v5, 5 }
 0x2cf   : > { %v713_v18 = vsel %vm610_vm6, %v711_v13, %v712_v10  ;;  %v737_v19 = vrot.slane %v733_v14, 6  ;;  %v738_v20 = vrot.slane %v734_v15, 6 }
 0x2d0   : > { %v663_v4 = vadd.f32 %v662_v46, %v657_v62  ;;  %v726_v23 = vsel %vm624_vm7, %v724_v48, %v725_v11 }
 0x2d1   : > { %v739_v25 = vsel %vm638_vm8, %v737_v19, %v738_v20 }
 0x2d2   : > { %v676_v9 = vadd.f32 %v674_v47, %v663_v4 }
 0x2d4   : > { %v689_v16 = vadd.f32 %v687_v12, %v676_v9 }
 0x2d6   : > { %v702_v17 = vadd.f32 %v700_v38, %v689_v16 }
 0x2d8   : > { %v715_v22 = vadd.f32 %v713_v18, %v702_v17 }
 0x2da   : > { %v728_v24 = vadd.f32 %v726_v23, %v715_v22 }
 0x2dc   : > { %v741_v26 = vadd.f32 %v739_v25, %v728_v24 }
 0x2de   : > { %v749_v28 = vadd.f32 %v925_v55, %v741_v26 }
 0x2e0   : > { %v757_v30 = vmul.f32 %v926_v27, %v749_v28 }
 0x2e2   : > { %v765_v31 = vadd.f32 %v927_v29, %v757_v30 }
 0x2e4   : > { %v928_v32 = vmul.f32 -1.442695, %v765_v31 }
 0x2e6   : > { %981 = vpow2.f32 %v928_v32 }
 0x2f0   : > { %v982_v33 = vpop.eup %981 }
 0x2f1   : > { %v769_v34 = vadd.f32 1.0, %v982_v33 }
 0x2f3   : > { %983 = vrcp.f32 %v769_v34 }
 0x2fd   : > { %v984_v35 = vpop.eup %983 }
 0x2fe   : > { %v772_v36 = vmul.f32 %v984_v35, %v765_v31 }
 0x300   : > { %v777_v37 = vpack.c.bf16 %v772_v36, %v772_v36 }
 0x302   : > { %954 = vmatmul.mubr.msk.bf16.vlgmr.msra.gmra.mrb[0].mxu1 %vm432_vm0, %v777_v37 }
 0x3d5   : > { %v834_v40 = vpop.f32.mrb[0].mxu1 }
 0x3d6   : > { %v835_v41 = vadd.f32 %v929_v39, %v834_v40  ;;  %v955_v43 = vpop.f32.mrb[1].mxu1 }
 0x3d7   : > { %v837_v49 = vpop.f32.mrb[2].mxu1 }
 0x3d8   : > { %v840_v50 = vmul.f32 %v835_v41, %v1100_v21  ;;  %v956_v51 = vpop.f32.mrb[3].mxu1 }
 0x3da   : > { %v841_v52 = vadd.f32 %v840_v50, %v1078_v1 }
 0x3dc   : > { %v842_v42 = vpack.c.bf16 %v841_v52, %v841_v52 }
 0x3de   : > { %844 = vst.msk [vmem:[%s425_s30] sm:$0xf] %vm843_vm10, %v842_v42 }
 0x3df PF: > { %s22_s21 = sadd.s32 1, %s991_s21  }
 0x3e0   : > { %p19_p4 = scmp.ge.s32.totalorder %s22_s21, 4  }
 0x3e2   :  { %21 = sbr.rel (!%p19_p4) target bundleno = 1 (0x1), region = 101 }

// kernel: conformer_encoder_forward.18
= control target key start
LH: loop header
LB: loop body
LE: loop exit
PB: predicated region body
PF: predicated region fallthrough
CT: control target
= control target key end

     0   :  { %s2013_s18 = smov 0   ;;  %s2015_s19 = smov 0   ;;  %s2260_s0 = inlined_call_operand.vmem [shape: bf16[2,8,32], index: 0, kind: input, shape index: {}, may-alias: {0,1}]   ;;  %s2261_s1 = inlined_call_operand.vmem [shape: bf16[2,8,32], index: 1, kind: input, shape index: {}, may-alias: {0,1}]   ;;  %s2262_s2 = inlined_call_operand.vmem [shape: f32[2,1,8], index: 2, kind: input, shape index: {}]   ;;  %s2263_s3 = inlined_call_operand.vmem [shape: f32[2,1,8], index: 3, kind: input, shape index: {}]   ;;  %s2264_s4 = inlined_call_operand.vmem [shape: bf16[8,32], index: 4, kind: input, shape index: {}]   ;;  %s2265_s5 = inlined_call_operand.vmem [shape: f32[1,32], index: 5, kind: input, shape index: {}]   ;;  %s2266_s6 = inlined_call_operand.vmem [shape: f32[1,32], index: 6, kind: input, shape index: {}]   ;;  %s2267_s7 = inlined_call_operand.vmem [shape: bf16[32,32], index: 7, kind: input, shape index: {}]   ;;  %s2268_s8 = inlined_call_operand.vmem [shape: f32[1,32], index: 8, kind: input, shape index: {}]   ;;  %s2269_s9 = inlined_call_operand.vmem [shape: bf16[32,64], index: 9, kind: input, shape index: {}]   ;;  %s2270_s10 = inlined_call_operand.vmem [shape: f32[1,64], index: 10, kind: input, shape index: {}]   ;;  %s2271_s11 = inlined_call_operand.vmem [shape: f32[1,32], index: 11, kind: input, shape index: {}]   ;;  %s2272_s12 = inlined_call_operand.vmem [shape: f32[1,32], index: 12, kind: input, shape index: {}]   ;;  %s2273_s13 = inlined_call_operand.vmem [shape: bf16[32,32], index: 13, kind: input, shape index: {}]   ;;  %s2274_s14 = inlined_call_operand.vmem [shape: f32[1,32], index: 14, kind: input, shape index: {}]   ;;  %s2275_s15 = inlined_call_operand.vmem [shape: bf16[2,8,32], index: 15, kind: output, shape index: {}]  }
   0x1   :  { %s2017_s20 = smov 0  }
   0x2 LB: > { %s37_s21 = sadd.s32 1, %s1918_s19  ;;  %p1668_p0 = scmp.ge.s32.totalorder %s1922_s20, 1  ;;  %s1922_s20 = sphi %s2017_s20, %s25_s20   ;;  %s1918_s19 = sphi %s2015_s19, %s2277_s19   ;;  %s1914_s18 = sphi %s2013_s18, %s2276_s18  }
   0x3   : > { %p39_p1 = scmp.ge.s32.totalorder %s37_s21, 2  ;;  %p480_p2 = scmp.lt.s32.totalorder %s1922_s20, 3 }
   0x5   : > { %s2279_s21 = smov (%p39_p1, %s37_s21), 0  ;;  %p481_p3 = pnand %p1668_p0, %p480_p2 }
   0x6   : > { %p542_p4 = scmp.lt.s32.totalorder (!%p481_p3), %s1914_s18, 1  ;;  %vm575_vm0 = vcmask (!%p481_p3), 261120   ;;  %v1873_v16 = vld [vmem:[%s2269_s9] sm:$0xff] (!%p481_p3)   ;;  %v1924_v18 = vmov (!%p481_p3), 0.0   ;;  %v1874_v19 = vld [vmem:[%s2269_s9 + $0x8] sm:$0xff] (!%p481_p3)   ;;  %vm1925_vm1 = vmmov (!%p481_p3), 0  }
   0x7   : > { %484 = sbr.rel (%p481_p3) target bundleno = 3283 (0xcd3), region = 80  ;;  %v1875_v17 = vld [vmem:[%s2267_s7] sm:$0xff] (!%p481_p3)   ;;  %1744 = vmatprep.subr.bf16.mxu0 (!%p481_p3), %v1924_v18  ;;  %1752 = vmatprep.subr.bf16.mxu1 (!%p481_p3), %v1924_v18  ;;  %v1876_v20 = vld [vmem:[%s2267_s7 + $0x8] sm:$0xff] (!%p481_p3)   ;;  %vm806_vm2 = vcmask (!%p481_p3), 64512   ;;  %vm672_vm3 = vcmask (!%p481_p3), 257024   ;;  %s1926_s16 = smov (!%p481_p3), 120  }
   0x8   : > { %1745 = vmatpush3.bf16.msra.mxu0 (!%p481_p3), %v1873_v16  ;;  %1753 = vmatpush3.bf16.msra.mxu1 (!%p481_p3), %v1875_v17  ;;  %v1672_v28 = vld [vmem:[%s2265_s5] ss:$0 sm:$0xff] (!%p481_p3)  ;;  %vm928_vm4 = vcmask (!%p481_p3), 1043456   ;;  %s1929_s29 = smov (!%p481_p3), 104   ;;  %s1930_s30 = smov (!%p481_p3), 8   ;;  %vm1150_vm5 = vcmask (!%p481_p3), 130112  }
   0x9   : > { %1746 = vmatprep.subr.bf16.mxu0 (!%p481_p3), %v1924_v18  ;;  %1748 = vmatprep.mubr.msk.bf16.mxu0 (!%p481_p3), %vm1925_vm1, %v1924_v18  ;;  %v1673_v30 = vld [vmem:[%s2266_s6] ss:$0 sm:$0xff] (!%p481_p3)  ;;  %vm1318_vm6 = vcmask (!%p481_p3), 195712   ;;  %s1932_s26 = smov (!%p481_p3), 24   ;;  %vm1486_vm7 = vcmask (!%p481_p3), 261312  }
   0xa   : > { %1754 = vmatprep.subr.bf16.mxu1 (!%p481_p3), %v1924_v18  ;;  %1756 = vmatprep.mubr.msk.bf16.mxu1 (!%p481_p3), %vm1925_vm1, %v1924_v18  ;;  %v803_v39 = vld [vmem:[%s2264_s4] sm:$0xf] (!%p481_p3) }
   0xb   : > { %v811_v40 = vsel (!%p481_p3), %vm806_vm2, %v803_v39, 0  ;;  %v1674_v41 = vld [vmem:[%s2270_s10] ss:$0 sm:$0xff] (!%p481_p3) }
   0xc   : > { %1747 = vmatpush3.bf16.msra.mxu0 (!%p481_p3), %v1874_v19  ;;  %1755 = vmatpush3.bf16.msra.mxu1 (!%p481_p3), %v1876_v20  ;;  %v1681_v46 = vld [vmem:[%s2268_s8] ss:$0 sm:$0xff] (!%p481_p3) }
   0xd   : > { %1760 = vmatprep.subr.bf16.mxu0 (!%p481_p3), %v1924_v18  ;;  %1766 = vmatprep.subr.bf16.mxu1 (!%p481_p3), %v1924_v18  ;;  %v1686_v50 = vld [vmem:[%s2272_s12] ss:$0 sm:$0xff] (!%p481_p3) }
   0xe   : > { %s2281_s18 = smov (!%p542_p4, %s1914_s18), 1  ;;  %v1685_v56 = vld [vmem:[%s2271_s11] ss:$0 sm:$0xff] }
   0xf   : > { %s2034_s22 = sshll.u32 %s2281_s18, 2  ;;  %s558_s24 = scalar_lea.vmem %s2263_s3, %s2281_s18 }
  0x10   : > { %s545_s25 = scalar_lea.vmem %s2260_s0, %s2034_s22  ;;  %s552_s28 = scalar_lea.vmem %s2261_s1, %s2034_s22 }
  0x11   : > { %v571_v0 = vld [vmem:[%s545_s25] sm:$0xf]  ;;  %s1927_s25 = smov 96  }
  0x12   : > { %v572_v1 = vunpack.c.l.bf16 %v571_v0  ;;  %v681_v2 = vld [vmem:[%s552_s28] sm:$0xf]  ;;  %v2118_v0 = vcombine.low %v803_v39, %v803_v39  ;;  %s555_s28 = scalar_lea.vmem %s2262_s2, %s2281_s18  ;;  %s1928_s18 = smov 112  }
  0x13   : > { %v2044_v3 = vunpack.c.l.bf16 %v681_v2 }
  0x14   : > { %v576_v4 = vsel %vm575_vm0, %v572_v1, 0.0 }
  0x15   : > { %577 = vadd.xlane.f32.xlu0 %v576_v4  ;;  %v686_v5 = vsel %vm575_vm0, %v2044_v3, 0.0 }
  0x19   : > { %687 = vadd.xlane.f32.xlu0 %v686_v5 }
  0xa2   : > { %v578_v6 = vpop.xlane.xlu0 %577 }
  0xa3   : > { %v580_v7 = vmul.f32 0.03125, %v578_v6 }
  0xa5   : > { %v581_v8 = vsub.f32 %v572_v1, %v580_v7  ;;  %v2126_v7 = vld [vmem:[%s558_s24] ss:$0 sm:$0xff] }
  0xa6   : > { %v688_v9 = vpop.xlane.xlu0 %687 }
  0xa7   : > { %v690_v10 = vmul.f32 0.03125, %v688_v9  ;;  %v582_v11 = vmul.f32 %v581_v8, %v581_v8 }
  0xa9   : > { %v691_v12 = vsub.f32 %v2044_v3, %v690_v10  ;;  %v583_v13 = vsel %vm575_vm0, %v582_v11, 0.0 }
  0xaa   : > { %584 = vadd.xlane.f32.xlu1 %v583_v13 }
  0xab   : > { %v692_v14 = vmul.f32 %v691_v12, %v691_v12 }
  0xad   : > { %v693_v15 = vsel %vm575_vm0, %v692_v14, 0.0 }
  0xae   : > { %694 = vadd.xlane.f32.xlu1 %v693_v15 }
  0xbf   : > { %979 = vrot.lane.b32.xlu1 %v2118_v0, %s1926_s16 }
 0x137   : > { %v585_v21 = vpop.xlane.xlu1 %584 }
 0x138   : > { %v586_v22 = vmul.f32 0.03125, %v585_v21 }
 0x13a   : > { %v587_v23 = vadd.f32 1e-05, %v586_v22 }
 0x13b   : > { %v695_v24 = vpop.xlane.xlu1 %694 }
 0x13c   : > { %1880 = vrsqrt.f32 %v587_v23  ;;  %v696_v25 = vmul.f32 0.03125, %v695_v24 }
 0x13e   : > { %v697_v26 = vadd.f32 1e-05, %v696_v25 }
 0x13f   : > { %v980_v14 = vpop.permute.xlu1 %979 }
 0x140   : > { %1882 = vrsqrt.f32 %v697_v26  ;;  %v985_v15 = vsel %vm806_vm2, %v980_v14, 0 }
 0x146   : > { %v1881_v27 = vpop.eup %1880 }
 0x147   : > { %v589_v29 = vmul.f32 %v1881_v27, %v581_v8 }
 0x149   : > { %v596_v31 = vmul.f32 %v1672_v28, %v589_v29 }
 0x14a   : > { %v1883_v32 = vpop.eup %1882 }
 0x14b   : > { %v603_v33 = vadd.f32 %v1673_v30, %v596_v31  ;;  %v699_v34 = vmul.f32 %v1883_v32, %v691_v12 }
 0x14d   : > { %v608_v35 = vpack.c.bf16 %v603_v33, %v603_v33  ;;  %v706_v36 = vmul.f32 %v1672_v28, %v699_v34 }
 0x14f   : > { %1749 = vmatmul.mubr.msk.bf16.vlgmr.msra.gmra.mrb[0].mxu0 %vm575_vm0, %v608_v35  ;;  %v713_v37 = vadd.f32 %v1673_v30, %v706_v36  ;;  %v2151_v30 = vld [vmem:[%s555_s28] ss:$0 sm:$0xff] }
 0x150   : > { %1762 = vmatprep.mubr.msk.bf16.mxu0 %vm1925_vm1, %v1924_v18  ;;  %1761 = vmatpush3.bf16.xpose.msra.mxu0 %v811_v40 }
 0x151   : > { %v718_v38 = vpack.c.bf16 %v713_v37, %v713_v37  ;;  %1772 = vmatprep.subr.bf16.mxu0 %v1924_v18 }
 0x153   : > { %1757 = vmatmul.mubr.msk.bf16.vlgmr.msra.gmra.mrb[0].mxu1 %vm575_vm0, %v718_v38 }
 0x154   : > { %1768 = vmatprep.mubr.msk.bf16.mxu1 %vm1925_vm1, %v1924_v18 }
 0x222   : > { %v665_v42 = vpop.f32.mrb[0].mxu0 }
 0x223   : > { %v666_v43 = vadd.f32 %v1674_v41, %v665_v42  ;;  %v1750_v44 = vpop.f32.mrb[1].mxu0 }
 0x224   : > { %v668_v45 = vpop.f32.mrb[2].mxu0 }
 0x225   : > { %v671_v47 = vpack.c.bf16 %v666_v43, %v666_v43  ;;  %v1751_v48 = vpop.f32.mrb[3].mxu0 }
 0x226   : > { %v775_v49 = vpop.f32.mrb[0].mxu1 }
 0x227   : > { %673 = vst.msk [vmem:[#allocation2] sm:$0xf] %vm672_vm3, %v671_v47  ;;  %v776_v51 = vadd.f32 %v1681_v46, %v775_v49  ;;  %v1758_v52 = vpop.f32.mrb[1].mxu1 }
 0x228   : > { %v778_v53 = vpop.f32.mrb[2].mxu1 }
 0x229   : > { %v798_v54 = vadd.f32 %v1686_v50, %v776_v51  ;;  %v1759_v55 = vpop.f32.mrb[3].mxu1  ;;  %v788_v58 = vadd.f32 %v1685_v56, %v776_v51 }
 0x22b   : > { %v799_v57 = vmul.f32 0.35355338, %v798_v54  ;;  %v789_v62 = vmul.f32 0.35355338, %v788_v58 }
 0x22d   : > { %v2104_v59 = vpack.c.bf16 %v799_v57, %v799_v57  ;;  %v2112_v63 = vpack.c.bf16 %v789_v62, %v789_v62 }
 0x22e   : > { %v801_v60 = vld [vmem:[#allocation2] sm:$0xf] }
 0x22f   : > { %1763 = vmatmul.mubr.msk.bf16.vlgmr.msra.gmra.mrb[4].mxu0 %vm806_vm2, %v2104_v59  ;;  %v857_v61 = vsel %vm806_vm2, %v801_v60, 0  ;;  %v2138_v25 = vcombine.low %v801_v60, %v801_v60 }
 0x230   : > { %1767 = vmatpush3.bf16.xpose.msra.mxu1 %v857_v61  ;;  %1774 = vmatprep.mubr.msk.bf16.mxu0 %vm1925_vm1, %v1924_v18 }
 0x231   : > { %1778 = vmatprep.subr.bf16.mxu1 %v1924_v18 }
 0x237   : > { %1769 = vmatmul.mubr.msk.bf16.vlgmr.msra.gmra.mrb[4].mxu1 %vm806_vm2, %v2112_v63 }
 0x238   : > { %1780 = vmatprep.mubr.msk.bf16.mxu1 %vm1925_vm1, %v1924_v18  ;;  %1779 = vmatpush3.bf16.xpose.msra.mxu1 %v985_v15 }
 0x239   : > { %1790 = vmatprep.subr.bf16.mxu1 %v1924_v18 }
 0x302   : > { %v847_v1 = vpop.f32.mrb[4].mxu0 }
 0x303   : > { %v1764_v2 = vpop.f32.mrb[5].mxu0 }
 0x304   : > { %v850_v4 = vpop.f32.mrb[6].mxu0 }
 0x305   : > { %v1765_v5 = vpop.f32.mrb[7].mxu0 }
 0x30a   : > { %v893_v6 = vpop.f32.mrb[4].mxu1 }
 0x30b   : > { %v894_v8 = vadd.f32 %v893_v6, %v847_v1  ;;  %v1770_v9 = vpop.f32.mrb[5].mxu1 }
 0x30c   : > { %v896_v10 = vpop.f32.mrb[6].mxu1 }
 0x30d   : > { %v1771_v11 = vpop.f32.mrb[7].mxu1  ;;  %v905_v12 = vadd.f32 %v2126_v7, %v894_v8 }
 0x30f   : > { %v906_v13 = vsel %vm806_vm2, %v905_v12, -inf }
 0x310   : > { %907 = vmax.xlane.f32.xlu0 %v906_v13 }
 0x326   : > { %677 = vrot.lane.b32.xlu0 %v671_v47, %s1927_s25 }
 0x32a   : > { %1028 = vrot.lane.b32.xlu0 %v2112_v63, %s1926_s16 }
 0x39d   : > { %v908_v16 = vpop.xlane.xlu0 %907 }
 0x39e   : > { %v909_v17 = vsub.f32 %v905_v12, %v908_v16 }
 0x3a0   : > { %v910_v19 = vmul.f32 1.442695, %v909_v17 }
 0x3a1   : > { %v678_v20 = vpop.permute.xlu0 %677 }
 0x3a2   : > { %1884 = vpow2.f32 %v910_v19  ;;  %680 = vst.msk [vmem:[#allocation3] sm:$0xf] %vm672_vm3, %v678_v20 }
 0x3a5   : > { %v1029_v35 = vpop.permute.xlu0 %1028 }
 0x3a9   : > { %v802_v21 = vld [vmem:[#allocation3] sm:$0xf] }
 0x3aa   : > { %v930_v22 = vsel %vm928_vm4, %v802_v21, 0  ;;  %v2174_v58 = vcombine.low %v802_v21, %v802_v21 }
 0x3ab   : > { %1773 = vmatpush3.bf16.msra.mxu0 %v930_v22 }
 0x3ac   : > { %v1885_v23 = vpop.eup %1884  ;;  %1784 = vmatprep.subr.bf16.mxu0 %v1924_v18 }
 0x3ad   : > { %v912_v24 = vsel %vm806_vm2, %v1885_v23, 0.0 }
 0x3ae   : > { %913 = vadd.xlane.f32.xlu1 %v912_v24 }
 0x3bf   : > { %1033 = vrot.lane.b32.xlu1 %v2138_v25, %s1926_s16 }
 0x3c3   : > { %974 = vrot.lane.b32.xlu1 %v2104_v59, %s1926_s16 }
 0x43b   : > { %v914_v26 = vpop.xlane.xlu1 %913 }
 0x43c   : > { %1886 = vrcp.f32 %v914_v26 }
 0x43f   : > { %v1034_v27 = vpop.permute.xlu1 %1033 }
 0x440   : > { %v1039_v34 = vsel %vm806_vm2, %v1034_v27, 0 }
 0x443   : > { %v975_v28 = vpop.permute.xlu1 %974 }
 0x444   : > { %1781 = vmatmul.mubr.msk.bf16.vlgmr.msra.gmra.mrb[8].mxu1 %vm806_vm2, %v975_v28 }
 0x445   : > { %1792 = vmatprep.mubr.msk.bf16.mxu1 %vm1925_vm1, %v1924_v18 }
 0x446   : > { %v1887_v29 = vpop.eup %1886 }
 0x447   : > { %v916_v31 = vmul.f32 %v1887_v29, %v1885_v23 }
 0x449   : > { %v923_v32 = vmul.f32 %v2151_v30, %v916_v31 }
 0x44b   : > { %v924_v33 = vpack.c.bf16 %v923_v32, %v923_v32 }
 0x44d   : > { %1775 = vmatmul.mubr.msk.bf16.vlgmr.msra.gmra.mrb[8].mxu0 %vm806_vm2, %v924_v33 }
 0x44e   : > { %1785 = vmatpush3.bf16.xpose.msra.mxu0 %v1039_v34  ;;  %1786 = vmatprep.mubr.msk.bf16.mxu0 %vm1925_vm1, %v1924_v18 }
 0x44f   : > { %1796 = vmatprep.subr.bf16.mxu0 %v1924_v18 }
 0x455   : > { %1787 = vmatmul.mubr.msk.bf16.vlgmr.msra.gmra.mrb[12].mxu0 %vm806_vm2, %v1029_v35 }
 0x456   : > { %1798 = vmatprep.mubr.msk.bf16.mxu0 %vm1925_vm1, %v1924_v18 }
 0x517   : > { %v1021_v36 = vpop.f32.mrb[8].mxu1 }
 0x518   : > { %v1782_v37 = vpop.f32.mrb[9].mxu1 }
 0x519   : > { %v1024_v38 = vpop.f32.mrb[10].mxu1 }
 0x51a   : > { %v1783_v39 = vpop.f32.mrb[11].mxu1 }
 0x520   : > { %v966_v40 = vpop.f32.mrb[8].mxu0 }
 0x521   : > { %972 = vst.msk [vmem:[#allocation4] sm:$0xff] %vm806_vm2, %v966_v40  ;;  %v1776_v41 = vpop.f32.mrb[9].mxu0 }
 0x522   : > { %v969_v42 = vpop.f32.mrb[10].mxu0 }
 0x523   : > { %v1777_v43 = vpop.f32.mrb[11].mxu0 }
 0x528   : > { %v1075_v44 = vpop.f32.mrb[12].mxu0 }
 0x529   : > { %v1076_v45 = vadd.f32 %v1075_v44, %v1021_v36  ;;  %v1788_v46 = vpop.f32.mrb[13].mxu0 }
 0x52a   : > { %v1078_v47 = vpop.f32.mrb[14].mxu0 }
 0x52b   : > { %v1789_v48 = vpop.f32.mrb[15].mxu0  ;;  %v1081_v49 = vadd.f32 %v2126_v7, %v1076_v45 }
 0x52d   : > { %v1082_v50 = vsel %vm806_vm2, %v1081_v49, -inf }
 0x52e   : > { %1083 = vmax.xlane.f32.xlu1 %v1082_v50 }
 0x53f   : > { %1154 = vrot.lane.b32.xlu1 %v2118_v0, %s1928_s18 }
 0x543   : > { %1204 = vrot.lane.b32.xlu1 %v2138_v25, %s1928_s18 }
 0x547   : > { %1202 = vrot.lane.b32.xlu1 %v2112_v63, %s1928_s18 }
 0x5bb   : > { %v1084_v51 = vpop.xlane.xlu1 %1083 }
 0x5bc   : > { %v1085_v52 = vsub.f32 %v1081_v49, %v1084_v51 }
 0x5be   : > { %v1086_v53 = vmul.f32 1.442695, %v1085_v52 }
 0x5bf   : > { %v1155_v54 = vpop.permute.xlu1 %1154 }
 0x5c0   : > { %1888 = vpow2.f32 %v1086_v53  ;;  %v1160_v55 = vsel %vm806_vm2, %v1155_v54, 0 }
 0x5c1   : > { %1797 = vmatpush3.bf16.xpose.msra.mxu0 %v1160_v55 }
 0x5c2   : > { %1808 = vmatprep.subr.bf16.mxu0 %v1924_v18 }
 0x5c3   : > { %v1205_v6 = vpop.permute.xlu1 %1204 }
 0x5c4   : > { %v1210_v9 = vsel %vm806_vm2, %v1205_v6, 0 }
 0x5c7   : > { %v1203_v10 = vpop.permute.xlu1 %1202 }
 0x5ca   : > { %v1889_v56 = vpop.eup %1888 }
 0x5cb   : > { %v1088_v57 = vsel %vm806_vm2, %v1889_v56, 0.0 }
 0x5cc   : > { %1089 = vadd.xlane.f32.xlu0 %v1088_v57 }
 0x5e2   : > { %1098 = vrot.lane.b32.xlu0 %v2174_v58, %s1926_s16  ;;  %s1931_s16 = smov 16  }
 0x5e6   : > { %1152 = vrot.lane.b32.xlu0 %v2104_v59, %s1928_s18 }
 0x659   : > { %v1090_v60 = vpop.xlane.xlu0 %1089 }
 0x65a   : > { %1890 = vrcp.f32 %v1090_v60 }
 0x65d   : > { %v1099_v61 = vpop.permute.xlu0 %1098 }
 0x65e   : > { %v1104_v62 = vsel %vm928_vm4, %v1099_v61, 0 }
 0x65f   : > { %1791 = vmatpush3.bf16.msra.mxu1 %v1104_v62 }
 0x660   : > { %1802 = vmatprep.subr.bf16.mxu1 %v1924_v18 }
 0x661   : > { %v1153_v1 = vpop.permute.xlu0 %1152 }
 0x662   : > { %1799 = vmatmul.mubr.msk.bf16.vlgmr.msra.gmra.mrb[16].mxu0 %vm806_vm2, %v1153_v1 }
 0x663   : > { %1810 = vmatprep.mubr.msk.bf16.mxu0 %vm1925_vm1, %v1924_v18 }
 0x664   : > { %v1891_v2 = vpop.eup %1890 }
 0x665   : > { %v1092_v4 = vmul.f32 %v1891_v2, %v1889_v56 }
 0x667   : > { %v1093_v5 = vmul.f32 %v2151_v30, %v1092_v4 }
 0x669   : > { %v1094_v8 = vpack.c.bf16 %v1093_v5, %v1093_v5 }
 0x66b   : > { %1793 = vmatmul.mubr.msk.bf16.vlgmr.msra.gmra.mrb[12].mxu1 %vm806_vm2, %v1094_v8 }
 0x66c   : > { %1803 = vmatpush3.bf16.xpose.msra.mxu1 %v1210_v9  ;;  %1804 = vmatprep.mubr.msk.bf16.mxu1 %vm1925_vm1, %v1924_v18 }
 0x66d   : > { %1814 = vmatprep.subr.bf16.mxu1 %v1924_v18 }
 0x673   : > { %1805 = vmatmul.mubr.msk.bf16.vlgmr.msra.gmra.mrb[16].mxu1 %vm806_vm2, %v1203_v10 }
 0x674   : > { %1816 = vmatprep.mubr.msk.bf16.mxu1 %vm1925_vm1, %v1924_v18 }
 0x735   : > { %v1196_v11 = vpop.f32.mrb[16].mxu0 }
 0x736   : > { %v1800_v12 = vpop.f32.mrb[17].mxu0 }
 0x737   : > { %v1199_v13 = vpop.f32.mrb[18].mxu0 }
 0x738   : > { %v1801_v14 = vpop.f32.mrb[19].mxu0  ;;  %v1878_v13 = vld [vmem:[%s2273_s13] sm:$0xff]  }
 0x73e   : > { %v2194_v15 = vpop.f32.mrb[12].mxu1 }
 0x73f   : > { %v1794_v16 = vpop.f32.mrb[13].mxu1 }
 0x740   : > { %v1143_v17 = vpop.f32.mrb[14].mxu1 }
 0x741   : > { %v1795_v19 = vpop.f32.mrb[15].mxu1 }
 0x746   : > { %v1246_v20 = vpop.f32.mrb[16].mxu1 }
 0x747   : > { %v1247_v21 = vadd.f32 %v1246_v20, %v1196_v11  ;;  %v1806_v22 = vpop.f32.mrb[17].mxu1 }
 0x748   : > { %v1249_v23 = vpop.f32.mrb[18].mxu1 }
 0x749   : > { %v1807_v24 = vpop.f32.mrb[19].mxu1  ;;  %v1252_v26 = vadd.f32 %v2126_v7, %v1247_v21  ;;  %v1704_v21 = vld [vmem:[%s2274_s14] ss:$0 sm:$0xff] }
 0x74b   : > { %v1253_v27 = vsel %vm806_vm2, %v1252_v26, -inf }
 0x74c   : > { %1254 = vmax.xlane.f32.xlu0 %v1253_v27 }
 0x762   : > { %1266 = vrot.lane.b32.xlu0 %v2174_v58, %s1928_s18 }
 0x766   : > { %1372 = vrot.lane.b32.xlu0 %v2138_v25, %s1929_s29 }
 0x76a   : > { %1370 = vrot.lane.b32.xlu0 %v2112_v63, %s1929_s29 }
 0x7d9   : > { %v1255_v28 = vpop.xlane.xlu0 %1254 }
 0x7da   : > { %v1256_v29 = vsub.f32 %v1252_v26, %v1255_v28 }
 0x7dc   : > { %v1257_v31 = vmul.f32 1.442695, %v1256_v29 }
 0x7dd   : > { %v1267_v32 = vpop.permute.xlu0 %1266 }
 0x7de   : > { %1892 = vpow2.f32 %v1257_v31  ;;  %v1272_v33 = vsel %vm928_vm4, %v1267_v32, 0 }
 0x7df   : > { %1809 = vmatpush3.bf16.msra.mxu0 %v1272_v33 }
 0x7e0   : > { %1820 = vmatprep.subr.bf16.mxu0 %v1924_v18 }
 0x7e8   : > { %v1893_v34 = vpop.eup %1892 }
 0x7e9   : > { %v1259_v35 = vsel %vm806_vm2, %v1893_v34, 0.0 }
 0x7ea   : > { %1260 = vadd.xlane.f32.xlu1 %v1259_v35 }
 0x7fb   : > { %1322 = vrot.lane.b32.xlu1 %v2118_v0, %s1929_s29  ;;  %v1373_v0 = vpop.permute.xlu0 %1372 }
 0x7fc   : > { %v1378_v41 = vsel %vm806_vm2, %v1373_v0, 0 }
 0x7ff   : > { %1320 = vrot.lane.b32.xlu1 %v2104_v59, %s1929_s29  ;;  %v1371_v42 = vpop.permute.xlu0 %1370 }
 0x877   : > { %v1261_v63 = vpop.xlane.xlu1 %1260 }
 0x878   : > { %1894 = vrcp.f32 %v1261_v63 }
 0x87b   : > { %v1323_v25 = vpop.permute.xlu1 %1322 }
 0x87c   : > { %v1328_v36 = vsel %vm806_vm2, %v1323_v25, 0 }
 0x87d   : > { %1815 = vmatpush3.bf16.xpose.msra.mxu1 %v1328_v36 }
 0x87e   : > { %1826 = vmatprep.subr.bf16.mxu1 %v1924_v18 }
 0x87f   : > { %v1321_v39 = vpop.permute.xlu1 %1320 }
 0x882   : > { %v1895_v37 = vpop.eup %1894 }
 0x883   : > { %v1263_v38 = vmul.f32 %v1895_v37, %v1893_v34 }
 0x884   : > { %1817 = vmatmul.mubr.msk.bf16.vlgmr.msra.gmra.mrb[20].mxu1 %vm806_vm2, %v1321_v39 }
 0x885   : > { %v1264_v40 = vmul.f32 %v2151_v30, %v1263_v38  ;;  %1828 = vmatprep.mubr.msk.bf16.mxu1 %vm1925_vm1, %v1924_v18 }
 0x887   : > { %v1265_v59 = vpack.c.bf16 %v1264_v40, %v1264_v40 }
 0x889   : > { %1811 = vmatmul.mubr.msk.bf16.vlgmr.msra.gmra.mrb[20].mxu0 %vm806_vm2, %v1265_v59 }
 0x88a   : > { %1821 = vmatpush3.bf16.xpose.msra.mxu0 %v1378_v41  ;;  %1822 = vmatprep.mubr.msk.bf16.mxu0 %vm1925_vm1, %v1924_v18 }
 0x88b   : > { %1832 = vmatprep.subr.bf16.mxu0 %v1924_v18 }
 0x891   : > { %1823 = vmatmul.mubr.msk.bf16.vlgmr.msra.gmra.mrb[24].mxu0 %vm806_vm2, %v1371_v42 }
 0x892   : > { %1836 = vmatprep.mubr.msk.bf16.mxu0 %vm1925_vm1, %v1924_v18  ;;  %1833 = vmatpush3.bf16.msra.mxu0 %v1878_v13 }
 0x893   : > { %1834 = vmatprep.subr.bf16.mxu0 %v1924_v18 }
 0x957   : > { %v1364_v43 = vpop.f32.mrb[20].mxu1 }
 0x958   : > { %v1818_v44 = vpop.f32.mrb[21].mxu1 }
 0x959   : > { %v1367_v45 = vpop.f32.mrb[22].mxu1 }
 0x95a   : > { %v1819_v46 = vpop.f32.mrb[23].mxu1 }
 0x95c   : > { %v1308_v47 = vpop.f32.mrb[20].mxu0 }
 0x95d   : > { %v1812_v48 = vpop.f32.mrb[21].mxu0 }
 0x95e   : > { %v1311_v49 = vpop.f32.mrb[22].mxu0 }
 0x95f   : > { %v1813_v50 = vpop.f32.mrb[23].mxu0 }
 0x964   : > { %v1414_v51 = vpop.f32.mrb[24].mxu0 }
 0x965   : > { %v1415_v52 = vadd.f32 %v1414_v51, %v1364_v43  ;;  %v1824_v53 = vpop.f32.mrb[25].mxu0 }
 0x966   : > { %v1417_v54 = vpop.f32.mrb[26].mxu0 }
 0x967   : > { %v1825_v55 = vpop.f32.mrb[27].mxu0  ;;  %v1420_v56 = vadd.f32 %v2126_v7, %v1415_v52 }
 0x969   : > { %v1421_v57 = vsel %vm806_vm2, %v1420_v56, -inf }
 0x96a   : > { %1422 = vmax.xlane.f32.xlu1 %v1421_v57 }
 0x97b   : > { %1147 = vrot.lane.b32.xlu1 %v2194_v15, %s1930_s30  ;;  %s565_s30 = scalar_lea.vmem %s2275_s15, %s2034_s22 }
 0x97f   : > { %1315 = vrot.lane.b32.xlu1 %v1308_v47, %s1931_s16 }
 0x9f7   : > { %v1423_v60 = vpop.xlane.xlu1 %1422 }
 0x9f8   : > { %v1424_v61 = vsub.f32 %v1420_v56, %v1423_v60 }
 0x9fa   : > { %v1425_v62 = vmul.f32 1.442695, %v1424_v61 }
 0x9fb   : > { %v1148_v1 = vpop.permute.xlu1 %1147 }
 0x9fc   : > { %1896 = vpow2.f32 %v1425_v62  ;;  %1151 = vst.msk [vmem:[#allocation4] sm:$0xff] %vm1150_vm5, %v1148_v1 }
 0x9ff   : > { %v1316_v2 = vpop.permute.xlu1 %1315 }
 0xa00   : > { %1319 = vst.msk [vmem:[#allocation4] sm:$0xff] %vm1318_vm6, %v1316_v2 }
 0xa06   : > { %v1897_v4 = vpop.eup %1896 }
 0xa07   : > { %v1427_v7 = vsel %vm806_vm2, %v1897_v4, 0.0 }
 0xa08   : > { %1428 = vadd.xlane.f32.xlu0 %v1427_v7 }
 0xa1e   : > { %1434 = vrot.lane.b32.xlu0 %v2174_v58, %s1929_s29  ;;  %v1879_v58 = vld [vmem:[%s2273_s13 + $0x8] sm:$0xff]  }
 0xa1f   : > { %1835 = vmatpush3.bf16.msra.mxu0 %v1879_v58 }
 0xa95   : > { %v1429_v5 = vpop.xlane.xlu0 %1428 }
 0xa96   : > { %1898 = vrcp.f32 %v1429_v5 }
 0xa99   : > { %v1435_v6 = vpop.permute.xlu0 %1434 }
 0xa9a   : > { %v1440_v8 = vsel %vm928_vm4, %v1435_v6, 0 }
 0xa9b   : > { %1827 = vmatpush3.bf16.msra.mxu1 %v1440_v8 }
 0xaa0   : > { %v1899_v9 = vpop.eup %1898 }
 0xaa1   : > { %v1431_v10 = vmul.f32 %v1899_v9, %v1897_v4 }
 0xaa3   : > { %v1432_v11 = vmul.f32 %v2151_v30, %v1431_v10 }
 0xaa5   : > { %v1433_v12 = vpack.c.bf16 %v1432_v11, %v1432_v11 }
 0xaa7   : > { %1829 = vmatmul.mubr.msk.bf16.vlgmr.msra.gmra.mrb[24].mxu1 %vm806_vm2, %v1433_v12 }
 0xb7a   : > { %v1476_v14 = vpop.f32.mrb[24].mxu1 }
 0xb7b   : > { %1483 = vrot.lane.b32.xlu0 %v1476_v14, %s1932_s26  ;;  %v1830_v15 = vpop.f32.mrb[25].mxu1 }
 0xb7c   : > { %v1479_v30 = vpop.f32.mrb[26].mxu1 }
 0xb7d   : > { %v1831_v16 = vpop.f32.mrb[27].mxu1 }
 0xbed   : > { %v1484_v17 = vpop.permute.xlu0 %1483 }
 0xbee   : > { %1487 = vst.msk [vmem:[#allocation4] sm:$0xff] %vm1486_vm7, %v1484_v17 }
 0xbf5   : > { %v1488_v19 = vld [vmem:[#allocation4] sm:$0xff] }
 0xbf6   : > { %v1493_v20 = vpack.c.bf16 %v1488_v19, %v1488_v19 }
 0xbf8   : > { %1837 = vmatmul.mubr.msk.bf16.vlgmr.msra.gmra.mrb[28].mxu0 %vm575_vm0, %v1493_v20 }
 0xccb   : > { %v1550_v18 = vpop.f32.mrb[28].mxu0 }
 0xccc   : > { %v1551_v22 = vadd.f32 %v1704_v21, %v1550_v18  ;;  %v1838_v23 = vpop.f32.mrb[29].mxu0 }
 0xccd   : > { %v1553_v24 = vpop.f32.mrb[30].mxu0 }
 0xcce   : > { %v1556_v26 = vadd.f32 %v1551_v22, %v2044_v3  ;;  %v1839_v27 = vpop.f32.mrb[31].mxu0 }
 0xcd0   : > { %v1557_v28 = vpack.c.bf16 %v1556_v26, %v1556_v26 }
 0xcd2   : > { %1559 = vst.msk [vmem:[%s565_s30] sm:$0xf] %vm672_vm3, %v1557_v28 }
 0xcd3 PF: > { %s25_s20 = sadd.s32 1, %s1922_s20   ;;  %s2276_s18 = smov %s1918_s19 }
 0xcd4   : > { %p22_p5 = scmp.ge.s32.totalorder %s25_s20, 4   ;;  %s2277_s19 = smov %s2279_s21 }
 0xcd6   :  { %24 = sbr.rel (!%p22_p5) target bundleno = 2 (0x2), region = 123 }

</bundles_post_ra>
